<compile_context>
chip_gen: v5e
topology: v5e:2x2
jax: 0.10.0
libtpu: 0.0.40
codegen_flags: <defaults>
</compile_context>

<pallas_src>
import functools

import numpy as np
import jax
import jax.numpy as jnp
from jax.experimental import pallas as pl
from jax.experimental.pallas import tpu as pltpu


# ---------------------------------------------------------------------------
# Fused forward kernel (one grid step == one batch element)
# ---------------------------------------------------------------------------
def cnn_forward_kernel(x_ref, w1_ref, b1_ref, w2_ref, b2_ref,
                       s1_ref, r1_ref, s2_ref,
                       wf1_ref, bf1_ref, wf2_ref, bf2_ref,
                       o_ref, xpad1_ref, xpad2_ref, feat_ref):
    f32 = jnp.float32
    h = x_ref.shape[1]                      # H
    w = x_ref.shape[2] // 4 - 2             # W   (input lanes = (W+2)*4)
    c1 = b1_ref.shape[1] // w               # 16
    h1, w1n = h // 2, w // 2
    c2 = b2_ref.shape[1] // w1n             # 32
    h2, w2n = h // 4, w // 4
    fw = w2n * c2                           # per-row flattened feature width

    # ---- halo-only zeroing (2 rows per padded buffer; interiors fully rewritten)
    zrow1 = jnp.zeros((1, xpad1_ref.shape[1]), f32)
    xpad1_ref[0:1, :] = zrow1
    xpad1_ref[h + 1:h + 2, :] = zrow1
    zrow2 = jnp.zeros((1, xpad2_ref.shape[1]), f32)
    xpad2_ref[0:1, :] = zrow2
    xpad2_ref[h1 + 1:h1 + 2, :] = zrow2

    # ---- stage 1: conv1 (3 banded MXU matmuls, lane-dense W*C layout) + bias + ReLU
    # x already carries the W halo (zero lane groups) from the wrapper.
    xpad1_ref[1:h + 1, :] = x_ref[0]
    acc1 = jnp.dot(xpad1_ref[0:h, :],     w1_ref[0], preferred_element_type=f32)
    acc1 += jnp.dot(xpad1_ref[1:h + 1, :], w1_ref[1], preferred_element_type=f32)
    acc1 += jnp.dot(xpad1_ref[2:h + 2, :], w1_ref[2], preferred_element_type=f32)
    act1 = jnp.maximum(acc1 + b1_ref[...], 0.0)                 # (H, W*16)

    # ---- stage 1 pool: shifted-view max (VPU) + exact 0/1 selection matmuls (MXU),
    #      written straight into conv2's padded scratch (s1 also emits the W halo).
    mw1 = jnp.maximum(act1[:, :-c1], act1[:, c1:])              # (H,   (W-1)*16)
    mh1 = jnp.maximum(mw1[:-1, :], mw1[1:, :])                  # (H-1, (W-1)*16)
    pooled1 = jnp.dot(r1_ref[...],
                      jnp.dot(mh1, s1_ref[...], preferred_element_type=f32),
                      preferred_element_type=f32)               # (H/2, (W/2+2)*16)
    xpad2_ref[1:h1 + 1, :] = pooled1

    # ---- stage 2: conv2 (banded matmuls) + bias + ReLU
    acc2 = jnp.dot(xpad2_ref[0:h1, :],     w2_ref[0], preferred_element_type=f32)
    acc2 += jnp.dot(xpad2_ref[1:h1 + 1, :], w2_ref[1], preferred_element_type=f32)
    acc2 += jnp.dot(xpad2_ref[2:h1 + 2, :], w2_ref[2], preferred_element_type=f32)
    act2 = jnp.maximum(acc2 + b2_ref[...], 0.0)                 # (H/2, (W/2)*32)

    # ---- stage 2 pool -> flat classifier feature slab (NCHW flatten folded into wf1)
    mw2 = jnp.maximum(act2[:, :-c2], act2[:, c2:])              # (H/2,   (W/2-1)*32)
    mh2 = jnp.maximum(mw2[:-1, :], mw2[1:, :])                  # (H/2-1, (W/2-1)*32)
    cmp2 = jnp.dot(mh2, s2_ref[...], preferred_element_type=f32)  # (H/2-1, (W/4)*32)
    for r in range(h2):                                         # even-row placement
        feat_ref[0:1, r * fw:(r + 1) * fw] = cmp2[2 * r:2 * r + 1, :]

    # ---- classifier: single fc1 dot + ReLU, fc2 (head padded to 128 lanes)
    hid = jnp.maximum(jnp.dot(feat_ref[...], wf1_ref[...],
                              preferred_element_type=f32) + bf1_ref[...], 0.0)
    out = jnp.dot(hid, wf2_ref[...], preferred_element_type=f32) + bf2_ref[...]
    o_ref[...] = out.reshape(o_ref.shape).astype(o_ref.dtype)   # (1,1,128) lane-dense


# ---------------------------------------------------------------------------
# Wrapper: single pallas_call, grid over the batch
# ---------------------------------------------------------------------------
@functools.partial(jax.jit, static_argnames=("num_classes",))
def cnn_model(x_nchw, kparams, *, num_classes=2):
    n, cin, h, w = x_nchw.shape
    assert cin == 3 and h % 4 == 0 and w % 4 == 0, "expects NCHW, 3 channels, H/W % 4 == 0"
    c1 = kparams["b1"].shape[-1] // w
    c2 = kparams["b2"].shape[-1] // (w // 2)
    feat_w = (h // 4) * (w // 4) * c2

    # NCHW -> lane-dense (N, H, (W+2)*4): NHWC, Cin padded 3->4, W halo pre-padded.
    x = jnp.transpose(x_nchw, (0, 2, 3, 1))
    x = jnp.pad(x, ((0, 0), (0, 0), (1, 1), (0, 1)))
    x = x.reshape(n, h, (w + 2) * 4)

    const3 = lambda b: (0, 0, 0)
    const2 = lambda b: (0, 0)
    out = pl.pallas_call(
        cnn_forward_kernel,
        out_shape=jax.ShapeDtypeStruct((n, 1, 128), jnp.float32),
        grid=(n,),
        in_specs=[
            pl.BlockSpec((1, h, (w + 2) * 4), lambda b: (b, 0, 0)),   # x (per sample)
            pl.BlockSpec(kparams["w1"].shape, const3),                # banded conv1 W
            pl.BlockSpec(kparams["b1"].shape, const2),
            pl.BlockSpec(kparams["w2"].shape, const3),                # banded conv2 W
            pl.BlockSpec(kparams["b2"].shape, const2),
            pl.BlockSpec(kparams["s1"].shape, const2),                # pool1 W-select (+halo)
            pl.BlockSpec(kparams["r1"].shape, const2),                # pool1 H-select
            pl.BlockSpec(kparams["s2"].shape, const2),                # pool2 W-select
            pl.BlockSpec(kparams["wf1"].shape, const2),
            pl.BlockSpec(kparams["bf1"].shape, const2),
            pl.BlockSpec(kparams["wf2"].shape, const2),
            pl.BlockSpec(kparams["bf2"].shape, const2),
        ],
        out_specs=pl.BlockSpec((1, 1, 128), lambda b: (b, 0, 0)),
        scratch_shapes=[
            pltpu.VMEM((h + 2, (w + 2) * 4), jnp.float32),            # padded conv1 input
            pltpu.VMEM((h // 2 + 2, (w // 2 + 2) * c1), jnp.float32),  # padded conv2 input
            pltpu.VMEM((1, feat_w), jnp.float32),                     # flat classifier feats
        ],
        compiler_params=pltpu.CompilerParams(
            dimension_semantics=("parallel",),
            vmem_limit_bytes=32 * 1024 * 1024),
    )(x, kparams["w1"], kparams["b1"], kparams["w2"], kparams["b2"],
      kparams["s1"], kparams["r1"], kparams["s2"],
      kparams["wf1"], kparams["bf1"], kparams["wf2"], kparams["bf2"])
    return out.reshape(n, 128)[:, :num_classes]


# ---------------------------------------------------------------------------
# One-time (host-side) conversion from PyTorch-layout params to kernel layout
# ---------------------------------------------------------------------------
def convert_params(pt, h, w):
    c1 = pt["w1"].shape[0]                       # 16
    c2 = pt["w2"].shape[0]                       # 32
    h2, w2 = h // 4, w // 4
    hidden, feat = pt["wf1"].shape
    assert feat == c2 * h2 * w2, "classifier expects 32*(H/4)*(W/4) input features"
    nc = pt["wf2"].shape[0]

    def banded_conv(wt, cin_pad, w_out):
        # (Cout, Cin, 3, 3) -> (3, (w_out+2)*cin_pad, w_out*Cout) banded matrices,
        # one per dy; row (wpos+dx)*cin_pad+ci, col wpos*Cout+co holds wt[co,ci,dy,dx].
        wt = np.asarray(wt, np.float32)
        cout, cin = wt.shape[0], wt.shape[1]
        b = np.zeros((3, (w_out + 2) * cin_pad, w_out * cout), np.float32)
        for dy in range(3):
            for dx in range(3):
                blk = wt[:, :, dy, dx].T                      # (Cin, Cout)
                for wp in range(w_out):
                    r0 = (wp + dx) * cin_pad
                    c0 = wp * cout
                    b[dy, r0:r0 + cin, c0:c0 + cout] = blk
        return jnp.asarray(b)

    def pool_w_select(w_full, c, halo):
        # ((w_full-1)*c, (w_full//2 + 2*halo)*c): picks even W groups of the
        # shifted-view max, optionally leaving zero halo columns at both ends.
        s = np.zeros(((w_full - 1) * c, (w_full // 2 + 2 * halo) * c), np.float32)
        for j in range(w_full // 2):
            for ch in range(c):
                s[2 * j * c + ch, (j + halo) * c + ch] = 1.0
        return jnp.asarray(s)

    def pool_h_select(h_full):
        r = np.zeros((h_full // 2, h_full - 1), np.float32)   # picks even rows
        for i in range(h_full // 2):
            r[i, 2 * i] = 1.0
        return jnp.asarray(r)

    # wf1 rows permuted from NCHW flatten order (c,h,w) to the kernel's (h,w,c) order.
    wf1 = np.asarray(pt["wf1"], np.float32).reshape(hidden, c2, h2, w2)
    wf1 = wf1.transpose(2, 3, 1, 0).reshape(h2 * w2 * c2, hidden)      # (2048, 128)

    wf2 = np.asarray(pt["wf2"], np.float32).T                          # (128, nc)
    wf2 = np.pad(wf2, ((0, 0), (0, 128 - nc)))                         # lane-dense head
    bf2 = np.pad(np.asarray(pt["bf2"], np.float32), ((0, 128 - nc),))

    return {
        "w1": banded_conv(pt["w1"], 4, w),
        "b1": jnp.asarray(np.tile(np.asarray(pt["b1"], np.float32), w)).reshape(1, w * c1),
        "w2": banded_conv(pt["w2"], c1, w // 2),
        "b2": jnp.asarray(np.tile(np.asarray(pt["b2"], np.float32), w // 2)
                          ).reshape(1, (w // 2) * c2),
        "s1": pool_w_select(w, c1, halo=1),
        "r1": pool_h_select(h),
        "s2": pool_w_select(w // 2, c2, halo=0),
        "wf1": jnp.asarray(wf1),
        "bf1": jnp.asarray(np.asarray(pt["bf1"], np.float32)).reshape(1, hidden),
        "wf2": jnp.asarray(wf2),
        "bf2": jnp.asarray(bf2).reshape(1, 128),
    }


# ---------------------------------------------------------------------------
# Pure-JAX reference (PyTorch semantics, PyTorch-layout params)
# ---------------------------------------------------------------------------
@jax.jit
def reference_forward(x_nchw, pt):
    hp = jax.lax.Precision.HIGHEST

    def conv(x, wt, b):
        y = jax.lax.conv_general_dilated(
            x, wt, window_strides=(1, 1), padding=((1, 1), (1, 1)),
            dimension_numbers=("NCHW", "OIHW", "NCHW"), precision=hp)
        return jnp.maximum(y + b[None, :, None, None], 0.0)

    def pool(x):
        return jax.lax.reduce_window(x, -jnp.inf, jax.lax.max,
                                     (1, 1, 2, 2), (1, 1, 2, 2), "VALID")

    y = pool(conv(x_nchw, pt["w1"], pt["b1"]))
    y = pool(conv(y, pt["w2"], pt["b2"]))
    y = y.reshape(y.shape[0], -1)                             # NCHW flatten (torch .view)
    y = jnp.maximum(jnp.dot(y, pt["wf1"].T, precision=hp) + pt["bf1"], 0.0)
    return jnp.dot(y, pt["wf2"].T, precision=hp) + pt["bf2"]


if __name__ == "__main__":
    key = jax.random.PRNGKey(0)
    N, Cin, H, W = 2, 3, 32, 32
    num_classes = 2
    feat = 32 * (H // 4) * (W // 4)      # 2048; analogue of 32*56*56 at 32x32 input

    ks = jax.random.split(key, 9)
    pt_params = {
        "w1":  jax.random.normal(ks[0], (16, 3, 3, 3), jnp.float32) * 0.1,
        "b1":  jax.random.normal(ks[1], (16,), jnp.float32) * 0.1,
        "w2":  jax.random.normal(ks[2], (32, 16, 3, 3), jnp.float32) * 0.1,
        "b2":  jax.random.normal(ks[3], (32,), jnp.float32) * 0.1,
        "wf1": jax.random.normal(ks[4], (128, feat), jnp.float32) * 0.02,
        "bf1": jax.random.normal(ks[5], (128,), jnp.float32) * 0.02,
        "wf2": jax.random.normal(ks[6], (num_classes, 128), jnp.float32) * 0.02,
        "bf2": jax.random.normal(ks[7], (num_classes,), jnp.float32) * 0.02,
    }
    x = jax.random.normal(ks[8], (N, Cin, H, W), jnp.float32)

    kparams = convert_params(pt_params, H, W)
    out = jax.block_until_ready(cnn_model(x, kparams, num_classes=num_classes))
    assert out.shape == (N, num_classes), out.shape

    ref = jax.block_until_ready(reference_forward(x, pt_params))
    err = float(jnp.max(jnp.abs(out - ref)))
    scale = float(jnp.max(jnp.abs(ref))) + 1e-6
    assert err <= 1e-2 * max(1.0, scale), f"mismatch vs reference: {err}"

    print("KERNEL_OK")
</pallas_src>

<mosaic_0001>
module attributes {stable_mosaic.version = 11 : i64} {
  func.func @cnn_forward_kernel(%arg0: i32, %arg1: memref<1x32x136xf32, #tpu.memory_space<vmem>>, %arg2: memref<3x136x512xf32, #tpu.memory_space<vmem>>, %arg3: memref<1x512xf32, #tpu.memory_space<vmem>>, %arg4: memref<3x288x512xf32, #tpu.memory_space<vmem>>, %arg5: memref<1x512xf32, #tpu.memory_space<vmem>>, %arg6: memref<496x288xf32, #tpu.memory_space<vmem>>, %arg7: memref<16x31xf32, #tpu.memory_space<vmem>>, %arg8: memref<480x256xf32, #tpu.memory_space<vmem>>, %arg9: memref<2048x128xf32, #tpu.memory_space<vmem>>, %arg10: memref<1x128xf32, #tpu.memory_space<vmem>>, %arg11: memref<128x128xf32, #tpu.memory_space<vmem>>, %arg12: memref<1x128xf32, #tpu.memory_space<vmem>>, %arg13: memref<1x1x128xf32, #tpu.memory_space<vmem>>, %arg14: memref<34x136xf32, #tpu.memory_space<vmem>>, %arg15: memref<18x288xf32, #tpu.memory_space<vmem>>, %arg16: memref<1x2048xf32, #tpu.memory_space<vmem>>) attributes {dimension_semantics = [#tpu.dimension_semantics<parallel>], iteration_bounds = array<i64: 2>, scalar_prefetch = 0 : i64, scratch_operands = 3 : i64, tpu.core_type = #tpu.core_type<tc>, window_params = [{transform_indices = @transform_0, window_bounds = array<i64: 1, 32, 136>}, {pipeline_mode = #tpu.pipeline_mode<synchronous>, transform_indices = @transform_1, window_bounds = array<i64: 3, 136, 512>}, {pipeline_mode = #tpu.pipeline_mode<synchronous>, transform_indices = @transform_2, window_bounds = array<i64: 1, 512>}, {pipeline_mode = #tpu.pipeline_mode<synchronous>, transform_indices = @transform_3, window_bounds = array<i64: 3, 288, 512>}, {pipeline_mode = #tpu.pipeline_mode<synchronous>, transform_indices = @transform_4, window_bounds = array<i64: 1, 512>}, {pipeline_mode = #tpu.pipeline_mode<synchronous>, transform_indices = @transform_5, window_bounds = array<i64: 496, 288>}, {pipeline_mode = #tpu.pipeline_mode<synchronous>, transform_indices = @transform_6, window_bounds = array<i64: 16, 31>}, {pipeline_mode = #tpu.pipeline_mode<synchronous>, transform_indices = @transform_7, window_bounds = array<i64: 480, 256>}, {pipeline_mode = #tpu.pipeline_mode<synchronous>, transform_indices = @transform_8, window_bounds = array<i64: 2048, 128>}, {pipeline_mode = #tpu.pipeline_mode<synchronous>, transform_indices = @transform_9, window_bounds = array<i64: 1, 128>}, {pipeline_mode = #tpu.pipeline_mode<synchronous>, transform_indices = @transform_10, window_bounds = array<i64: 128, 128>}, {pipeline_mode = #tpu.pipeline_mode<synchronous>, transform_indices = @transform_11, window_bounds = array<i64: 1, 128>}, {transform_indices = @transform_12, window_bounds = array<i64: 1, 1, 128>}]} {
    %cst = arith.constant 0.000000e+00 : f32
    %0 = vector.broadcast %cst : f32 to vector<1x136xf32>
    %c0 = arith.constant 0 : index
    %c0_0 = arith.constant 0 : index
    %1 = vector.load %arg14[%c0, %c0_0] : memref<34x136xf32, #tpu.memory_space<vmem>>, vector<1x136xf32>
    tpu.vector_store %arg14[%c0, %c0_0], %0 {strides = array<i32>} : memref<34x136xf32, #tpu.memory_space<vmem>>, vector<1x136xf32>,
    %c33 = arith.constant 33 : index
    %c0_1 = arith.constant 0 : index
    %2 = vector.load %arg14[%c33, %c0_1] : memref<34x136xf32, #tpu.memory_space<vmem>>, vector<1x136xf32>
    tpu.vector_store %arg14[%c33, %c0_1], %0 {strides = array<i32>} : memref<34x136xf32, #tpu.memory_space<vmem>>, vector<1x136xf32>,
    %cst_2 = arith.constant 0.000000e+00 : f32
    %3 = vector.broadcast %cst_2 : f32 to vector<1x288xf32>
    %c0_3 = arith.constant 0 : index
    %c0_4 = arith.constant 0 : index
    %4 = vector.load %arg15[%c0_3, %c0_4] : memref<18x288xf32, #tpu.memory_space<vmem>>, vector<1x288xf32>
    tpu.vector_store %arg15[%c0_3, %c0_4], %3 {strides = array<i32>} : memref<18x288xf32, #tpu.memory_space<vmem>>, vector<1x288xf32>,
    %c17 = arith.constant 17 : index
    %c0_5 = arith.constant 0 : index
    %5 = vector.load %arg15[%c17, %c0_5] : memref<18x288xf32, #tpu.memory_space<vmem>>, vector<1x288xf32>
    tpu.vector_store %arg15[%c17, %c0_5], %3 {strides = array<i32>} : memref<18x288xf32, #tpu.memory_space<vmem>>, vector<1x288xf32>,
    %c0_6 = arith.constant 0 : index
    %c0_7 = arith.constant 0 : index
    %c0_8 = arith.constant 0 : index
    %6 = vector.load %arg1[%c0_6, %c0_7, %c0_8] : memref<1x32x136xf32, #tpu.memory_space<vmem>>, vector<1x32x136xf32>
    %7 = vector.shape_cast %6 : vector<1x32x136xf32> to vector<32x136xf32>
    %c1 = arith.constant 1 : index
    %c0_9 = arith.constant 0 : index
    %8 = vector.load %arg14[%c1, %c0_9] : memref<34x136xf32, #tpu.memory_space<vmem>>, vector<32x136xf32>
    tpu.vector_store %arg14[%c1, %c0_9], %7 {strides = array<i32>} : memref<34x136xf32, #tpu.memory_space<vmem>>, vector<32x136xf32>,
    %c0_10 = arith.constant 0 : index
    %c0_11 = arith.constant 0 : index
    %9 = vector.load %arg14[%c0_10, %c0_11] : memref<34x136xf32, #tpu.memory_space<vmem>>, vector<32x136xf32>
    %c0_12 = arith.constant 0 : index
    %c0_13 = arith.constant 0 : index
    %c0_14 = arith.constant 0 : index
    %10 = vector.load %arg2[%c0_12, %c0_13, %c0_14] : memref<3x136x512xf32, #tpu.memory_space<vmem>>, vector<1x136x512xf32>
    %11 = vector.shape_cast %10 : vector<1x136x512xf32> to vector<136x512xf32>
    %cst_15 = arith.constant dense<0.000000e+00> : vector<32x512xf32>
    %12 = tpu.matmul %9, %11, %cst_15 {dimension_numbers = #tpu.dot_dimension_numbers<[1], [0], [0], [1], [0, 0, 1, 1], [], []>} : vector<32x136xf32>, vector<136x512xf32>, vector<32x512xf32> -> vector<32x512xf32>
    %c1_16 = arith.constant 1 : index
    %c0_17 = arith.constant 0 : index
    %13 = vector.load %arg14[%c1_16, %c0_17] : memref<34x136xf32, #tpu.memory_space<vmem>>, vector<32x136xf32>
    %c1_18 = arith.constant 1 : index
    %c0_19 = arith.constant 0 : index
    %c0_20 = arith.constant 0 : index
    %14 = vector.load %arg2[%c1_18, %c0_19, %c0_20] : memref<3x136x512xf32, #tpu.memory_space<vmem>>, vector<1x136x512xf32>
    %15 = vector.shape_cast %14 : vector<1x136x512xf32> to vector<136x512xf32>
    %cst_21 = arith.constant dense<0.000000e+00> : vector<32x512xf32>
    %16 = tpu.matmul %13, %15, %cst_21 {dimension_numbers = #tpu.dot_dimension_numbers<[1], [0], [0], [1], [0, 0, 1, 1], [], []>} : vector<32x136xf32>, vector<136x512xf32>, vector<32x512xf32> -> vector<32x512xf32>
    %17 = arith.addf %12, %16 : vector<32x512xf32>
    %c2 = arith.constant 2 : index
    %c0_22 = arith.constant 0 : index
    %18 = vector.load %arg14[%c2, %c0_22] : memref<34x136xf32, #tpu.memory_space<vmem>>, vector<32x136xf32>
    %c2_23 = arith.constant 2 : index
    %c0_24 = arith.constant 0 : index
    %c0_25 = arith.constant 0 : index
    %19 = vector.load %arg2[%c2_23, %c0_24, %c0_25] : memref<3x136x512xf32, #tpu.memory_space<vmem>>, vector<1x136x512xf32>
    %20 = vector.shape_cast %19 : vector<1x136x512xf32> to vector<136x512xf32>
    %cst_26 = arith.constant dense<0.000000e+00> : vector<32x512xf32>
    %21 = tpu.matmul %18, %20, %cst_26 {dimension_numbers = #tpu.dot_dimension_numbers<[1], [0], [0], [1], [0, 0, 1, 1], [], []>} : vector<32x136xf32>, vector<136x512xf32>, vector<32x512xf32> -> vector<32x512xf32>
    %22 = arith.addf %17, %21 : vector<32x512xf32>
    %c0_27 = arith.constant 0 : index
    %c0_28 = arith.constant 0 : index
    %23 = vector.load %arg3[%c0_27, %c0_28] : memref<1x512xf32, #tpu.memory_space<vmem>>, vector<1x512xf32>
    %24 = vector.broadcast %23 : vector<1x512xf32> to vector<32x512xf32>
    %25 = arith.addf %22, %24 : vector<32x512xf32>
    %cst_29 = arith.constant 0.000000e+00 : f32
    %26 = vector.broadcast %cst_29 : f32 to vector<32x512xf32>
    %27 = arith.maximumf %25, %26 : vector<32x512xf32>
    %28 = vector.extract_strided_slice %27 {offsets = [0, 0], sizes = [32, 496], strides = [1, 1]} : vector<32x512xf32> to vector<32x496xf32>
    %29 = vector.extract_strided_slice %27 {offsets = [0, 16], sizes = [32, 496], strides = [1, 1]} : vector<32x512xf32> to vector<32x496xf32>
    %30 = arith.maximumf %28, %29 : vector<32x496xf32>
    %31 = vector.extract_strided_slice %30 {offsets = [0, 0], sizes = [31, 496], strides = [1, 1]} : vector<32x496xf32> to vector<31x496xf32>
    %32 = vector.extract_strided_slice %30 {offsets = [1, 0], sizes = [31, 496], strides = [1, 1]} : vector<32x496xf32> to vector<31x496xf32>
    %33 = arith.maximumf %31, %32 : vector<31x496xf32>
    %c0_30 = arith.constant 0 : index
    %c0_31 = arith.constant 0 : index
    %34 = vector.load %arg7[%c0_30, %c0_31] : memref<16x31xf32, #tpu.memory_space<vmem>>, vector<16x31xf32>
    %c0_32 = arith.constant 0 : index
    %c0_33 = arith.constant 0 : index
    %35 = vector.load %arg6[%c0_32, %c0_33] : memref<496x288xf32, #tpu.memory_space<vmem>>, vector<496x288xf32>
    %cst_34 = arith.constant dense<0.000000e+00> : vector<31x288xf32>
    %36 = tpu.matmul %33, %35, %cst_34 {dimension_numbers = #tpu.dot_dimension_numbers<[1], [0], [0], [1], [0, 0, 1, 1], [], []>} : vector<31x496xf32>, vector<496x288xf32>, vector<31x288xf32> -> vector<31x288xf32>
    %cst_35 = arith.constant dense<0.000000e+00> : vector<16x288xf32>
    %37 = tpu.matmul %34, %36, %cst_35 {dimension_numbers = #tpu.dot_dimension_numbers<[1], [0], [0], [1], [0, 0, 1, 1], [], []>} : vector<16x31xf32>, vector<31x288xf32>, vector<16x288xf32> -> vector<16x288xf32>
    %c1_36 = arith.constant 1 : index
    %c0_37 = arith.constant 0 : index
    %38 = vector.load %arg15[%c1_36, %c0_37] : memref<18x288xf32, #tpu.memory_space<vmem>>, vector<16x288xf32>
    tpu.vector_store %arg15[%c1_36, %c0_37], %37 {strides = array<i32>} : memref<18x288xf32, #tpu.memory_space<vmem>>, vector<16x288xf32>,
    %c0_38 = arith.constant 0 : index
    %c0_39 = arith.constant 0 : index
    %39 = vector.load %arg15[%c0_38, %c0_39] : memref<18x288xf32, #tpu.memory_space<vmem>>, vector<16x288xf32>
    %c0_40 = arith.constant 0 : index
    %c0_41 = arith.constant 0 : index
    %c0_42 = arith.constant 0 : index
    %40 = vector.load %arg4[%c0_40, %c0_41, %c0_42] : memref<3x288x512xf32, #tpu.memory_space<vmem>>, vector<1x288x512xf32>
    %41 = vector.shape_cast %40 : vector<1x288x512xf32> to vector<288x512xf32>
    %cst_43 = arith.constant dense<0.000000e+00> : vector<16x512xf32>
    %42 = tpu.matmul %39, %41, %cst_43 {dimension_numbers = #tpu.dot_dimension_numbers<[1], [0], [0], [1], [0, 0, 1, 1], [], []>} : vector<16x288xf32>, vector<288x512xf32>, vector<16x512xf32> -> vector<16x512xf32>
    %c1_44 = arith.constant 1 : index
    %c0_45 = arith.constant 0 : index
    %43 = vector.load %arg15[%c1_44, %c0_45] : memref<18x288xf32, #tpu.memory_space<vmem>>, vector<16x288xf32>
    %c1_46 = arith.constant 1 : index
    %c0_47 = arith.constant 0 : index
    %c0_48 = arith.constant 0 : index
    %44 = vector.load %arg4[%c1_46, %c0_47, %c0_48] : memref<3x288x512xf32, #tpu.memory_space<vmem>>, vector<1x288x512xf32>
    %45 = vector.shape_cast %44 : vector<1x288x512xf32> to vector<288x512xf32>
    %cst_49 = arith.constant dense<0.000000e+00> : vector<16x512xf32>
    %46 = tpu.matmul %43, %45, %cst_49 {dimension_numbers = #tpu.dot_dimension_numbers<[1], [0], [0], [1], [0, 0, 1, 1], [], []>} : vector<16x288xf32>, vector<288x512xf32>, vector<16x512xf32> -> vector<16x512xf32>
    %47 = arith.addf %42, %46 : vector<16x512xf32>
    %c2_50 = arith.constant 2 : index
    %c0_51 = arith.constant 0 : index
    %48 = vector.load %arg15[%c2_50, %c0_51] : memref<18x288xf32, #tpu.memory_space<vmem>>, vector<16x288xf32>
    %c2_52 = arith.constant 2 : index
    %c0_53 = arith.constant 0 : index
    %c0_54 = arith.constant 0 : index
    %49 = vector.load %arg4[%c2_52, %c0_53, %c0_54] : memref<3x288x512xf32, #tpu.memory_space<vmem>>, vector<1x288x512xf32>
    %50 = vector.shape_cast %49 : vector<1x288x512xf32> to vector<288x512xf32>
    %cst_55 = arith.constant dense<0.000000e+00> : vector<16x512xf32>
    %51 = tpu.matmul %48, %50, %cst_55 {dimension_numbers = #tpu.dot_dimension_numbers<[1], [0], [0], [1], [0, 0, 1, 1], [], []>} : vector<16x288xf32>, vector<288x512xf32>, vector<16x512xf32> -> vector<16x512xf32>
    %52 = arith.addf %47, %51 : vector<16x512xf32>
    %c0_56 = arith.constant 0 : index
    %c0_57 = arith.constant 0 : index
    %53 = vector.load %arg5[%c0_56, %c0_57] : memref<1x512xf32, #tpu.memory_space<vmem>>, vector<1x512xf32>
    %54 = vector.broadcast %53 : vector<1x512xf32> to vector<16x512xf32>
    %55 = arith.addf %52, %54 : vector<16x512xf32>
    %cst_58 = arith.constant 0.000000e+00 : f32
    %56 = vector.broadcast %cst_58 : f32 to vector<16x512xf32>
    %57 = arith.maximumf %55, %56 : vector<16x512xf32>
    %58 = vector.extract_strided_slice %57 {offsets = [0, 0], sizes = [16, 480], strides = [1, 1]} : vector<16x512xf32> to vector<16x480xf32>
    %59 = vector.extract_strided_slice %57 {offsets = [0, 32], sizes = [16, 480], strides = [1, 1]} : vector<16x512xf32> to vector<16x480xf32>
    %60 = arith.maximumf %58, %59 : vector<16x480xf32>
    %61 = vector.extract_strided_slice %60 {offsets = [0, 0], sizes = [15, 480], strides = [1, 1]} : vector<16x480xf32> to vector<15x480xf32>
    %62 = vector.extract_strided_slice %60 {offsets = [1, 0], sizes = [15, 480], strides = [1, 1]} : vector<16x480xf32> to vector<15x480xf32>
    %63 = arith.maximumf %61, %62 : vector<15x480xf32>
    %c0_59 = arith.constant 0 : index
    %c0_60 = arith.constant 0 : index
    %64 = vector.load %arg8[%c0_59, %c0_60] : memref<480x256xf32, #tpu.memory_space<vmem>>, vector<480x256xf32>
    %cst_61 = arith.constant dense<0.000000e+00> : vector<15x256xf32>
    %65 = tpu.matmul %63, %64, %cst_61 {dimension_numbers = #tpu.dot_dimension_numbers<[1], [0], [0], [1], [0, 0, 1, 1], [], []>} : vector<15x480xf32>, vector<480x256xf32>, vector<15x256xf32> -> vector<15x256xf32>
    %66 = vector.extract_strided_slice %65 {offsets = [0, 0], sizes = [1, 256], strides = [1, 1]} : vector<15x256xf32> to vector<1x256xf32>
    %c0_62 = arith.constant 0 : index
    %c0_63 = arith.constant 0 : index
    %67 = vector.load %arg16[%c0_62, %c0_63] : memref<1x2048xf32, #tpu.memory_space<vmem>>, vector<1x256xf32>
    tpu.vector_store %arg16[%c0_62, %c0_63], %66 {strides = array<i32>} : memref<1x2048xf32, #tpu.memory_space<vmem>>, vector<1x256xf32>,
    %68 = vector.extract_strided_slice %65 {offsets = [2, 0], sizes = [1, 256], strides = [1, 1]} : vector<15x256xf32> to vector<1x256xf32>
    %c0_64 = arith.constant 0 : index
    %c256 = arith.constant 256 : index
    %69 = vector.load %arg16[%c0_64, %c256] : memref<1x2048xf32, #tpu.memory_space<vmem>>, vector<1x256xf32>
    tpu.vector_store %arg16[%c0_64, %c256], %68 {strides = array<i32>} : memref<1x2048xf32, #tpu.memory_space<vmem>>, vector<1x256xf32>,
    %70 = vector.extract_strided_slice %65 {offsets = [4, 0], sizes = [1, 256], strides = [1, 1]} : vector<15x256xf32> to vector<1x256xf32>
    %c0_65 = arith.constant 0 : index
    %c512 = arith.constant 512 : index
    %71 = vector.load %arg16[%c0_65, %c512] : memref<1x2048xf32, #tpu.memory_space<vmem>>, vector<1x256xf32>
    tpu.vector_store %arg16[%c0_65, %c512], %70 {strides = array<i32>} : memref<1x2048xf32, #tpu.memory_space<vmem>>, vector<1x256xf32>,
    %72 = vector.extract_strided_slice %65 {offsets = [6, 0], sizes = [1, 256], strides = [1, 1]} : vector<15x256xf32> to vector<1x256xf32>
    %c0_66 = arith.constant 0 : index
    %c768 = arith.constant 768 : index
    %73 = vector.load %arg16[%c0_66, %c768] : memref<1x2048xf32, #tpu.memory_space<vmem>>, vector<1x256xf32>
    tpu.vector_store %arg16[%c0_66, %c768], %72 {strides = array<i32>} : memref<1x2048xf32, #tpu.memory_space<vmem>>, vector<1x256xf32>,
    %74 = vector.extract_strided_slice %65 {offsets = [8, 0], sizes = [1, 256], strides = [1, 1]} : vector<15x256xf32> to vector<1x256xf32>
    %c0_67 = arith.constant 0 : index
    %c1024 = arith.constant 1024 : index
    %75 = vector.load %arg16[%c0_67, %c1024] : memref<1x2048xf32, #tpu.memory_space<vmem>>, vector<1x256xf32>
    tpu.vector_store %arg16[%c0_67, %c1024], %74 {strides = array<i32>} : memref<1x2048xf32, #tpu.memory_space<vmem>>, vector<1x256xf32>,
    %76 = vector.extract_strided_slice %65 {offsets = [10, 0], sizes = [1, 256], strides = [1, 1]} : vector<15x256xf32> to vector<1x256xf32>
    %c0_68 = arith.constant 0 : index
    %c1280 = arith.constant 1280 : index
    %77 = vector.load %arg16[%c0_68, %c1280] : memref<1x2048xf32, #tpu.memory_space<vmem>>, vector<1x256xf32>
    tpu.vector_store %arg16[%c0_68, %c1280], %76 {strides = array<i32>} : memref<1x2048xf32, #tpu.memory_space<vmem>>, vector<1x256xf32>,
    %78 = vector.extract_strided_slice %65 {offsets = [12, 0], sizes = [1, 256], strides = [1, 1]} : vector<15x256xf32> to vector<1x256xf32>
    %c0_69 = arith.constant 0 : index
    %c1536 = arith.constant 1536 : index
    %79 = vector.load %arg16[%c0_69, %c1536] : memref<1x2048xf32, #tpu.memory_space<vmem>>, vector<1x256xf32>
    tpu.vector_store %arg16[%c0_69, %c1536], %78 {strides = array<i32>} : memref<1x2048xf32, #tpu.memory_space<vmem>>, vector<1x256xf32>,
    %80 = vector.extract_strided_slice %65 {offsets = [14, 0], sizes = [1, 256], strides = [1, 1]} : vector<15x256xf32> to vector<1x256xf32>
    %c0_70 = arith.constant 0 : index
    %c1792 = arith.constant 1792 : index
    %81 = vector.load %arg16[%c0_70, %c1792] : memref<1x2048xf32, #tpu.memory_space<vmem>>, vector<1x256xf32>
    tpu.vector_store %arg16[%c0_70, %c1792], %80 {strides = array<i32>} : memref<1x2048xf32, #tpu.memory_space<vmem>>, vector<1x256xf32>,
    %c0_71 = arith.constant 0 : index
    %c0_72 = arith.constant 0 : index
    %82 = vector.load %arg16[%c0_71, %c0_72] : memref<1x2048xf32, #tpu.memory_space<vmem>>, vector<1x2048xf32>
    %c0_73 = arith.constant 0 : index
    %c0_74 = arith.constant 0 : index
    %83 = vector.load %arg9[%c0_73, %c0_74] : memref<2048x128xf32, #tpu.memory_space<vmem>>, vector<2048x128xf32>
    %cst_75 = arith.constant dense<0.000000e+00> : vector<1x128xf32>
    %84 = tpu.matmul %82, %83, %cst_75 {dimension_numbers = #tpu.dot_dimension_numbers<[1], [0], [0], [1], [0, 0, 1, 1], [], []>} : vector<1x2048xf32>, vector<2048x128xf32>, vector<1x128xf32> -> vector<1x128xf32>
    %c0_76 = arith.constant 0 : index
    %c0_77 = arith.constant 0 : index
    %85 = vector.load %arg10[%c0_76, %c0_77] : memref<1x128xf32, #tpu.memory_space<vmem>>, vector<1x128xf32>
    %86 = arith.addf %84, %85 : vector<1x128xf32>
    %cst_78 = arith.constant 0.000000e+00 : f32
    %87 = vector.broadcast %cst_78 : f32 to vector<1x128xf32>
    %88 = arith.maximumf %86, %87 : vector<1x128xf32>
    %c0_79 = arith.constant 0 : index
    %c0_80 = arith.constant 0 : index
    %89 = vector.load %arg11[%c0_79, %c0_80] : memref<128x128xf32, #tpu.memory_space<vmem>>, vector<128x128xf32>
    %cst_81 = arith.constant dense<0.000000e+00> : vector<1x128xf32>
    %90 = tpu.matmul %88, %89, %cst_81 {dimension_numbers = #tpu.dot_dimension_numbers<[1], [0], [0], [1], [0, 0, 1, 1], [], []>} : vector<1x128xf32>, vector<128x128xf32>, vector<1x128xf32> -> vector<1x128xf32>
    %c0_82 = arith.constant 0 : index
    %c0_83 = arith.constant 0 : index
    %91 = vector.load %arg12[%c0_82, %c0_83] : memref<1x128xf32, #tpu.memory_space<vmem>>, vector<1x128xf32>
    %92 = arith.addf %90, %91 : vector<1x128xf32>
    %93 = vector.shape_cast %92 : vector<1x128xf32> to vector<1x1x128xf32>
    %c0_84 = arith.constant 0 : index
    %c0_85 = arith.constant 0 : index
    %c0_86 = arith.constant 0 : index
    %94 = vector.load %arg13[%c0_84, %c0_85, %c0_86] : memref<1x1x128xf32, #tpu.memory_space<vmem>>, vector<1x1x128xf32>
    tpu.vector_store %arg13[%c0_84, %c0_85, %c0_86], %93 {strides = array<i32>} : memref<1x1x128xf32, #tpu.memory_space<vmem>>, vector<1x1x128xf32>,
    return
  }
  func.func @transform_0(%arg0: i32) -> (i32, i32, i32) {
    %c0_i32 = arith.constant 0 : i32
    %c0_i32_0 = arith.constant 0 : i32
    %c0_i32_1 = arith.constant 0 : i32
    return %arg0, %c0_i32, %c0_i32_0 : i32, i32, i32
  }
  func.func @transform_1(%arg0: i32) -> (i32, i32, i32) {
    %c0_i32 = arith.constant 0 : i32
    %c0_i32_0 = arith.constant 0 : i32
    %c0_i32_1 = arith.constant 0 : i32
    %c0_i32_2 = arith.constant 0 : i32
    return %c0_i32, %c0_i32_0, %c0_i32_1 : i32, i32, i32
  }
  func.func @transform_2(%arg0: i32) -> (i32, i32) {
    %c0_i32 = arith.constant 0 : i32
    %c0_i32_0 = arith.constant 0 : i32
    %c0_i32_1 = arith.constant 0 : i32
    return %c0_i32, %c0_i32_0 : i32, i32
  }
  func.func @transform_3(%arg0: i32) -> (i32, i32, i32) {
    %c0_i32 = arith.constant 0 : i32
    %c0_i32_0 = arith.constant 0 : i32
    %c0_i32_1 = arith.constant 0 : i32
    %c0_i32_2 = arith.constant 0 : i32
    return %c0_i32, %c0_i32_0, %c0_i32_1 : i32, i32, i32
  }
  func.func @transform_4(%arg0: i32) -> (i32, i32) {
    %c0_i32 = arith.constant 0 : i32
    %c0_i32_0 = arith.constant 0 : i32
    %c0_i32_1 = arith.constant 0 : i32
    return %c0_i32, %c0_i32_0 : i32, i32
  }
  func.func @transform_5(%arg0: i32) -> (i32, i32) {
    %c0_i32 = arith.constant 0 : i32
    %c0_i32_0 = arith.constant 0 : i32
    %c0_i32_1 = arith.constant 0 : i32
    return %c0_i32, %c0_i32_0 : i32, i32
  }
  func.func @transform_6(%arg0: i32) -> (i32, i32) {
    %c0_i32 = arith.constant 0 : i32
    %c0_i32_0 = arith.constant 0 : i32
    %c0_i32_1 = arith.constant 0 : i32
    return %c0_i32, %c0_i32_0 : i32, i32
  }
  func.func @transform_7(%arg0: i32) -> (i32, i32) {
    %c0_i32 = arith.constant 0 : i32
    %c0_i32_0 = arith.constant 0 : i32
    %c0_i32_1 = arith.constant 0 : i32
    return %c0_i32, %c0_i32_0 : i32, i32
  }
  func.func @transform_8(%arg0: i32) -> (i32, i32) {
    %c0_i32 = arith.constant 0 : i32
    %c0_i32_0 = arith.constant 0 : i32
    %c0_i32_1 = arith.constant 0 : i32
    return %c0_i32, %c0_i32_0 : i32, i32
  }
  func.func @transform_9(%arg0: i32) -> (i32, i32) {
    %c0_i32 = arith.constant 0 : i32
    %c0_i32_0 = arith.constant 0 : i32
    %c0_i32_1 = arith.constant 0 : i32
    return %c0_i32, %c0_i32_0 : i32, i32
  }
  func.func @transform_10(%arg0: i32) -> (i32, i32) {
    %c0_i32 = arith.constant 0 : i32
    %c0_i32_0 = arith.constant 0 : i32
    %c0_i32_1 = arith.constant 0 : i32
    return %c0_i32, %c0_i32_0 : i32, i32
  }
  func.func @transform_11(%arg0: i32) -> (i32, i32) {
    %c0_i32 = arith.constant 0 : i32
    %c0_i32_0 = arith.constant 0 : i32
    %c0_i32_1 = arith.constant 0 : i32
    return %c0_i32, %c0_i32_0 : i32, i32
  }
  func.func @transform_12(%arg0: i32) -> (i32, i32, i32) {
    %c0_i32 = arith.constant 0 : i32
    %c0_i32_0 = arith.constant 0 : i32
    %c0_i32_1 = arith.constant 0 : i32
    return %arg0, %c0_i32, %c0_i32_0 : i32, i32, i32
  }
}

</mosaic_0001>

<bundles_post_ra>
// kernel: cnn_model.1
= control target key start
LH: loop header
LB: loop body
LE: loop exit
PB: predicated region body
PF: predicated region fallthrough
CT: control target
= control target key end

     0   :  { %s9014_s0 = inlined_call_operand.vmem [shape: f32[2,32,136], index: 0, kind: input, shape index: {}]   ;;  %s9015_s1 = inlined_call_operand.hbm [shape: f32[3,136,512], index: 1, kind: input, shape index: {}]   ;;  %s9016_s2 = inlined_call_operand.vmem [shape: f32[1,512], index: 2, kind: input, shape index: {}]   ;;  %s9017_s3 = inlined_call_operand.vmem [shape: f32[3,288,512], index: 3, kind: input, shape index: {}]   ;;  %s9018_s4 = inlined_call_operand.vmem [shape: f32[1,512], index: 4, kind: input, shape index: {}]   ;;  %s9019_s5 = inlined_call_operand.vmem [shape: f32[496,288], index: 5, kind: input, shape index: {}]   ;;  %s9020_s6 = inlined_call_operand.vmem [shape: f32[16,31], index: 6, kind: input, shape index: {}]   ;;  %s9021_s7 = inlined_call_operand.hbm [shape: f32[480,256], index: 7, kind: input, shape index: {}]   ;;  %s9022_s8 = inlined_call_operand.hbm [shape: f32[2048,128], index: 8, kind: input, shape index: {}]   ;;  %s9023_s9 = inlined_call_operand.vmem [shape: f32[1,128], index: 9, kind: input, shape index: {}]   ;;  %s9024_s10 = inlined_call_operand.vmem [shape: f32[128,128], index: 10, kind: input, shape index: {}]   ;;  %s9025_s11 = inlined_call_operand.vmem [shape: f32[1,128], index: 11, kind: input, shape index: {}]   ;;  %s9026_s12 = inlined_call_operand.hbm [shape: f32[2,1,128], index: 12, kind: output, shape index: {}]  }
   0x1   :  { %9041 = sst [smem:[#allocation39_spill]] %s9015_s1 }
   0x2   :  { %9042 = sst [smem:[#allocation40_spill]] %s9021_s7 }
   0x3   :  { %9043 = sst [smem:[#allocation41_spill]] %s9025_s11 }
   0x4   :  { %17 = vsyncpa [#allocation6], 0 }
   0x5   :  { %18 = vsyncpa [#allocation9], 0 }
   0x6   :  { %19 = vsyncpa [#allocation7], 0 }
   0x7   :  { %21 = vsyncpa [#allocation7 + $0x1], 0  ;;  %s5765_s21 = smov 0   ;;  %s5767_s22 = smov 0  }
   0x8   :  { %s5769_s23 = smov 0   ;;  %s5771_s24 = smov 0  }
   0x9 LB: > { %9044 = sst [smem:[#allocation15_spill]] %s5674_s21  ;;  %s5786_s25 = sadd.s32 4294967295, %s5686_s24   ;;  %s5686_s24 = sphi %s5771_s24, %s9102_s24   ;;  %s5682_s23 = sphi %s5769_s23, %s9104_s23   ;;  %s5678_s22 = sphi %s5767_s22, %s9106_s22   ;;  %s5674_s21 = sphi %s5765_s21, %s9105_s21  }
   0xa   : > { %9045 = sst [smem:[#allocation16_spill]] %s5682_s23  ;;  %s5004_s26 = sadd.s32 4294967294, %s5686_s24  }
   0xb   : > { %9046 = sst [smem:[#allocation17_spill]] %s5686_s24  ;;  %s5790_s27 = sadd.s32 1, %s5686_s24  }
   0xc   : > { %9047 = sst [smem:[#allocation18_spill]] %s5790_s27  ;;  %s291_s28 = sadd.s32 1, %s5682_s23 }
   0xd   : > { %s288_s29 = ssub.s32 %s5686_s24, %s5790_s27  ;;  %p301_p0 = scmp.ne.s32.totalorder %s5682_s23, %s5678_s22 }
   0xe   : > { %p289_p1 = scmp.eq.s32.totalorder %s288_s29, 0  ;;  %p302_p2 = scmp.eq.s32.totalorder %s5786_s25, 1 }
   0xf   : > { %p307_p3 = scmp.ne.s32.totalorder %s5678_s22, %s5674_s21  ;;  %p308_p4 = scmp.eq.s32.totalorder %s5004_s26, 1 }
  0x10   : > { %s5801_s30 = scalar_select %p289_p1, %s5682_s23, %s291_s28  }
  0x11   : > { %p5803_p5 = por %p302_p2, %p301_p0  ;;  %p5807_p6 = por %p308_p4, %p307_p3 }
  0x12   : > { %9048 = sst [smem:[#allocation19_spill]] %s5801_s30  ;;  %p5005_p7 = scmp.ge.s32.totalorder %s5686_s24, 1 }
  0x13   : > { %s9050_s14 = scalar_select %p5807_p6, 1, 0 }
  0x14   : > { %p315_p8 = scmp.lt.s32.totalorder %s5686_s24, 3  ;;  %p5432_p9 = scmp.eq.s32.totalorder %s5786_s25, 0 }
  0x15   : > { %9051 = sst [smem:[#allocation20_spill]] %s9050_s14  ;;  %s5688_s19 = smov [#allocation8]  }
  0x16   : > { %p5814_p10 = pnand %p5005_p7, %p315_p8  ;;  %s9053_s7 = sld [smem:[#allocation40_spill]] }
  0x17   : > { %s357_s20 = sshll.u32 %s5688_s19, 4  ;;  %s9055_s1 = sld [smem:[#allocation39_spill]]  ;;  %s358_s20 = int_to_ptr.vmem [resolvable:$true] %s357_s20 }
  0x18   : > { %p5418_p11 = pneg %p5814_p10  ;;  %s5689_s16 = smov 256  }
  0x19   : > { %s5690_s17 = smov 16   ;;  %s5692_s23 = smov 512  }
  0x1a   : > { %p5825_p12 = pnand %p5432_p9, %p5418_p11  ;;  %s5693_s27 = smov 32  }
  0x1b   : > { %s369_s28 = sshll.u32 %s9022_s8, 4  ;;  %s5694_s29 = smov [#allocation10]   ;;  %s370_s28 = int_to_ptr.hbm [resolvable:$true] %s369_s28 }
  0x1c   : > { %s355_s18 = sshll.u32 %s9053_s7, 4  ;;  %s5691_s7 = smov [#allocation5]   ;;  %s356_s18 = int_to_ptr.hbm [resolvable:$true] %s355_s18 }
  0x1d   : > { %s326_s30 = sshll.u32 %s9055_s1, 4  ;;  %s328_s19 = sshll.u32 %s5691_s7, 4  ;;  %s327_s30 = int_to_ptr.hbm [resolvable:$true] %s326_s30  ;;  %s329_s19 = int_to_ptr.vmem [resolvable:$true] %s328_s19 }
  0x1e   : > { %5424 = dma.hbm_to_vmem [thread:$0]  (!%p5825_p12), %s356_s18, 15360, %s358_s20, [#allocation9], %s5689_s16, %s5689_s16, %s5690_s17  }
  0x1f   : > { %5421 = dma.hbm_to_vmem [thread:$0]  (!%p5825_p12), %s327_s30, 26112, %s329_s19, [#allocation6], %s5692_s23, %s5692_s23, %s5693_s27  }
  0x20   : > { %s371_s1 = sshll.u32 %s5694_s29, 4  ;;  %s5695_s24 = smov 128   ;;  %s372_s1 = int_to_ptr.vmem [resolvable:$true] %s371_s1 }
  0x21   : > { %s5696_s11 = smov 8   ;;  %404 = sbr.rel (%p5814_p10) target bundleno = 1883 (0x75b), region = 68 }
  0x22   : > { %5427 = dma.hbm_to_vmem [thread:$0]  (!%p5825_p12), %s370_s28, 32768, %s372_s1, [#allocation9], %s5695_s24, %s5695_s24, %s5696_s11  }
  0x26   : > { %5661 = dma.done.wait (%p5432_p9), [#allocation6], 26112  }
  0x27   : > { %5663 = vsyncadd (%p5432_p9), [#allocation6], 4294941184 }
  0x28   : > { %5665 = dma.done.wait (%p5432_p9), [#allocation9], 48128  }
  0x29   : > { %5667 = vsyncadd (%p5432_p9), [#allocation9], 4294919168  ;;  %p456_p13 = scmp.lt.s32.totalorder %s5786_s25, 1  ;;  %v672_v0 = vld [vmem:[#allocation5 + $0x400] sm:$0xff]  ;;  %v673_v1 = vld [vmem:[#allocation5 + $0x408] sm:$0xff]  ;;  %vm519_vm0 = vcmask 64513   ;;  %s4914_s18 = scalar_lea.hbm %s9026_s12, %s5786_s25 }
  0x2a   : > { %v668_v2 = vld [vmem:[#allocation5 + $0x3e0] sm:$0xff]  ;;  %721 = vmatpush.msra.mxu0 %v672_v0  ;;  %779 = vmatpush.msra.mxu2 %v673_v1  ;;  %v669_v3 = vld [vmem:[#allocation5 + $0x3e8] sm:$0xff]  ;;  %vm493_vm1 = vcmask 1040384   ;;  %v674_v15 = vld [vmem:[#allocation5 + $0x410] sm:$0xff]  ;;  %vm522_vm2 = vcmask 64512   ;;  %vm529_vm3 = vcmask 57344  }
  0x2b   : > { %s457_s7 = scalar_select %p456_p13, %s5786_s25, 1  ;;  %v664_v4 = vld [vmem:[#allocation5 + $0x3c0] sm:$0xff]  ;;  %v665_v5 = vld [vmem:[#allocation5 + $0x3c8] sm:$0xff]  ;;  %v670_v17 = vld [vmem:[#allocation5 + $0x3f0] sm:$0xff]  ;;  %vm690_vm4 = vcmask 1046528   ;;  %vm1271_vm6 = vcmask 1045504  }
  0x2c   : > { %722 = vmatpush.msra.mxu0 %v668_v2  ;;  %780 = vmatpush.msra.mxu2 %v669_v3  ;;  %v660_v6 = vld [vmem:[#allocation5 + $0x3a0] sm:$0xff]  ;;  %v661_v7 = vld [vmem:[#allocation5 + $0x3a8] sm:$0xff]  ;;  %v666_v21 = vld [vmem:[#allocation5 + $0x3d0] sm:$0xff]  ;;  %s5698_s30 = smov 112   ;;  %vm1640_vm7 = vcmask 916480   ;;  %vm2309_vm8 = vcmask 252928  }
  0x2d   : > { %s5403_s1 = sshll.u32 %s457_s7, 6  ;;  %v676_v8 = vld [vmem:[#allocation5 + $0x420] sm:$0xff]  ;;  %v677_v10 = vld [vmem:[#allocation5 + $0x428] sm:$0xff]  ;;  %v662_v25 = vld [vmem:[#allocation5 + $0x3b0] sm:$0xff]  ;;  %vm2420_vm10 = vcmask 261121   ;;  %vm2428_vm11 = vcmask 253952  }
  0x2e   : > { %s5856_s23 = scalar_lea.vmem %s9014_s0, %s5403_s1  ;;  %723 = vmatpush.msra.mxu0 %v664_v4  ;;  %781 = vmatpush.msra.mxu2 %v665_v5  ;;  %v656_v9 = vld [vmem:[#allocation5 + $0x380] sm:$0xff]  ;;  %v657_v12 = vld [vmem:[#allocation5 + $0x388] sm:$0xff]  ;;  %v658_v30 = vld [vmem:[#allocation5 + $0x390] sm:$0xff]  ;;  %vm2424_vm12 = vcmask 261120   ;;  %s5699_s14 = smov 96   ;;  %vm3834_vm13 = vcmask 785408  }
  0x2f   : > { %v478_v11 = vld [vmem:[%s5856_s23 + $0x8] sm:$0xff]  ;;  %765 = vmatpush.msra.mxu1 %v676_v8  ;;  %823 = vmatpush.msra.mxu3 %v677_v10  ;;  %v480_v13 = vld [vmem:[%s5856_s23 + $0x18] sm:$0xff]  ;;  %v652_v18 = vld [vmem:[#allocation5 + $0x360] sm:$0xff]  ;;  %s9098_s16 = sld [smem:[#allocation41_spill]]  ;;  %s4918_s28 = sshll.u32 %s4914_s18, 4  ;;  %s4919_s28 = int_to_ptr.hbm [resolvable:$true] %s4918_s28 }
  0x30   : > { %v495_v14 = vrot.slane %v478_v11, 7  ;;  %724 = vmatpush.msra.mxu0 %v660_v6  ;;  %782 = vmatpush.msra.mxu2 %v661_v7  ;;  %v498_v16 = vrot.slane %v480_v13, 7  ;;  %v653_v19 = vld [vmem:[#allocation5 + $0x368] sm:$0xff]  ;;  %v648_v22 = vld [vmem:[#allocation5 + $0x340] sm:$0xff]  ;;  %v482_v24 = vld [vmem:[%s5856_s23 + $0x28] sm:$0xff]  ;;  %s5630_s7 = sshra.s32 %s4919_s28, 4  ;;  %s5631_s7 = int_to_ptr.hbm [resolvable:$true] %s5630_s7 }
  0x31   : > { %837 = vmatpush.msrb.mxu1 %v674_v15  ;;  %v649_v23 = vld [vmem:[#allocation5 + $0x348] sm:$0xff]  ;;  %v502_v26 = vrot.slane %v482_v24, 7  ;;  %v644_v27 = vld [vmem:[#allocation5 + $0x320] sm:$0xff]  ;;  %v654_v35 = vld [vmem:[#allocation5 + $0x370] sm:$0xff]  ;;  %s5632_s1 = scalar_lea.hbm %s5631_s7, 1  ;;  %s5636_s21 = scalar_lea.hbm %s9026_s12, 2 }
  0x32   : > { %520 = vst.msk [vmem:[#allocation2 + $0x8] sm:$0xfe] %vm519_vm0, %v495_v14  ;;  %725 = vmatpush.msra.mxu0 %v656_v9  ;;  %783 = vmatpush.msra.mxu2 %v657_v12  ;;  %v499_v20 = vsel %vm493_vm1, %v495_v14, %v498_v16  ;;  %v645_v28 = vld [vmem:[#allocation5 + $0x328] sm:$0xff]  ;;  %v640_v31 = vld [vmem:[#allocation5 + $0x300] sm:$0xff]  ;;  %v477_v37 = vld [vmem:[%s5856_s23] sm:$0xff]  ;;  %p5633_p0 = scmp.ne.s32.totalorder %s5631_s7, %s5632_s1  ;;  %p5637_p3 = scmp.lt.s32.totalorder %s5631_s7, %s9026_s12 }
  0x33   : > { %523 = vst.msk [vmem:[#allocation2 + $0x18] sm:$0xff] %vm522_vm2, %v499_v20  ;;  %838 = vmatpush.msrb.mxu1 %v670_v17  ;;  %v503_v29 = vsel %vm493_vm1, %v498_v16, %v502_v26  ;;  %v641_v32 = vld [vmem:[#allocation5 + $0x308] sm:$0xff]  ;;  %v636_v39 = vld [vmem:[#allocation5 + $0x2e0] sm:$0xff]  ;;  %v494_v42 = vrot.slane %v477_v37, 7  ;;  %v650_v44 = vld [vmem:[#allocation5 + $0x350] sm:$0xff]  ;;  %p5638_p4 = scmp.lt.s32.totalorder %s5636_s21, %s5632_s1 }
  0x34   : > { %726 = vmatpush.msra.mxu0 %v652_v18  ;;  %784 = vmatpush.msra.mxu2 %v653_v19  ;;  %525 = vst.msk [vmem:[#allocation2 + $0x28] sm:$0xff] %vm522_vm2, %v503_v29  ;;  %v484_v33 = vld [vmem:[%s5856_s23 + $0x38] sm:$0xff]  ;;  %v479_v41 = vld [vmem:[%s5856_s23 + $0x10] sm:$0xff]  ;;  %v481_v51 = vld [vmem:[%s5856_s23 + $0x20] sm:$0xff]  ;;  %p5634_p1 = pnand %p5633_p0, %p5803_p5 }
  0x35   : > { %839 = vmatpush.msrb.mxu1 %v666_v21  ;;  %v506_v36 = vrot.slane %v484_v33, 7  ;;  %v637_v40 = vld [vmem:[#allocation5 + $0x2e8] sm:$0xff]  ;;  %v496_v46 = vrot.slane %v479_v41, 7  ;;  %v632_v48 = vld [vmem:[#allocation5 + $0x2c0] sm:$0xff]  ;;  %518 = vst [vmem:[#allocation2] sm:$0xfe] %v494_v42  ;;  %p5639_p7 = por %p5638_p4, %p5637_p3 }
  0x36   : > { %727 = vmatpush.msra.mxu0 %v648_v22  ;;  %785 = vmatpush.msra.mxu2 %v649_v23  ;;  %v633_v49 = vld [vmem:[#allocation5 + $0x2c8] sm:$0xff]  ;;  %v646_v53 = vld [vmem:[#allocation5 + $0x330] sm:$0xff]  ;;  %v500_v54 = vrot.slane %v481_v51, 7  ;;  %v628_v55 = vld [vmem:[#allocation5 + $0x2a0] sm:$0xff]  ;;  %p5635_p2 = pneg %p5634_p1 }
  0x37   : > { %840 = vmatpush.msrb.mxu1 %v662_v25  ;;  %v507_v45 = vsel %vm493_vm1, %v502_v26, %v506_v36  ;;  %530 = vst.msk [vmem:[#allocation2 + $0x48] sm:$0x1] %vm529_vm3, %v506_v36  ;;  %v5875_v50 = vsel %vm493_vm1, %v494_v42, %v496_v46  ;;  %v629_v57 = vld [vmem:[#allocation5 + $0x2a8] sm:$0xff]  ;;  %v642_v59 = vld [vmem:[#allocation5 + $0x310] sm:$0xff]  ;;  %v624_v62 = vld [vmem:[#allocation5 + $0x280] sm:$0xff] }
  0x38   : > { %728 = vmatpush.msra.mxu0 %v644_v27  ;;  %786 = vmatpush.msra.mxu2 %v645_v28  ;;  %527 = vst.msk [vmem:[#allocation2 + $0x38] sm:$0xff] %vm522_vm2, %v507_v45  ;;  %v5889_v60 = vsel %vm493_vm1, %v496_v46, %v500_v54  ;;  %v678_v61 = vld [vmem:[#allocation5 + $0x430] sm:$0xff]  ;;  %v625_v63 = vld [vmem:[#allocation5 + $0x288] sm:$0xff]  ;;  %v483_v0 = vld [vmem:[%s5856_s23 + $0x30] sm:$0xff]  ;;  %v692_v7 = vrot.slane %v5875_v50, 1  ;;  %p5640_p8 = pnand %p5639_p7, %p5635_p2 }
  0x39   : > { %v608_v34 = vld [vmem:[#allocation2 + $0x8] sm:$0xfe]  ;;  %841 = vmatpush.msrb.mxu1 %v658_v30  ;;  %881 = vmatpush.msrb.mxu3 %v678_v61  ;;  %v638_v1 = vld [vmem:[#allocation5 + $0x2f0] sm:$0xff]  ;;  %v504_v2 = vrot.slane %v483_v0, 7  ;;  %v621_v4 = vld [vmem:[#allocation5 + $0x268] sm:$0xff]  ;;  %v697_v23 = vrot.slane %v5889_v60, 1 }
  0x3a   : > { %v694_v38 = vrot.slane %v608_v34, 1  ;;  %v5868_v43 = vld [vmem:[#allocation2 + $0x18] sm:$0xff]  ;;  %729 = vmatpush.msra.mxu0 %v640_v31  ;;  %787 = vmatpush.msra.mxu2 %v641_v32  ;;  %v620_v3 = vld [vmem:[#allocation5 + $0x260] sm:$0xff]  ;;  %v617_v10 = vld [vmem:[#allocation5 + $0x248] sm:$0xff] }
  0x3b   : > { %v695_v47 = vrot.slane %v5868_v43, 1  ;;  %842 = vmatpush.msrb.mxu1 %v654_v35  ;;  %v5885_v56 = vld [vmem:[#allocation2 + $0x28] sm:$0xff]  ;;  %v5897_v8 = vsel %vm493_vm1, %v500_v54, %v504_v2  ;;  %528 = vst [vmem:[#allocation2 + $0x40] sm:$0x1] %v504_v2  ;;  %v634_v13 = vld [vmem:[#allocation5 + $0x2d0] sm:$0xff]  ;;  %v613_v15 = vld [vmem:[#allocation5 + $0x228] sm:$0xff]  ;;  %v5920_v31 = vsel %vm690_vm4, %v692_v7, %v697_v23 }
  0x3c   : > { %730 = vmatpush.msra.mxu0 %v636_v39  ;;  %788 = vmatpush.msra.mxu2 %v637_v40  ;;  %v699_v58 = vrot.slane %v5885_v56, 1  ;;  %v607_v6 = vld [vmem:[#allocation2] sm:$0xfe]  ;;  %v616_v9 = vld [vmem:[#allocation5 + $0x240] sm:$0xff]  ;;  %v630_v19 = vld [vmem:[#allocation5 + $0x2b0] sm:$0xff]  ;;  %v701_v37 = vrot.slane %v5897_v8, 1 }
  0x3d   : > { %v5879_v52 = vsel %vm690_vm4, %v694_v38, %v695_v47  ;;  %843 = vmatpush.msrb.mxu1 %v650_v44  ;;  %v691_v12 = vrot.slane %v607_v6, 1  ;;  %v612_v14 = vld [vmem:[#allocation5 + $0x220] sm:$0xff]  ;;  %v675_v18 = vld [vmem:[#allocation5 + $0x418] sm:$0xff]  ;;  %v626_v21 = vld [vmem:[#allocation5 + $0x290] sm:$0xff]  ;;  %v9035_v38 = vlaneseq  ;;  %v9033_v44 = vmov 0.0  }
  0x3e   : > { %5016 = vmatmul.msk.f32.vlgmr.msra.gmra.mxu1 %vm522_vm2, %v5879_v52  ;;  %5020 = vmatmul.msk.f32.vlgmr.msra.gmra.mxu3 %vm522_vm2, %v5879_v52  ;;  %v5893_v5 = vsel %vm690_vm4, %v695_v47, %v699_v58  ;;  %v671_v20 = vld [vmem:[#allocation5 + $0x3f8] sm:$0xff]  ;;  %v610_v25 = vld [vmem:[#allocation2 + $0x48] sm:$0x1]  ;;  %v622_v26 = vld [vmem:[#allocation5 + $0x270] sm:$0xff]  ;;  %v5935_v45 = vsel %vm690_vm4, %v697_v23, %v701_v37 }
  0x3f   : > { %731 = vmatpush.msra.mxu0 %v632_v48  ;;  %789 = vmatpush.msra.mxu2 %v633_v49  ;;  %v5899_v11 = vld [vmem:[#allocation2 + $0x38] sm:$0xff]  ;;  %v5907_v17 = vsel %vm690_vm4, %v691_v12, %v692_v7  ;;  %v667_v24 = vld [vmem:[#allocation5 + $0x3d8] sm:$0xff]  ;;  %v707_v30 = vrot.slane %v610_v25, 1  ;;  %v599_v34 = vld [vmem:[#allocation5 + $0x1e0] sm:$0xff]  ;;  %vm463_vm5 = vcmp.lt.s32.totalorder %v9035_v38, 136 }
  0x40   : > { %844 = vmatpush.msrb.mxu1 %v646_v53  ;;  %v703_v16 = vrot.slane %v5899_v11, 1  ;;  %v679_v27 = vld [vmem:[#allocation5 + $0x438] sm:$0xff]  ;;  %v618_v29 = vld [vmem:[#allocation5 + $0x250] sm:$0xff]  ;;  %v595_v40 = vld [vmem:[#allocation5 + $0x1c0] sm:$0xff] }
  0x41   : > { %732 = vmatpush.msra.mxu0 %v628_v55  ;;  %790 = vmatpush.msra.mxu2 %v629_v57  ;;  %v663_v28 = vld [vmem:[#allocation5 + $0x3b8] sm:$0xff]  ;;  %v614_v33 = vld [vmem:[#allocation5 + $0x230] sm:$0xff]  ;;  %v591_v42 = vld [vmem:[#allocation5 + $0x1a0] sm:$0xff]  ;;  %465 = vst.msk [vmem:[#allocation2] ss:$8 sm:$0x3] %vm463_vm5, %v9033_v44 }
  0x42   : > { %845 = vmatpush.msrb.mxu1 %v642_v59  ;;  %v5912_v22 = vsel %vm690_vm4, %v699_v58, %v703_v16  ;;  %v659_v32 = vld [vmem:[#allocation5 + $0x398] sm:$0xff]  ;;  %v5925_v36 = vsel %vm690_vm4, %v703_v16, %v707_v30  ;;  %468 = vst.msk [vmem:[#allocation2 + $0x41] ss:$8 sm:$0x3] %vm463_vm5, %v9033_v44  ;;  %v587_v47 = vld [vmem:[#allocation5 + $0x180] sm:$0xff]  ;;  %v600_v7 = vld [vmem:[#allocation5 + $0x1e8] sm:$0xff] }
  0x43   : > { %733 = vmatpush.msra.mxu0 %v624_v62  ;;  %791 = vmatpush.msra.mxu2 %v625_v63  ;;  %v655_v35 = vld [vmem:[#allocation5 + $0x378] sm:$0xff]  ;;  %v603_v49 = vld [vmem:[#allocation5 + $0x200] sm:$0xff]  ;;  %v588_v16 = vld [vmem:[#allocation5 + $0x188] sm:$0xff] }
  0x44   : > { %846 = vmatpush.msrb.mxu1 %v638_v1  ;;  %v651_v39 = vld [vmem:[#allocation5 + $0x358] sm:$0xff]  ;;  %v583_v53 = vld [vmem:[#allocation5 + $0x160] sm:$0xff]  ;;  %1006 = vmatpush.msra.mxu3 %v603_v49  ;;  %v597_v23 = vld [vmem:[#allocation5 + $0x1d0] sm:$0xff] }
  0x45   : > { %734 = vmatpush.msra.mxu0 %v620_v3  ;;  %792 = vmatpush.msra.mxu2 %v621_v4  ;;  %v647_v41 = vld [vmem:[#allocation5 + $0x338] sm:$0xff]  ;;  %v579_v57 = vld [vmem:[#allocation5 + $0x140] sm:$0xff]  ;;  %v593_v25 = vld [vmem:[#allocation5 + $0x1b0] sm:$0xff] }
  0x46   : > { %5017 = vmatmul.msk.f32.gmra.mxu1 %vm522_vm2, %v5893_v5  ;;  %5021 = vmatmul.msk.f32.gmra.mxu3 %vm522_vm2, %v5893_v5  ;;  %v643_v46 = vld [vmem:[#allocation5 + $0x318] sm:$0xff]  ;;  %v575_v59 = vld [vmem:[#allocation5 + $0x120] sm:$0xff]  ;;  %v553_v49 = vld [vmem:[#allocation5 + $0x70] sm:$0xff] }
  0x47   : > { %735 = vmatpush.msra.mxu0 %v616_v9  ;;  %793 = vmatpush.msra.mxu2 %v617_v10  ;;  %v609_v48 = vld [vmem:[#allocation2 + $0x40] sm:$0x1]  ;;  %v571_v63 = vld [vmem:[#allocation5 + $0x100] sm:$0xff]  ;;  %v596_v10 = vld [vmem:[#allocation5 + $0x1c8] sm:$0xff] }
  0x48   : > { %847 = vmatpush.msrb.mxu1 %v634_v13  ;;  %v639_v51 = vld [vmem:[#allocation5 + $0x2f8] sm:$0xff]  ;;  %v705_v54 = vrot.slane %v609_v48, 1  ;;  %v567_v1 = vld [vmem:[#allocation5 + $0xe0] sm:$0xff]  ;;  %v592_v13 = vld [vmem:[#allocation5 + $0x1a8] sm:$0xff] }
  0x49   : > { %736 = vmatpush.msra.mxu0 %v612_v14  ;;  %794 = vmatpush.msra.mxu2 %v613_v15  ;;  %v635_v55 = vld [vmem:[#allocation5 + $0x2d8] sm:$0xff]  ;;  %v563_v3 = vld [vmem:[#allocation5 + $0xc0] sm:$0xff]  ;;  %v604_v15 = vld [vmem:[#allocation5 + $0x208] sm:$0xff] }
  0x4a   : > { %737 = vmatmul.f32.vlgmr.msra.gmra.mxu0 %v5907_v17  ;;  %795 = vmatmul.f32.vlgmr.msra.gmra.mxu2 %v5907_v17  ;;  %v631_v58 = vld [vmem:[#allocation5 + $0x2b8] sm:$0xff]  ;;  %v5944_v61 = vsel %vm690_vm4, %v701_v37, %v705_v54  ;;  %v559_v6 = vld [vmem:[#allocation5 + $0xa0] sm:$0xff]  ;;  %v573_v37 = vld [vmem:[#allocation5 + $0x110] sm:$0xff] }
  0x4b   : > { %895 = vmatpush.msrb.mxu0 %v675_v18  ;;  %848 = vmatpush.msrb.mxu1 %v630_v19  ;;  %v627_v62 = vld [vmem:[#allocation5 + $0x298] sm:$0xff]  ;;  %v555_v9 = vld [vmem:[#allocation5 + $0x80] sm:$0xff]  ;;  %v601_v19 = vld [vmem:[#allocation5 + $0x1f0] sm:$0xff] }
  0x4c   : > { %939 = vmatpush.msrb.mxu2 %v679_v27  ;;  %v623_v0 = vld [vmem:[#allocation5 + $0x278] sm:$0xff]  ;;  %v551_v12 = vld [vmem:[#allocation5 + $0x60] sm:$0xff]  ;;  %v589_v27 = vld [vmem:[#allocation5 + $0x190] sm:$0xff] }
  0x4d   : > { %896 = vmatpush.msrb.mxu0 %v671_v20  ;;  %849 = vmatpush.msrb.mxu1 %v626_v21  ;;  %v619_v2 = vld [vmem:[#allocation5 + $0x258] sm:$0xff]  ;;  %v547_v14 = vld [vmem:[#allocation5 + $0x40] sm:$0xff]  ;;  %v580_v20 = vld [vmem:[#allocation5 + $0x148] sm:$0xff] }
  0x4e   : > { %5018 = vmatmul.msk.f32.gmra.mxu1 %vm522_vm2, %v5912_v22  ;;  %5022 = vmatmul.msk.f32.gmra.mxu3 %vm522_vm2, %v5912_v22  ;;  %v615_v4 = vld [vmem:[#allocation5 + $0x238] sm:$0xff]  ;;  %v543_v18 = vld [vmem:[#allocation5 + $0x20] sm:$0xff]  ;;  %v576_v21 = vld [vmem:[#allocation5 + $0x128] sm:$0xff] }
  0x4f   : > { %897 = vmatpush.msrb.mxu0 %v667_v24  ;;  %850 = vmatpush.msrb.mxu1 %v622_v26  ;;  %v572_v24 = vld [vmem:[#allocation5 + $0x108] sm:$0xff]  ;;  %v5966_v30 = vld [vmem:[#allocation2] sm:$0xff]  ;;  %v557_v48 = vld [vmem:[#allocation5 + $0x90] sm:$0xff] }
  0x50   : > { %1064 = vmatpush.msra.mxu2 %v604_v15  ;;  %v568_v26 = vld [vmem:[#allocation5 + $0xe8] sm:$0xff]  ;;  %v606_v54 = vld [vmem:[#allocation5 + $0x218] sm:$0xff] }
  0x51   : > { %898 = vmatpush.msrb.mxu0 %v663_v28  ;;  %851 = vmatpush.msrb.mxu1 %v618_v29  ;;  %v564_v28 = vld [vmem:[#allocation5 + $0xc8] sm:$0xff]  ;;  %v585_v29 = vld [vmem:[#allocation5 + $0x170] sm:$0xff]  ;;  %v554_v15 = vld [vmem:[#allocation5 + $0x78] sm:$0xff] }
  0x52   : > { %740 = vmatmul.f32.gmra.mxu0 %v5920_v31  ;;  %798 = vmatmul.f32.gmra.mxu2 %v5920_v31 }
  0x53   : > { %899 = vmatpush.msrb.mxu0 %v659_v32  ;;  %852 = vmatpush.msrb.mxu1 %v614_v33  ;;  %v560_v32 = vld [vmem:[#allocation5 + $0xa8] sm:$0xff]  ;;  %v581_v33 = vld [vmem:[#allocation5 + $0x150] sm:$0xff] }
  0x55   : > { %962 = vmatpush.msra.mxu1 %v599_v34  ;;  %900 = vmatpush.msrb.mxu0 %v655_v35  ;;  %v556_v34 = vld [vmem:[#allocation5 + $0x88] sm:$0xff] }
  0x56   : > { %5019 = vmatmul.msk.f32.gmra.mxu1 %vm522_vm2, %v5925_v36  ;;  %5023 = vmatmul.msk.f32.gmra.mxu3 %vm522_vm2, %v5925_v36  ;;  %v552_v35 = vld [vmem:[#allocation5 + $0x68] sm:$0xff] }
  0x57   : > { %901 = vmatpush.msrb.mxu0 %v651_v39  ;;  %963 = vmatpush.msra.mxu1 %v595_v40  ;;  %v548_v39 = vld [vmem:[#allocation5 + $0x48] sm:$0xff]  ;;  %v569_v40 = vld [vmem:[#allocation5 + $0xf0] sm:$0xff] }
  0x59   : > { %902 = vmatpush.msrb.mxu0 %v647_v41  ;;  %964 = vmatpush.msra.mxu1 %v591_v42  ;;  %v544_v41 = vld [vmem:[#allocation5 + $0x28] sm:$0xff]  ;;  %v565_v42 = vld [vmem:[#allocation5 + $0xd0] sm:$0xff] }
  0x5a   : > { %743 = vmatmul.f32.gmra.mxu0 %v5935_v45  ;;  %801 = vmatmul.f32.gmra.mxu2 %v5935_v45 }
  0x5b   : > { %903 = vmatpush.msrb.mxu0 %v643_v46  ;;  %965 = vmatpush.msra.mxu1 %v587_v47  ;;  %v561_v46 = vld [vmem:[#allocation5 + $0xb0] sm:$0xff]  ;;  %v602_v47 = vld [vmem:[#allocation5 + $0x1f8] sm:$0xff] }
  0x5d   : > { %904 = vmatpush.msrb.mxu0 %v639_v51  ;;  %966 = vmatpush.msra.mxu1 %v583_v53  ;;  %v594_v51 = vld [vmem:[#allocation5 + $0x1b8] sm:$0xff]  ;;  %v549_v53 = vld [vmem:[#allocation5 + $0x50] sm:$0xff] }
  0x5e   : > { %853 = vmatmul.f32.vlgmr.msrb.gmra.mxu1 %v5907_v17  ;;  %5024 = vmatmul.msk.f32.vlgmr.msrb.gmra.mxu3 %vm522_vm2, %v5879_v52 }
  0x5f   : > { %905 = vmatpush.msrb.mxu0 %v635_v55  ;;  %967 = vmatpush.msra.mxu1 %v579_v57  ;;  %v590_v55 = vld [vmem:[#allocation5 + $0x198] sm:$0xff]  ;;  %v545_v57 = vld [vmem:[#allocation5 + $0x30] sm:$0xff] }
  0x61   : > { %906 = vmatpush.msrb.mxu0 %v631_v58  ;;  %968 = vmatpush.msra.mxu1 %v575_v59  ;;  %v586_v58 = vld [vmem:[#allocation5 + $0x178] sm:$0xff]  ;;  %v541_v59 = vld [vmem:[#allocation5 + $0x10] sm:$0xff] }
  0x62   : > { %746 = vmatmul.f32.gmra.mxu0 %v5944_v61  ;;  %804 = vmatmul.f32.gmra.mxu2 %v5944_v61 }
  0x63   : > { %907 = vmatpush.msrb.mxu0 %v627_v62  ;;  %969 = vmatpush.msra.mxu1 %v571_v63  ;;  %v582_v62 = vld [vmem:[#allocation5 + $0x158] sm:$0xff] }
  0x64   : > { %v578_v63 = vld [vmem:[#allocation5 + $0x138] sm:$0xff] }
  0x65   : > { %908 = vmatpush.msrb.mxu0 %v623_v0  ;;  %970 = vmatpush.msra.mxu1 %v567_v1  ;;  %v1255_v0 = vld [vmem:[#allocation5 + $0x600] sm:$0xff]  ;;  %v574_v1 = vld [vmem:[#allocation5 + $0x118] sm:$0xff] }
  0x66   : > { %856 = vmatmul.f32.gmra.mxu1 %v5920_v31  ;;  %5025 = vmatmul.msk.f32.gmra.mxu3 %vm522_vm2, %v5893_v5 }
  0x67   : > { %909 = vmatpush.msrb.mxu0 %v619_v2  ;;  %971 = vmatpush.msra.mxu1 %v563_v3  ;;  %v1251_v2 = vld [vmem:[#allocation5 + $0x5e0] sm:$0xff]  ;;  %v570_v3 = vld [vmem:[#allocation5 + $0xf8] sm:$0xff] }
  0x69   : > { %910 = vmatpush.msrb.mxu0 %v615_v4  ;;  %972 = vmatpush.msra.mxu1 %v559_v6  ;;  %v1247_v4 = vld [vmem:[#allocation5 + $0x5c0] sm:$0xff]  ;;  %v566_v6 = vld [vmem:[#allocation5 + $0xd8] sm:$0xff] }
  0x6a   : > { %911 = vmatmul.f32.vlgmr.msrb.gmra.mxu0 %v5907_v17  ;;  %5028 = vmatmul.msk.f32.vlgmr.msrb.gmra.mxu2 %vm522_vm2, %v5879_v52  ;;  %v584_v17 = vld [vmem:[#allocation5 + $0x168] sm:$0xff]  ;;  %v539_v52 = vld [vmem:[#allocation5] sm:$0xff] }
  0x6b   : > { %1020 = vmatpush.msra.mxu0 %v600_v7  ;;  %973 = vmatpush.msra.mxu1 %v555_v9  ;;  %v1243_v7 = vld [vmem:[#allocation5 + $0x5a0] sm:$0xff] }
  0x6c   : > { %1180 = vmatpush.msrb.mxu2 %v606_v54  ;;  %v1263_v9 = vld [vmem:[#allocation5 + $0x640] sm:$0xff]  ;;  %v1265_v54 = vld [vmem:[#allocation5 + $0x650] sm:$0xff] }
  0x6d   : > { %1021 = vmatpush.msra.mxu0 %v596_v10  ;;  %974 = vmatpush.msra.mxu1 %v551_v12  ;;  %v562_v10 = vld [vmem:[#allocation5 + $0xb8] sm:$0xff]  ;;  %v1239_v12 = vld [vmem:[#allocation5 + $0x580] sm:$0xff] }
  0x6e   : > { %859 = vmatmul.f32.gmra.mxu1 %v5935_v45  ;;  %5026 = vmatmul.msk.f32.gmra.mxu3 %vm522_vm2, %v5912_v22 }
  0x6f   : > { %1022 = vmatpush.msra.mxu0 %v592_v13  ;;  %975 = vmatpush.msra.mxu1 %v547_v14  ;;  %v558_v13 = vld [vmem:[#allocation5 + $0x98] sm:$0xff]  ;;  %v1235_v14 = vld [vmem:[#allocation5 + $0x560] sm:$0xff] }
  0x71   : > { %1023 = vmatpush.msra.mxu0 %v588_v16  ;;  %976 = vmatpush.msra.mxu1 %v543_v18  ;;  %v1231_v16 = vld [vmem:[#allocation5 + $0x540] sm:$0xff]  ;;  %v550_v18 = vld [vmem:[#allocation5 + $0x58] sm:$0xff] }
  0x72   : > { %914 = vmatmul.f32.gmra.mxu0 %v5920_v31  ;;  %5029 = vmatmul.msk.f32.gmra.mxu2 %vm522_vm2, %v5893_v5  ;;  %v605_v5 = vld [vmem:[#allocation5 + $0x210] sm:$0xff]  ;;  %v5968_v31 = vld [vmem:[#allocation2 + $0x8] sm:$0xff] }
  0x73   : > { %1024 = vmatpush.msra.mxu0 %v584_v17  ;;  %977 = vmatpush.msra.mxu1 %v539_v52  ;;  %v1227_v17 = vld [vmem:[#allocation5 + $0x520] sm:$0xff]  ;;  %v546_v52 = vld [vmem:[#allocation5 + $0x38] sm:$0xff] }
  0x74   : > { %1122 = vmatpush.msrb.mxu3 %v605_v5  ;;  %v1207_v5 = vld [vmem:[#allocation5 + $0x480] sm:$0xff] }
  0x75   : > { %1078 = vmatpush.msrb.mxu1 %v601_v19  ;;  %1025 = vmatpush.msra.mxu0 %v580_v20  ;;  %v1223_v19 = vld [vmem:[#allocation5 + $0x500] sm:$0xff]  ;;  %v542_v20 = vld [vmem:[#allocation5 + $0x18] sm:$0xff] }
  0x76   : > { %862 = vmatmul.f32.gmra.mxu1 %v5944_v61  ;;  %5027 = vmatmul.msk.f32.gmra.mxu3 %vm522_vm2, %v5925_v36 }
  0x77   : > { %1026 = vmatpush.msra.mxu0 %v576_v21  ;;  %1079 = vmatpush.msrb.mxu1 %v597_v23  ;;  %v1219_v21 = vld [vmem:[#allocation5 + $0x4e0] sm:$0xff]  ;;  %v1260_v23 = vld [vmem:[#allocation5 + $0x628] sm:$0xff] }
  0x79   : > { %1027 = vmatpush.msra.mxu0 %v572_v24  ;;  %1080 = vmatpush.msrb.mxu1 %v593_v25  ;;  %v1215_v24 = vld [vmem:[#allocation5 + $0x4c0] sm:$0xff]  ;;  %v1256_v25 = vld [vmem:[#allocation5 + $0x608] sm:$0xff] }
  0x7a   : > { %917 = vmatmul.f32.gmra.mxu0 %v5935_v45  ;;  %5030 = vmatmul.msk.f32.gmra.mxu2 %vm522_vm2, %v5912_v22  ;;  %v577_v22 = vld [vmem:[#allocation5 + $0x130] sm:$0xff]  ;;  %v540_v45 = vld [vmem:[#allocation5 + $0x8] sm:$0xff] }
  0x7b   : > { %1028 = vmatpush.msra.mxu0 %v568_v26  ;;  %1081 = vmatpush.msrb.mxu1 %v589_v27  ;;  %v1211_v26 = vld [vmem:[#allocation5 + $0x4a0] sm:$0xff]  ;;  %v1252_v27 = vld [vmem:[#allocation5 + $0x5e8] sm:$0xff] }
  0x7d   : > { %1029 = vmatpush.msra.mxu0 %v564_v28  ;;  %1082 = vmatpush.msrb.mxu1 %v585_v29  ;;  %v1264_v28 = vld [vmem:[#allocation5 + $0x648] sm:$0xff] }
  0x7e   : > { %978 = vmatmul.f32.vlgmr.msra.gmra.mxu1 %v5966_v30  ;;  %5032 = vmatmul.msk.f32.vlgmr.msra.gmra.mxu3 %vm522_vm2, %v5968_v31  ;;  %v1248_v29 = vld [vmem:[#allocation5 + $0x5c8] sm:$0xff] }
  0x7f   : > { %1030 = vmatpush.msra.mxu0 %v560_v32  ;;  %1083 = vmatpush.msrb.mxu1 %v581_v33  ;;  %v1203_v32 = vld [vmem:[#allocation5 + $0x460] sm:$0xff]  ;;  %v1261_v33 = vld [vmem:[#allocation5 + $0x630] sm:$0xff] }
  0x80   : > { %1346 = vmatpush.msra.mxu3 %v1263_v9  ;;  %v1200_v9 = vld [vmem:[#allocation5 + $0x448] sm:$0xff] }
  0x81   : > { %1031 = vmatpush.msra.mxu0 %v556_v34  ;;  %1084 = vmatpush.msrb.mxu1 %v577_v22  ;;  %v1240_v34 = vld [vmem:[#allocation5 + $0x588] sm:$0xff]  ;;  %v1195_v22 = vld [vmem:[#allocation2 + $0x8] sm:$0xfc] }
  0x82   : > { %920 = vmatmul.f32.gmra.mxu0 %v5944_v61  ;;  %5031 = vmatmul.msk.f32.gmra.mxu2 %vm522_vm2, %v5925_v36  ;;  %v598_v36 = vld [vmem:[#allocation5 + $0x1d8] sm:$0xff]  ;;  %v1259_v61 = vld [vmem:[#allocation5 + $0x620] sm:$0xff] }
  0x83   : > { %1032 = vmatpush.msra.mxu0 %v552_v35  ;;  %1085 = vmatpush.msrb.mxu1 %v573_v37  ;;  %v1236_v35 = vld [vmem:[#allocation5 + $0x568] sm:$0xff]  ;;  %v1194_v37 = vld [vmem:[#allocation2] sm:$0xfc] }
  0x85   : > { %1033 = vmatpush.msra.mxu0 %v548_v39  ;;  %1086 = vmatpush.msrb.mxu1 %v569_v40  ;;  %v1257_v39 = vld [vmem:[#allocation5 + $0x610] sm:$0xff]  ;;  %v1232_v40 = vld [vmem:[#allocation5 + $0x548] sm:$0xff] }
  0x86   : > { %981 = vmatmul.f32.gmra.mxu1 %v5875_v50  ;;  %5033 = vmatmul.msk.f32.gmra.mxu3 %vm522_vm2, %v5868_v43 }
  0x87   : > { %1034 = vmatpush.msra.mxu0 %v544_v41  ;;  %1087 = vmatpush.msrb.mxu1 %v565_v42  ;;  %v1253_v41 = vld [vmem:[#allocation5 + $0x5f0] sm:$0xff]  ;;  %v1275_v42 = vrot.slane %v1195_v22, 2 }
  0x89   : > { %1035 = vmatpush.msra.mxu0 %v540_v45  ;;  %1088 = vmatpush.msrb.mxu1 %v561_v46  ;;  %v1276_v45 = vrot.slane %v5868_v43, 2  ;;  %v1272_v46 = vrot.slane %v1194_v37, 2 }
  0x8a   : > { %1036 = vmatmul.f32.vlgmr.msra.gmra.mxu0 %v5966_v30  ;;  %5036 = vmatmul.msk.f32.vlgmr.msra.gmra.mxu2 %vm522_vm2, %v5968_v31 }
  0x8b   : > { %1136 = vmatpush.msrb.mxu0 %v602_v47  ;;  %1089 = vmatpush.msrb.mxu1 %v557_v48  ;;  %v1273_v47 = vrot.slane %v5875_v50, 2  ;;  %v1228_v48 = vld [vmem:[#allocation5 + $0x528] sm:$0xff] }
  0x8c   : > { %1404 = vmatpush.msra.mxu2 %v1264_v28 }
  0x8d   : > { %1137 = vmatpush.msrb.mxu0 %v598_v36  ;;  %1090 = vmatpush.msrb.mxu1 %v553_v49  ;;  %v1249_v36 = vld [vmem:[#allocation5 + $0x5d0] sm:$0xff]  ;;  %v1224_v49 = vld [vmem:[#allocation5 + $0x508] sm:$0xff] }
  0x8e   : > { %984 = vmatmul.f32.gmra.mxu1 %v5889_v60  ;;  %5034 = vmatmul.msk.f32.gmra.mxu3 %vm522_vm2, %v5885_v56 }
  0x8f   : > { %1138 = vmatpush.msrb.mxu0 %v594_v51  ;;  %1091 = vmatpush.msrb.mxu1 %v549_v53  ;;  %v1245_v51 = vld [vmem:[#allocation5 + $0x5b0] sm:$0xff] }
  0x91   : > { %1139 = vmatpush.msrb.mxu0 %v590_v55  ;;  %1092 = vmatpush.msrb.mxu1 %v545_v57  ;;  %v1220_v55 = vld [vmem:[#allocation5 + $0x4e8] sm:$0xff]  ;;  %v1241_v57 = vld [vmem:[#allocation5 + $0x590] sm:$0xff] }
  0x92   : > { %1039 = vmatmul.f32.gmra.mxu0 %v5875_v50  ;;  %5037 = vmatmul.msk.f32.gmra.mxu2 %vm522_vm2, %v5868_v43 }
  0x93   : > { %1140 = vmatpush.msrb.mxu0 %v586_v58  ;;  %1093 = vmatpush.msrb.mxu1 %v541_v59  ;;  %v1216_v58 = vld [vmem:[#allocation5 + $0x4c8] sm:$0xff]  ;;  %v1237_v59 = vld [vmem:[#allocation5 + $0x570] sm:$0xff] }
  0x95   : > { %1302 = vmatpush.msra.mxu1 %v1259_v61  ;;  %1141 = vmatpush.msrb.mxu0 %v582_v62  ;;  %v1280_v61 = vrot.slane %v5885_v56, 2  ;;  %v1278_v62 = vrot.slane %v5889_v60, 2 }
  0x96   : > { %987 = vmatmul.f32.gmra.mxu1 %v5897_v8  ;;  %5035 = vmatmul.msk.f32.gmra.mxu3 %vm522_vm2, %v5899_v11 }
  0x97   : > { %1142 = vmatpush.msrb.mxu0 %v578_v63  ;;  %1303 = vmatpush.msra.mxu1 %v1255_v0  ;;  %v1212_v63 = vld [vmem:[#allocation5 + $0x4a8] sm:$0xff]  ;;  %v1233_v0 = vld [vmem:[#allocation5 + $0x550] sm:$0xff] }
  0x99   : > { %1143 = vmatpush.msrb.mxu0 %v574_v1  ;;  %1304 = vmatpush.msra.mxu1 %v1251_v2  ;;  %v1208_v2 = vld [vmem:[#allocation5 + $0x488] sm:$0xff] }
  0x9a   : > { %1042 = vmatmul.f32.gmra.mxu0 %v5889_v60  ;;  %5038 = vmatmul.msk.f32.gmra.mxu2 %vm522_vm2, %v5885_v56 }
  0x9b   : > { %1144 = vmatpush.msrb.mxu0 %v570_v3  ;;  %1305 = vmatpush.msra.mxu1 %v1247_v4  ;;  %v1229_v3 = vld [vmem:[#allocation5 + $0x530] sm:$0xff] }
  0x9d   : > { %1145 = vmatpush.msrb.mxu0 %v566_v6  ;;  %1306 = vmatpush.msra.mxu1 %v1243_v7  ;;  %v1204_v6 = vld [vmem:[#allocation5 + $0x468] sm:$0xff]  ;;  %v1225_v7 = vld [vmem:[#allocation5 + $0x510] sm:$0xff] }
  0x9e   : > { %1094 = vmatmul.f32.vlgmr.msrb.gmra.mxu1 %v5966_v30  ;;  %5040 = vmatmul.msk.f32.vlgmr.msrb.gmra.mxu3 %vm522_vm2, %v5968_v31 }
  0x9f   : > { %1146 = vmatpush.msrb.mxu0 %v562_v10  ;;  %1307 = vmatpush.msra.mxu1 %v1239_v12  ;;  %v1221_v10 = vld [vmem:[#allocation5 + $0x4f0] sm:$0xff] }
  0xa0   : > { %1462 = vmatpush.msrb.mxu3 %v1265_v54 }
  0xa1   : > { %1147 = vmatpush.msrb.mxu0 %v558_v13  ;;  %1308 = vmatpush.msra.mxu1 %v1235_v14  ;;  %v1284_v13 = vrot.slane %v5899_v11, 2  ;;  %v1282_v14 = vrot.slane %v5897_v8, 2 }
  0xa2   : > { %1045 = vmatmul.f32.gmra.mxu0 %v5897_v8  ;;  %5039 = vmatmul.msk.f32.gmra.mxu2 %vm522_vm2, %v5899_v11 }
  0xa3   : > { %1148 = vmatpush.msrb.mxu0 %v554_v15  ;;  %1309 = vmatpush.msra.mxu1 %v1231_v16  ;;  %v1262_v15 = vld [vmem:[#allocation5 + $0x638] sm:$0xff]  ;;  %v1217_v16 = vld [vmem:[#allocation5 + $0x4d0] sm:$0xff] }
  0xa5   : > { %1149 = vmatpush.msrb.mxu0 %v550_v18  ;;  %1310 = vmatpush.msra.mxu1 %v1227_v17  ;;  %v1258_v17 = vld [vmem:[#allocation5 + $0x618] sm:$0xff] }
  0xa6   : > { %1097 = vmatmul.f32.gmra.mxu1 %v5875_v50  ;;  %5041 = vmatmul.msk.f32.gmra.mxu3 %vm522_vm2, %v5868_v43 }
  0xa7   : > { %1150 = vmatpush.msrb.mxu0 %v546_v52  ;;  %1311 = vmatpush.msra.mxu1 %v1223_v19  ;;  %v1213_v52 = vld [vmem:[#allocation5 + $0x4b0] sm:$0xff] }
  0xa9   : > { %1151 = vmatpush.msrb.mxu0 %v542_v20  ;;  %1312 = vmatpush.msra.mxu1 %v1219_v21  ;;  %v1197_v20 = vld [vmem:[#allocation2 + $0x48] sm:$0x3]  ;;  %v1254_v21 = vld [vmem:[#allocation5 + $0x5f8] sm:$0xff] }
  0xaa   : > { %1152 = vmatmul.f32.vlgmr.msrb.gmra.mxu0 %v5966_v30  ;;  %5044 = vmatmul.msk.f32.vlgmr.msrb.gmra.mxu2 %vm522_vm2, %v5968_v31  ;;  %v1244_v30 = vld [vmem:[#allocation5 + $0x5a8] sm:$0xff]  ;;  %v1199_v31 = vld [vmem:[#allocation5 + $0x440] sm:$0xff] }
  0xab   : > { %1360 = vmatpush.msra.mxu0 %v1260_v23  ;;  %1313 = vmatpush.msra.mxu1 %v1215_v24  ;;  %v1196_v23 = vld [vmem:[#allocation2 + $0x40] sm:$0x3]  ;;  %v1209_v24 = vld [vmem:[#allocation5 + $0x490] sm:$0xff] }
  0xad   : > { %1361 = vmatpush.msra.mxu0 %v1256_v25  ;;  %1314 = vmatpush.msra.mxu1 %v1211_v26  ;;  %v1266_v26 = vld [vmem:[#allocation5 + $0x658] sm:$0xff] }
  0xae   : > { %1100 = vmatmul.f32.gmra.mxu1 %v5889_v60  ;;  %5042 = vmatmul.msk.f32.gmra.mxu3 %vm522_vm2, %v5885_v56 }
  0xaf   : > { %1362 = vmatpush.msra.mxu0 %v1252_v27  ;;  %1315 = vmatpush.msra.mxu1 %v1207_v5  ;;  %v1250_v27 = vld [vmem:[#allocation5 + $0x5d8] sm:$0xff]  ;;  %v1205_v5 = vld [vmem:[#allocation5 + $0x470] sm:$0xff] }
  0xb0   : > { %1520 = vmatpush.msrb.mxu2 %v1266_v26 }
  0xb1   : > { %1363 = vmatpush.msra.mxu0 %v1248_v29  ;;  %1316 = vmatpush.msra.mxu1 %v1203_v32  ;;  %v1288_v29 = vrot.slane %v1197_v20, 2  ;;  %v1286_v32 = vrot.slane %v1196_v23, 2 }
  0xb2   : > { %1155 = vmatmul.f32.gmra.mxu0 %v5875_v50  ;;  %5045 = vmatmul.msk.f32.gmra.mxu2 %vm522_vm2, %v5868_v43  ;;  %v6023_v43 = vsel %vm1271_vm6, %v1275_v42, %v1276_v45  ;;  %v6026_v50 = vsel %vm1271_vm6, %v1272_v46, %v1273_v47 }
  0xb3   : > { %1364 = vmatpush.msra.mxu0 %v1244_v30  ;;  %1317 = vmatpush.msra.mxu1 %v1199_v31  ;;  %v1246_v30 = vld [vmem:[#allocation5 + $0x5b8] sm:$0xff]  ;;  %v1201_v31 = vld [vmem:[#allocation5 + $0x450] sm:$0xff]  ;;  %v6084_v37 = vsel %vm1271_vm6, %v1282_v14, %v1286_v32 }
  0xb5   : > { %1418 = vmatpush.msrb.mxu1 %v1261_v33  ;;  %1365 = vmatpush.msra.mxu0 %v1240_v34  ;;  %v1242_v34 = vld [vmem:[#allocation5 + $0x598] sm:$0xff] }
  0xb6   : > { %1103 = vmatmul.f32.gmra.mxu1 %v5897_v8  ;;  %5043 = vmatmul.msk.f32.gmra.mxu3 %vm522_vm2, %v5899_v11 }
  0xb7   : > { %1366 = vmatpush.msra.mxu0 %v1236_v35  ;;  %1419 = vmatpush.msrb.mxu1 %v1257_v39  ;;  %v6081_v35 = vsel %vm1271_vm6, %v1284_v13, %v1288_v29  ;;  %v1238_v39 = vld [vmem:[#allocation5 + $0x578] sm:$0xff] }
  0xb9   : > { %1367 = vmatpush.msra.mxu0 %v1232_v40  ;;  %1420 = vmatpush.msrb.mxu1 %v1253_v41  ;;  %v1234_v41 = vld [vmem:[#allocation5 + $0x558] sm:$0xff] }
  0xba   : > { %1158 = vmatmul.f32.gmra.mxu0 %v5889_v60  ;;  %5046 = vmatmul.msk.f32.gmra.mxu2 %vm522_vm2, %v5885_v56  ;;  %v6041_v56 = vsel %vm1271_vm6, %v1276_v45, %v1280_v61  ;;  %v6044_v60 = vsel %vm1271_vm6, %v1273_v47, %v1278_v62  ;;  %v1230_v45 = vld [vmem:[#allocation5 + $0x538] sm:$0xff] }
  0xbb   : > { %v6020_v53 = vpop.f32.mrf.mxu1  ;;  %1368 = vmatpush.msra.mxu0 %v1228_v48  ;;  %1421 = vmatpush.msrb.mxu1 %v1249_v36  ;;  %v1226_v47 = vld [vmem:[#allocation5 + $0x518] sm:$0xff] }
  0xbc   : > { %v1222_v36 = vld [vmem:[#allocation5 + $0x4f8] sm:$0xff] }
  0xbd   : > { %1369 = vmatpush.msra.mxu0 %v1224_v49  ;;  %1422 = vmatpush.msrb.mxu1 %v1245_v51  ;;  %v1218_v51 = vld [vmem:[#allocation5 + $0x4d8] sm:$0xff] }
  0xbe   : > { %5048 = vmatmul.msk.f32.vlgmr.msra.gmra.mxu3 %vm522_vm2, %v6023_v43  ;;  %1318 = vmatmul.f32.vlgmr.msra.gmra.mxu1 %v6026_v50 }
  0xbf   : > { %1370 = vmatpush.msra.mxu0 %v1220_v55  ;;  %1423 = vmatpush.msrb.mxu1 %v1241_v57  ;;  %v1214_v55 = vld [vmem:[#allocation5 + $0x4b8] sm:$0xff] }
  0xc1   : > { %v6033_v1 = vpop.f32.mrf.mxu3  ;;  %1371 = vmatpush.msra.mxu0 %v1216_v58  ;;  %1424 = vmatpush.msrb.mxu1 %v1237_v59  ;;  %v1210_v58 = vld [vmem:[#allocation5 + $0x498] sm:$0xff] }
  0xc2   : > { %1161 = vmatmul.f32.gmra.mxu0 %v5897_v8  ;;  %5047 = vmatmul.msk.f32.gmra.mxu2 %vm522_vm2, %v5899_v11  ;;  %v6061_v11 = vsel %vm1271_vm6, %v1280_v61, %v1284_v13  ;;  %v6064_v8 = vsel %vm1271_vm6, %v1278_v62, %v1282_v14  ;;  %v1206_v61 = vld [vmem:[#allocation5 + $0x478] sm:$0xff] }
  0xc3   : > { %v6038_v4 = vpop.f32.mrf.mxu1  ;;  %1372 = vmatpush.msra.mxu0 %v1212_v63  ;;  %1425 = vmatpush.msrb.mxu1 %v1233_v0  ;;  %v1202_v63 = vld [vmem:[#allocation5 + $0x458] sm:$0xff] }
  0xc5   : > { %1373 = vmatpush.msra.mxu0 %v1208_v2  ;;  %1426 = vmatpush.msrb.mxu1 %v1229_v3 }
  0xc6   : > { %5049 = vmatmul.msk.f32.gmra.mxu3 %vm522_vm2, %v6041_v56  ;;  %1321 = vmatmul.f32.gmra.mxu1 %v6044_v60 }
  0xc7   : > { %v6049_v12 = vpop.f32.mrf.mxu0  ;;  %1374 = vmatpush.msra.mxu0 %v1204_v6  ;;  %1427 = vmatpush.msrb.mxu1 %v1225_v7 }
  0xc9   : > { %v6053_v18 = vpop.f32.mrf.mxu3  ;;  %1375 = vmatpush.msra.mxu0 %v1200_v9  ;;  %1428 = vmatpush.msrb.mxu1 %v1221_v10 }
  0xca   : > { %5052 = vmatmul.msk.f32.vlgmr.msra.gmra.mxu2 %vm522_vm2, %v6023_v43  ;;  %1376 = vmatmul.f32.vlgmr.msra.gmra.mxu0 %v6026_v50 }
  0xcb   : > { %v6058_v19 = vpop.f32.mrf.mxu1  ;;  %1476 = vmatpush.msrb.mxu0 %v1262_v15  ;;  %1429 = vmatpush.msrb.mxu1 %v1217_v16 }
  0xcd   : > { %v6066_v25 = vpop.f32.mrf.mxu2  ;;  %1477 = vmatpush.msrb.mxu0 %v1258_v17  ;;  %1430 = vmatpush.msrb.mxu1 %v1213_v52 }
  0xce   : > { %5050 = vmatmul.msk.f32.gmra.mxu3 %vm522_vm2, %v6061_v11  ;;  %1324 = vmatmul.f32.gmra.mxu1 %v6064_v8 }
  0xcf   : > { %v6071_v28 = vpop.f32.mrf.mxu0  ;;  %1478 = vmatpush.msrb.mxu0 %v1254_v21  ;;  %1431 = vmatpush.msrb.mxu1 %v1209_v24 }
  0xd1   : > { %v6073_v33 = vpop.f32.mrf.mxu3  ;;  %1479 = vmatpush.msrb.mxu0 %v1250_v27  ;;  %1432 = vmatpush.msrb.mxu1 %v1205_v5 }
  0xd2   : > { %5053 = vmatmul.msk.f32.gmra.mxu2 %vm522_vm2, %v6041_v56  ;;  %1379 = vmatmul.f32.gmra.mxu0 %v6044_v60 }
  0xd3   : > { %v6078_v22 = vpop.f32.mrf.mxu1  ;;  %1480 = vmatpush.msrb.mxu0 %v1246_v30  ;;  %1433 = vmatpush.msrb.mxu1 %v1201_v31 }
  0xd4   : > { %9056 = vst [vmem:[#allocation21_spill] sm:$0xff] %v6078_v22 }
  0xd5   : > { %v6086_v40 = vpop.f32.mrf.mxu2  ;;  %1481 = vmatpush.msrb.mxu0 %v1242_v34 }
  0xd6   : > { %5051 = vmatmul.msk.f32.gmra.mxu3 %vm522_vm2, %v6081_v35  ;;  %1327 = vmatmul.f32.gmra.mxu1 %v6084_v37 }
  0xd7   : > { %v6091_v42 = vpop.f32.mrf.mxu0  ;;  %1482 = vmatpush.msrb.mxu0 %v1238_v39 }
  0xd9   : > { %v6093_v46 = vpop.f32.mrf.mxu3  ;;  %1483 = vmatpush.msrb.mxu0 %v1234_v41 }
  0xda   : > { %5054 = vmatmul.msk.f32.gmra.mxu2 %vm522_vm2, %v6061_v11  ;;  %1382 = vmatmul.f32.gmra.mxu0 %v6064_v8 }
  0xdb   : > { %v6098_v48 = vpop.f32.mrf.mxu1  ;;  %1484 = vmatpush.msrb.mxu0 %v1230_v45 }
  0xdd   : > { %v6100_v49 = vpop.f32.mrf.mxu2  ;;  %1485 = vmatpush.msrb.mxu0 %v1226_v47 }
  0xde   : > { %5056 = vmatmul.msk.f32.vlgmr.msrb.gmra.mxu3 %vm522_vm2, %v6023_v43  ;;  %1434 = vmatmul.f32.vlgmr.msrb.gmra.mxu1 %v6026_v50 }
  0xdf   : > { %v6105_v54 = vpop.f32.mrf.mxu0  ;;  %1486 = vmatpush.msrb.mxu0 %v1222_v36 }
  0xe0   : > { %9057 = vst [vmem:[#allocation22_spill] sm:$0xff] %v6105_v54 }
  0xe1   : > { %v6107_v57 = vpop.f32.mrf.mxu3  ;;  %1487 = vmatpush.msrb.mxu0 %v1218_v51 }
  0xe2   : > { %5055 = vmatmul.msk.f32.gmra.mxu2 %vm522_vm2, %v6081_v35  ;;  %1385 = vmatmul.f32.gmra.mxu0 %v6084_v37 }
  0xe3   : > { %v6112_v59 = vpop.f32.mrf.mxu1  ;;  %1488 = vmatpush.msrb.mxu0 %v1214_v55 }
  0xe5   : > { %v6114_v62 = vpop.f32.mrf.mxu2  ;;  %1489 = vmatpush.msrb.mxu0 %v1210_v58 }
  0xe6   : > { %5057 = vmatmul.msk.f32.gmra.mxu3 %vm522_vm2, %v6041_v56  ;;  %1437 = vmatmul.f32.gmra.mxu1 %v6044_v60 }
  0xe7   : > { %v6119_v0 = vpop.f32.mrf.mxu0  ;;  %1490 = vmatpush.msrb.mxu0 %v1206_v61 }
  0xe9   : > { %v6121_v2 = vpop.f32.mrf.mxu3  ;;  %1491 = vmatpush.msrb.mxu0 %v1202_v63 }
  0xea   : > { %5060 = vmatmul.msk.f32.vlgmr.msrb.gmra.mxu2 %vm522_vm2, %v6023_v43  ;;  %1492 = vmatmul.f32.vlgmr.msrb.gmra.mxu0 %v6026_v50 }
  0xeb   : > { %v6126_v3 = vpop.f32.mrf.mxu1 }
  0xed   : > { %v6128_v6 = vpop.f32.mrf.mxu2 }
  0xee   : > { %5058 = vmatmul.msk.f32.gmra.mxu3 %vm522_vm2, %v6061_v11  ;;  %1440 = vmatmul.f32.gmra.mxu1 %v6064_v8 }
  0xef   : > { %v6133_v7 = vpop.f32.mrf.mxu0 }
  0xf1   : > { %v6135_v9 = vpop.f32.mrf.mxu3 }
  0xf2   : > { %5061 = vmatmul.msk.f32.gmra.mxu2 %vm522_vm2, %v6041_v56  ;;  %1495 = vmatmul.f32.gmra.mxu0 %v6044_v60 }
  0xf3   : > { %v6140_v43 = vpop.f32.mrf.mxu1 }
  0xf5   : > { %v6142_v50 = vpop.f32.mrf.mxu2 }
  0xf6   : > { %5059 = vmatmul.msk.f32.gmra.mxu3 %vm522_vm2, %v6081_v35  ;;  %1443 = vmatmul.f32.gmra.mxu1 %v6084_v37 }
  0xf7   : > { %v6147_v10 = vpop.f32.mrf.mxu0 }
  0xf8   : > { %9058 = vst [vmem:[#allocation23_spill] sm:$0xff] %v6147_v10 }
  0xf9   : > { %v6149_v13 = vpop.f32.mrf.mxu3 }
  0xfa   : > { %5062 = vmatmul.msk.f32.gmra.mxu2 %vm522_vm2, %v6061_v11  ;;  %1498 = vmatmul.f32.gmra.mxu0 %v6064_v8 }
  0xfb   : > { %v979_v56 = vpop.f32.mrf.mxu1 }
  0xfd   : > { %v6154_v60 = vpop.f32.mrf.mxu2 }
  0xfe   : > { %9059 = vst [vmem:[#allocation24_spill] sm:$0xff] %v6154_v60 }
  0xff   : > { %v6156_v14 = vpop.f32.mrf.mxu0 }
 0x100   : > { %9060 = vst [vmem:[#allocation25_spill] sm:$0xff] %v6156_v14 }
 0x101   : > { %v1008_v15 = vpop.f32.mrf.mxu3 }
 0x102   : > { %5063 = vmatmul.msk.f32.gmra.mxu2 %vm522_vm2, %v6081_v35  ;;  %1501 = vmatmul.f32.gmra.mxu0 %v6084_v37 }
 0x103   : > { %v982_v16 = vpop.f32.mrf.mxu1 }
 0x105   : > { %v6161_v17 = vpop.f32.mrf.mxu2 }
 0x106   : > { %9061 = vst [vmem:[#allocation26_spill] sm:$0xff] %v6161_v17  ;;  %v768_v17 = vadd.f32 %v6020_v53, %v6049_v12 }
 0x107   : > { %v6163_v52 = vpop.f32.mrf.mxu0 }
 0x109   : > { %v1011_v20 = vpop.f32.mrf.mxu3 }
 0x10b   : > { %v6165_v11 = vpop.f32.mrf.mxu1 }
 0x10d   : > { %v6167_v8 = vpop.f32.mrf.mxu2 }
 0x10f   : > { %v6169_v21 = vpop.f32.mrf.mxu0 }
 0x111   : > { %v6171_v23 = vpop.f32.mrf.mxu3 }
 0x112   : > { %9062 = vst [vmem:[#allocation27_spill] sm:$0xff] %v6171_v23 }
 0x113   : > { %v6173_v24 = vpop.f32.mrf.mxu1 }
 0x114   : > { %9063 = vst [vmem:[#allocation28_spill] sm:$0xff] %v6173_v24  ;;  %v980_v24 = vadd.f32 %v979_v56, %v768_v17 }
 0x115   : > { %v6175_v26 = vpop.f32.mrf.mxu2 }
 0x117   : > { %v6177_v27 = vpop.f32.mrf.mxu0 }
 0x119   : > { %v6179_v5 = vpop.f32.mrf.mxu3 }
 0x11a   : > { %9064 = vst [vmem:[#allocation29_spill] sm:$0xff] %v6179_v5 }
 0x11b   : > { %v1095_v29 = vpop.f32.mrf.mxu1 }
 0x11d   : > { %v6181_v32 = vpop.f32.mrf.mxu2 }
 0x11f   : > { %v6183_v30 = vpop.f32.mrf.mxu0 }
 0x121   : > { %v1124_v31 = vpop.f32.mrf.mxu3 }
 0x123   : > { %v6185_v34 = vpop.f32.mrf.mxu1 }
 0x125   : > { %v6187_v35 = vpop.f32.mrf.mxu2 }
 0x127   : > { %v6189_v37 = vpop.f32.mrf.mxu0 }
 0x129   : > { %v6191_v39 = vpop.f32.mrf.mxu3 }
 0x12b   : > { %v6193_v41 = vpop.f32.mrf.mxu1 }
 0x12d   : > { %v6195_v45 = vpop.f32.mrf.mxu2 }
 0x12f   : > { %v6197_v47 = vpop.f32.mrf.mxu0 }
 0x131   : > { %v6199_v36 = vpop.f32.mrf.mxu3 }
 0x133   : > { %v6201_v51 = vpop.f32.mrf.mxu1 }
 0x134   : > { %9065 = vst [vmem:[#allocation30_spill] sm:$0xff] %v6201_v51 }
 0x135   : > { %v6203_v55 = vpop.f32.mrf.mxu2 }
 0x137   : > { %v6205_v58 = vpop.f32.mrf.mxu0 }
 0x138   : > { %9066 = vst [vmem:[#allocation31_spill] sm:$0xff] %v6205_v58  ;;  %v6220_v58 = vld [vmem:[%s9016_s2] sm:$0xf] }
 0x139   : > { %v6207_v61 = vpop.f32.mrf.mxu3  ;;  %v6225_v51 = vperm.slane %v6220_v58, 0 }
 0x13a   : > { %9067 = vst [vmem:[#allocation32_spill] sm:$0xff] %v6207_v61  ;;  %v771_v61 = vadd.f32 %v6038_v4, %v6071_v28 }
 0x13b   : > { %v1319_v63 = vpop.f32.mrf.mxu1 }
 0x13d   : > { %v6209_v44 = vpop.f32.mrf.mxu2 }
 0x13e   : > { %9068 = vst [vmem:[#allocation33_spill] sm:$0xff] %v6209_v44  ;;  %v1009_v44 = vadd.f32 %v1008_v15, %v980_v24 }
 0x13f   : > { %v6211_v38 = vpop.f32.mrf.mxu0 }
 0x140   : > { %9069 = vst [vmem:[#allocation34_spill] sm:$0xff] %v6211_v38  ;;  %v983_v38 = vadd.f32 %v982_v16, %v771_v61 }
 0x141   : > { %v1348_v5 = vpop.f32.mrf.mxu3 }
 0x142   : > { %v1349_v22 = vadd.f32 %v1348_v5, %v1319_v63  ;;  %v1012_v12 = vadd.f32 %v1011_v20, %v983_v38  ;;  %v826_v20 = vadd.f32 %v6033_v1, %v6066_v25  ;;  %v829_v1 = vadd.f32 %v6053_v18, %v6086_v40 }
 0x143   : > { %v1322_v14 = vpop.f32.mrf.mxu1 }
 0x144   : > { %v1534_v10 = vadd.f32 %v1349_v22, %v1009_v44  ;;  %v1038_v61 = vadd.f32 %v6163_v52, %v826_v20  ;;  %v887_v20 = vadd.f32 %v6121_v2, %v6112_v59  ;;  %v942_v59 = vadd.f32 %v6128_v6, %v6119_v0 }
 0x145   : > { %v6215_v54 = vpop.f32.mrf.mxu2  ;;  %v890_v0 = vadd.f32 %v6135_v9, %v6126_v3 }
 0x146   : > { %9070 = vst [vmem:[#allocation35_spill] sm:$0xff] %v6215_v54  ;;  %v6230_v63 = vadd.f32 %v6225_v51, %v1534_v10 }
 0x147   : > { %v1377_v60 = vpop.f32.mrf.mxu0 }
 0x148   : > { %9071 = vst [vmem:[#allocation36_spill] sm:$0xff] %v6230_v63  ;;  %v9038_v28 = vmax.f32 %v6230_v63, 0.0 }
 0x149   : > { %v1351_v53 = vpop.f32.mrf.mxu3 }
 0x14a   : > { %v1352_v56 = vadd.f32 %v1351_v53, %v1322_v14 }
 0x14b   : > { %v6227_v17 = vpop.f32.mrf.mxu1 }
 0x14c   : > { %v1538_v5 = vadd.f32 %v1352_v56, %v1012_v12  ;;  %v884_v56 = vadd.f32 %v6107_v57, %v6098_v48  ;;  %v1041_v48 = vadd.f32 %v6169_v21, %v829_v1 }
 0x14d   : > { %v1406_v54 = vpop.f32.mrf.mxu2 }
 0x14e   : > { %v6233_v23 = vadd.f32 %v6225_v51, %v1538_v5  ;;  %v1407_v53 = vadd.f32 %v1406_v54, %v1377_v60  ;;  %v1067_v5 = vadd.f32 %v6167_v8, %v1038_v61  ;;  %v6260_v54 = vperm.slane %v6220_v58, 2 }
 0x14f   : > { %v1380_v4 = vpop.f32.mrf.mxu0  ;;  %v1070_v61 = vadd.f32 %v6175_v26, %v1041_v48 }
 0x150   : > { %9072 = vst [vmem:[#allocation37_spill] sm:$0xff] %v6233_v23  ;;  %v9037_v44 = vmax.f32 %v6233_v23, 0.0  ;;  %v6255_v23 = vperm.slane %v6220_v58, 1 }
 0x151   : > { %v6237_v22 = vpop.f32.mrf.mxu3 }
 0x152   : > { %v5493_v38 = vpack.i.bf16 %v9037_v44, %v9038_v28  ;;  %v1096_v28 = vadd.f32 %v1095_v29, %v884_v56 }
 0x153   : > { %v6243_v14 = vpop.f32.mrf.mxu1 }
 0x154   : > { %5494 = vrot.lane.b32.xlu2 %v5493_v38, %s5698_s30  ;;  %v1535_v38 = vadd.f32 %v1407_v53, %v1067_v5  ;;  %v1125_v25 = vadd.f32 %v1124_v31, %v1096_v28  ;;  %v1099_v31 = vadd.f32 %v6185_v34, %v887_v20  ;;  %v832_v28 = vadd.f32 %v6073_v33, %v6100_v49 }
 0x155   : > { %v1409_v10 = vpop.f32.mrf.mxu2 }
 0x156   : > { %v1410_v57 = vadd.f32 %v1409_v10, %v1380_v4  ;;  %v6264_v8 = vadd.f32 %v6255_v23, %v1535_v38  ;;  %v1128_v2 = vadd.f32 %v6191_v39, %v1099_v31  ;;  %v6298_v38 = vperm.slane %v6220_v58, 3  ;;  %v9074_v31 = vld [vmem:[#allocation27_spill] sm:$0xff] }
 0x157   : > { %v1383_v15 = vpop.f32.mrf.mxu0 }
 0x158   : > { %v1577_v21 = vmax.f32 %v6264_v8, 0.0  ;;  %v1830_v8 = vld [vmem:[%s9019_s5 + $0x218] sm:$0xff] }
 0x159   : > { %v6246_v16 = vpop.f32.mrf.mxu3 }
 0x15a   : > { %9073 = vst [vmem:[#allocation38_spill] sm:$0xff] %v6246_v16 }
 0x15b   : > { %v1435_v24 = vpop.f32.mrf.mxu1 }
 0x15d   : > { %v1412_v12 = vpop.f32.mrf.mxu2 }
 0x15e   : > { %v1413_v33 = vadd.f32 %v1412_v12, %v1383_v15  ;;  %v1102_v15 = vadd.f32 %v6193_v41, %v890_v0 }
 0x15f   : > { %v1386_v44 = vpop.f32.mrf.mxu0 }
 0x160   : > { %v1131_v48 = vadd.f32 %v6199_v36, %v1102_v15  ;;  %v9080_v15 = vld [vmem:[#allocation22_spill] sm:$0xff] }
 0x161   : > { %v1464_v63 = vpop.f32.mrf.mxu3 }
 0x162   : > { %v1465_v16 = vadd.f32 %v1464_v63, %v1435_v24  ;;  %v1539_v63 = vadd.f32 %v1410_v57, %v1070_v61  ;;  %v1154_v24 = vadd.f32 %v6189_v37, %v942_v59  ;;  %v893_v61 = vadd.f32 %v6149_v13, %v6140_v43  ;;  %v9075_v13 = vld [vmem:[#allocation30_spill] sm:$0xff] }
 0x163   : > { %v1438_v60 = vpop.f32.mrf.mxu1 }
 0x164   : > { %v1536_v52 = vadd.f32 %v1465_v16, %v1125_v25  ;;  %v1044_v16 = vadd.f32 %v6177_v27, %v832_v28  ;;  %v6287_v53 = vadd.f32 %v6255_v23, %v1539_v63  ;;  %v1183_v5 = vadd.f32 %v6195_v45, %v1154_v24 }
 0x165   : > { %v1415_v29 = vpop.f32.mrf.mxu2  ;;  %v945_v45 = vadd.f32 %v6142_v50, %v6133_v7 }
 0x166   : > { %v6270_v18 = vadd.f32 %v6260_v54, %v1536_v52  ;;  %v1073_v6 = vadd.f32 %v6181_v32, %v1044_v16  ;;  %v1581_v3 = vmax.f32 %v6287_v53, 0.0  ;;  %v835_v32 = vadd.f32 %v6093_v46, %v6114_v62  ;;  %v1827_v53 = vld [vmem:[%s9019_s5 + $0x200] sm:$0xff] }
 0x167   : > { %v1493_v40 = vpop.f32.mrf.mxu0  ;;  %v774_v52 = vadd.f32 %v6058_v19, %v6091_v42  ;;  %v1157_v62 = vadd.f32 %v6197_v47, %v945_v45  ;;  %v1416_v50 = vadd.f32 %v1415_v29, %v1386_v44  ;;  %v1355_v47 = vadd.f32 %v6237_v22, %v6227_v17  ;;  %v9076_v17 = vld [vmem:[#allocation23_spill] sm:$0xff]  ;;  %v9077_v22 = vld [vmem:[#allocation24_spill] sm:$0xff] }
 0x168   : > { %v1578_v4 = vmax.f32 %v6270_v18, 0.0  ;;  %v1543_v1 = vadd.f32 %v1413_v33, %v1073_v6  ;;  %v1047_v46 = vadd.f32 %v6183_v30, %v835_v32  ;;  %v948_v59 = vadd.f32 %v9077_v22, %v9076_v17  ;;  %v9079_v6 = vld [vmem:[#allocation31_spill] sm:$0xff]  ;;  %v9082_v32 = vld [vmem:[#allocation33_spill] sm:$0xff] }
 0x169   : > { %v1467_v10 = vpop.f32.mrf.mxu3  ;;  %v1186_v30 = vadd.f32 %v6203_v55, %v1157_v62 }
 0x16a   : > { %v1468_v26 = vadd.f32 %v1467_v10, %v1438_v60  ;;  %v5483_v34 = vpack.i.bf16 %v1578_v4, %v1577_v21  ;;  %v6320_v7 = vadd.f32 %v6255_v23, %v1543_v1  ;;  %v1076_v19 = vadd.f32 %v6187_v35, %v1047_v46 }
 0x16b   : > { %v1441_v39 = vpop.f32.mrf.mxu1 }
 0x16c   : > { %v1540_v49 = vadd.f32 %v1468_v26, %v1128_v2  ;;  %5484 = vrot.lane.b32.xlu0 %v5483_v34, %s5698_s30  ;;  %v1547_v35 = vadd.f32 %v1416_v50, %v1076_v19  ;;  %v1585_v55 = vmax.f32 %v6320_v7, 0.0  ;;  %v9078_v2 = vld [vmem:[#allocation32_spill] sm:$0xff]  ;;  %v9087_v19 = vld [vmem:[#allocation29_spill] sm:$0xff] }
 0x16d   : > { %v1522_v56 = vpop.f32.mrf.mxu2  ;;  %v1926_v7 = vld [vmem:[%s9019_s5 + $0x518] sm:$0xff] }
 0x16e   : > { %v6295_v27 = vadd.f32 %v6260_v54, %v1540_v49  ;;  %v1523_v37 = vadd.f32 %v1522_v56, %v1493_v40  ;;  %v986_v40 = vadd.f32 %v6165_v11, %v774_v52  ;;  %v1105_v11 = vadd.f32 %v9075_v13, %v893_v61  ;;  %v9084_v52 = vld [vmem:[#allocation38_spill] sm:$0xff] }
 0x16f   : > { %v1496_v12 = vpop.f32.mrf.mxu0  ;;  %v6353_v56 = vadd.f32 %v6255_v23, %v1547_v35  ;;  %v1358_v46 = vadd.f32 %v9084_v52, %v6243_v14  ;;  %v9086_v61 = vld [vmem:[#allocation26_spill] sm:$0xff]  ;;  %v9089_v35 = vld [vmem:[#allocation35_spill] sm:$0xff] }
 0x170   : > { %v1537_v25 = vadd.f32 %v1523_v37, %v1183_v5  ;;  %v1582_v9 = vmax.f32 %v6295_v27, 0.0  ;;  %v1015_v43 = vadd.f32 %v9074_v31, %v986_v40  ;;  %v1134_v26 = vadd.f32 %v9078_v2, %v1105_v11  ;;  %v9088_v31 = vld [vmem:[#allocation34_spill] sm:$0xff]  ;;  %v1784_v52 = vld [vmem:[%s9019_s5 + $0xa8] sm:$0xff] }
 0x171   : > { %v1470_v60 = vpop.f32.mrf.mxu3  ;;  %v1589_v50 = vmax.f32 %v6353_v56, 0.0  ;;  %v1920_v27 = vld [vmem:[%s9019_s5 + $0x4e8] sm:$0xff] }
 0x172   : > { %v1471_v58 = vadd.f32 %v1470_v60, %v1441_v39  ;;  %v5488_v41 = vpack.i.bf16 %v1582_v9, %v1581_v3  ;;  %v6313_v57 = vadd.f32 %v6298_v38, %v1537_v25  ;;  %v1542_v24 = vadd.f32 %v1355_v47, %v1015_v43  ;;  %v1852_v56 = vld [vmem:[%s9019_s5 + $0x2c8] sm:$0xff] }
 0x173   : > { %v1444_v63 = vpop.f32.mrf.mxu1  ;;  %v1160_v39 = vadd.f32 %v9079_v6, %v948_v59  ;;  %v1799_v6 = vld [vmem:[%s9019_s5 + $0x120] sm:$0xff] }
 0x174   : > { %v1544_v36 = vadd.f32 %v1471_v58, %v1131_v48  ;;  %5489 = vrot.lane.b32.xlu0 %v5488_v41, %s5698_s30  ;;  %v1579_v20 = vmax.f32 %v6313_v57, 0.0  ;;  %v6361_v60 = vadd.f32 %v6225_v51, %v1542_v24  ;;  %v9083_v58 = vld [vmem:[#allocation28_spill] sm:$0xff] }
 0x175   : > { %v1525_v42 = vpop.f32.mrf.mxu2  ;;  %v1189_v45 = vadd.f32 %v9082_v32, %v1160_v39  ;;  %v1853_v24 = vld [vmem:[%s9019_s5 + $0x2d0] sm:$0xff]  ;;  %v1847_v39 = vld [vmem:[%s9019_s5 + $0x2a0] sm:$0xff]  ;;  %v1838_v32 = vld [vmem:[%s9019_s5 + $0x258] sm:$0xff] }
 0x176   : > { %v6332_v44 = vadd.f32 %v6260_v54, %v1544_v36  ;;  %v1526_v29 = vadd.f32 %v1525_v42, %v1496_v12  ;;  %1614 = vrot.lane.b32.xlu1 %v1579_v20, %s5698_s30  ;;  %v9081_v12 = vld [vmem:[#allocation21_spill] sm:$0xff] }
 0x177   : > { %v1499_v16 = vpop.f32.mrf.mxu0  ;;  %v777_v1 = vadd.f32 %v9081_v12, %v9080_v15  ;;  %v9085_v36 = vld [vmem:[#allocation25_spill] sm:$0xff]  ;;  %v1844_v15 = vld [vmem:[%s9019_s5 + $0x288] sm:$0xff] }
 0x178   : > { %v1541_v28 = vadd.f32 %v1526_v29, %v1186_v30  ;;  %v1586_v10 = vmax.f32 %v6332_v44, 0.0  ;;  %v951_v40 = vadd.f32 %v9086_v61, %v9085_v36  ;;  %v1793_v12 = vld [vmem:[%s9019_s5 + $0xf0] sm:$0xff]  ;;  %v1898_v36 = vld [vmem:[%s9019_s5 + $0x438] sm:$0xff] }
 0x179   : > { %v1473_v34 = vpop.f32.mrf.mxu3  ;;  %v989_v41 = vadd.f32 %v9083_v58, %v777_v1  ;;  %v1841_v1 = vld [vmem:[%s9019_s5 + $0x270] sm:$0xff]  ;;  %v1835_v58 = vld [vmem:[%s9019_s5 + $0x240] sm:$0xff] }
 0x17a   : > { %v1474_v33 = vadd.f32 %v1473_v34, %v1444_v63  ;;  %v5498_v49 = vpack.i.bf16 %v1586_v10, %v1585_v55  ;;  %v6349_v0 = vadd.f32 %v6298_v38, %v1541_v28  ;;  %v1163_v43 = vadd.f32 %v9088_v31, %v951_v40  ;;  %v1781_v61 = vld [vmem:[%s9019_s5 + $0x90] sm:$0xff]  ;;  %v1826_v31 = vld [vmem:[%s9019_s5 + $0x1f8] sm:$0xff] }
 0x17b   : > { %v1018_v42 = vadd.f32 %v9087_v19, %v989_v41  ;;  %v1901_v41 = vld [vmem:[%s9019_s5 + $0x450] sm:$0xff]  ;;  %v1943_v19 = vld [vmem:[%s9019_s5 + $0x5a0] sm:$0xff] }
 0x17c   : > { %v1548_v5 = vadd.f32 %v1474_v33, %v1134_v26  ;;  %5499 = vrot.lane.b32.xlu2 %v5498_v49, %s5698_s30  ;;  %v1583_v37 = vmax.f32 %v6349_v0, 0.0  ;;  %v1192_v28 = vadd.f32 %v9089_v35, %v1163_v43  ;;  %v1802_v33 = vld [vmem:[%s9019_s5 + $0x138] sm:$0xff]  ;;  %v1829_v40 = vld [vmem:[%s9019_s5 + $0x210] sm:$0xff]  ;;  %v1940_v43 = vld [vmem:[%s9019_s5 + $0x588] sm:$0xff] }
 0x17d   : > { %v1528_v25 = vpop.f32.mrf.mxu2  ;;  %v1546_v13 = vadd.f32 %v1358_v46, %v1018_v42  ;;  %v1850_v49 = vld [vmem:[%s9019_s5 + $0x2b8] sm:$0xff]  ;;  %v1832_v46 = vld [vmem:[%s9019_s5 + $0x228] sm:$0xff]  ;;  %v1895_v42 = vld [vmem:[%s9019_s5 + $0x420] sm:$0xff] }
 0x17e   : > { %v1529_v48 = vadd.f32 %v1528_v25, %v1499_v16  ;;  %1622 = vrot.lane.b32.xlu1 %v1583_v37, %s5698_s30  ;;  %v6367_v23 = vadd.f32 %v6260_v54, %v1548_v5  ;;  %v1584_v54 = vmax.f32 %v6361_v60, 0.0  ;;  %v1805_v16 = vld [vmem:[%s9019_s5 + $0x150] sm:$0xff]  ;;  %v1796_v5 = vld [vmem:[%s9019_s5 + $0x108] sm:$0xff]  ;;  %v1790_v25 = vld [vmem:[%s9019_s5 + $0xd8] sm:$0xff] }
 0x17f   : > { %v1502_v29 = vpop.f32.mrf.mxu0  ;;  %v6396_v59 = vadd.f32 %v6225_v51, %v1546_v13  ;;  %v1808_v51 = vld [vmem:[%s9019_s5 + $0x168] sm:$0xff]  ;;  %v1937_v35 = vld [vmem:[%s9019_s5 + $0x570] sm:$0xff]  ;;  %v1818_v0 = vld [vmem:[%s9019_s5 + $0x1b8] sm:$0xff] }
 0x180   : > { %v1545_v62 = vadd.f32 %v1529_v48, %v1189_v45  ;;  %v1590_v30 = vmax.f32 %v6367_v23, 0.0  ;;  %v5503_v11 = vpack.i.bf16 %v1589_v50, %v1584_v54  ;;  %1961 = vmatpush.msra.mxu1 %v1808_v51  ;;  %v1904_v45 = vld [vmem:[%s9019_s5 + $0x468] sm:$0xff]  ;;  %v1787_v48 = vld [vmem:[%s9019_s5 + $0xc0] sm:$0xff]  ;;  %v1934_v51 = vld [vmem:[%s9019_s5 + $0x558] sm:$0xff] }
 0x181   : > { %v1588_v34 = vmax.f32 %v6396_v59, 0.0  ;;  %2019 = vmatpush.msra.mxu0 %v1904_v45  ;;  %v1892_v13 = vld [vmem:[%s9019_s5 + $0x408] sm:$0xff]  ;;  %v1922_v45 = vld [vmem:[%s9019_s5 + $0x4f8] sm:$0xff]  ;;  %v1821_v57 = vld [vmem:[%s9019_s5 + $0x1d0] sm:$0xff] }
 0x182   : > { %v6378_v47 = vadd.f32 %v6298_v38, %v1545_v62  ;;  %1962 = vmatpush.msra.mxu1 %v1805_v16  ;;  %v1946_v62 = vld [vmem:[%s9019_s5 + $0x5b8] sm:$0xff]  ;;  %v1769_v16 = vld [vmem:[%s9019_s5 + $0x30] sm:$0xff] }
 0x183   : > { %2020 = vmatpush.msra.mxu0 %v1901_v41  ;;  %2050 = vmatpush.msra.mxu2 %v1946_v62  ;;  %v1871_v41 = vld [vmem:[%s9019_s5 + $0x360] sm:$0xff]  ;;  %v1913_v62 = vld [vmem:[%s9019_s5 + $0x4b0] sm:$0xff]  ;;  %v1846_v23 = vld [vmem:[%s9019_s5 + $0x298] sm:$0xff] }
 0x184   : > { %1636 = vrot.lane.b32.xlu2 %v1590_v30, %s5698_s30  ;;  %v1587_v14 = vmax.f32 %v6378_v47, 0.0  ;;  %1963 = vmatpush.msra.mxu1 %v1802_v33  ;;  %v1931_v33 = vld [vmem:[%s9019_s5 + $0x540] sm:$0xff]  ;;  %v1866_v47 = vld [vmem:[%s9019_s5 + $0x338] sm:$0xff] }
 0x185   : > { %v1531_v63 = vpop.f32.mrf.mxu2  ;;  %2021 = vmatpush.msra.mxu0 %v1898_v36  ;;  %2051 = vmatpush.msra.mxu2 %v1943_v19  ;;  %v1865_v36 = vld [vmem:[%s9019_s5 + $0x330] sm:$0xff]  ;;  %v1862_v19 = vld [vmem:[%s9019_s5 + $0x318] sm:$0xff] }
 0x186   : > { %v1532_v17 = vadd.f32 %v1531_v63, %v1502_v29  ;;  %1630 = vrot.lane.b32.xlu0 %v1587_v14, %s5698_s30  ;;  %5504 = vrot.lane.b32.xlu1 %v5503_v11, %s5698_s30  ;;  %v1778_v29 = vld [vmem:[%s9019_s5 + $0x78] sm:$0xff]  ;;  %v1775_v11 = vld [vmem:[%s9019_s5 + $0x60] sm:$0xff] }
 0x187   : > { %1964 = vmatpush.msra.mxu1 %v1799_v6  ;;  %2022 = vmatpush.msra.mxu0 %v1895_v42  ;;  %v1823_v63 = vld [vmem:[%s9019_s5 + $0x1e0] sm:$0xff]  ;;  %v1766_v6 = vld [vmem:[%s9019_s5 + $0x18] sm:$0xff] }
 0x188   : > { %v1549_v22 = vadd.f32 %v1532_v17, %v1192_v28  ;;  %2052 = vmatpush.msra.mxu2 %v1940_v43  ;;  %v1889_v28 = vld [vmem:[%s9019_s5 + $0x3f0] sm:$0xff]  ;;  %v1772_v17 = vld [vmem:[%s9019_s5 + $0x48] sm:$0xff]  ;;  %v1854_v42 = vld [vmem:[%s9019_s5 + $0x2d8] sm:$0xff] }
 0x189   : > { %1965 = vmatpush.msra.mxu1 %v1796_v5  ;;  %2023 = vmatpush.msra.mxu0 %v1892_v13  ;;  %v1928_v5 = vld [vmem:[%s9019_s5 + $0x528] sm:$0xff]  ;;  %v1851_v43 = vld [vmem:[%s9019_s5 + $0x2c0] sm:$0xff] }
 0x18a   : > { %v6399_v2 = vadd.f32 %v6298_v38, %v1549_v22  ;;  %v1856_v38 = vld [vmem:[%s9019_s5 + $0x2e8] sm:$0xff]  ;;  %2053 = vmatpush.msra.mxu2 %v1937_v35  ;;  %v1905_v35 = vld [vmem:[%s9019_s5 + $0x470] sm:$0xff] }
 0x18b   : > { %1990 = vmatpush.msra.mxu3 %v1856_v38  ;;  %1966 = vmatpush.msra.mxu1 %v1793_v12  ;;  %v1820_v22 = vld [vmem:[%s9019_s5 + $0x1c8] sm:$0xff]  ;;  %v1886_v38 = vld [vmem:[%s9019_s5 + $0x3d8] sm:$0xff]  ;;  %v1763_v12 = vld [vmem:[%s9019_s5] sm:$0xff] }
 0x18c   : > { %v1591_v26 = vmax.f32 %v6399_v2, 0.0  ;;  %2024 = vmatpush.msra.mxu0 %v1889_v28  ;;  %2054 = vmatpush.msra.mxu2 %v1934_v51  ;;  %v1809_v28 = vld [vmem:[%s9019_s5 + $0x170] sm:$0xff]  ;;  %v1947_v51 = vld [vmem:[%s9019_s5 + $0x5c0] sm:$0xff] }
 0x18d   : > { %1991 = vmatpush.msra.mxu3 %v1853_v24  ;;  %1967 = vmatpush.msra.mxu1 %v1790_v25  ;;  %v1817_v24 = vld [vmem:[%s9019_s5 + $0x1b0] sm:$0xff] }
 0x18e   : > { %1638 = vrot.lane.b32.xlu0 %v1591_v26, %s5698_s30  ;;  %1632 = vrot.lane.b32.xlu1 %v1588_v34, %s5698_s30  ;;  %v1925_v25 = vld [vmem:[%s9019_s5 + $0x510] sm:$0xff]  ;;  %s454_s30 = sand.u32 1, %s5678_s22  }
 0x18f   : > { %1992 = vmatpush.msra.mxu3 %v1850_v49  ;;  %1968 = vmatpush.msra.mxu1 %v1787_v48  ;;  %v1883_v49 = vld [vmem:[%s9019_s5 + $0x3c0] sm:$0xff]  ;;  %v1874_v48 = vld [vmem:[%s9019_s5 + $0x378] sm:$0xff]  ;;  %s455_s17 = scalar_lea.vmem [#allocation11], %s454_s30  ;;  %s4906_s29 = scalar_lea.sflag [#allocation7], %s454_s30 }
 0x190   : > { %2025 = vmatpush.msra.mxu0 %v1886_v38  ;;  %2055 = vmatpush.msra.mxu2 %v1931_v33  ;;  %v1806_v38 = vld [vmem:[%s9019_s5 + $0x158] sm:$0xff]  ;;  %s4916_s19 = sshll.u32 %s455_s17, 4  ;;  %s4917_s19 = int_to_ptr.vmem [resolvable:$true] %s4916_s19 }
 0x191   : > { %1993 = vmatpush.msra.mxu3 %v1847_v39  ;;  %1969 = vmatpush.msra.mxu1 %v1784_v52  ;;  %v1814_v39 = vld [vmem:[%s9019_s5 + $0x198] sm:$0xff]  ;;  %v1916_v52 = vld [vmem:[%s9019_s5 + $0x4c8] sm:$0xff] }
 0x192   : > { %2026 = vmatpush.msra.mxu0 %v1883_v49  ;;  %2056 = vmatpush.msra.mxu2 %v1928_v5  ;;  %v1842_v49 = vld [vmem:[%s9019_s5 + $0x278] sm:$0xff]  ;;  %v1896_v5 = vld [vmem:[%s9019_s5 + $0x428] sm:$0xff] }
 0x193   : > { %1994 = vmatpush.msra.mxu3 %v1844_v15  ;;  %1970 = vmatpush.msra.mxu1 %v1781_v61  ;;  %v1880_v15 = vld [vmem:[%s9019_s5 + $0x3a8] sm:$0xff]  ;;  %v1857_v61 = vld [vmem:[%s9019_s5 + $0x2f0] sm:$0xff] }
 0x194   : > { %2027 = vmatpush.msra.mxu0 %v1880_v15  ;;  %2057 = vmatpush.msra.mxu2 %v1925_v25 }
 0x195   : > { %1995 = vmatpush.msra.mxu3 %v1841_v1  ;;  %1971 = vmatpush.msra.mxu1 %v1778_v29  ;;  %v1811_v1 = vld [vmem:[%s9019_s5 + $0x180] sm:$0xff] }
 0x196   : > { %2058 = vmatpush.msra.mxu2 %v1922_v45  ;;  %v1907_v29 = vld [vmem:[%s9019_s5 + $0x480] sm:$0xff]  ;;  %v1941_v45 = vld [vmem:[%s9019_s5 + $0x590] sm:$0xff] }
 0x197   : > { %1996 = vmatpush.msra.mxu3 %v1838_v32  ;;  %1972 = vmatpush.msra.mxu1 %v1775_v11  ;;  %v1877_v32 = vld [vmem:[%s9019_s5 + $0x390] sm:$0xff] }
 0x198   : > { %2028 = vmatpush.msra.mxu0 %v1877_v32 }
 0x199   : > { %1997 = vmatpush.msra.mxu3 %v1835_v58  ;;  %1973 = vmatpush.msra.mxu1 %v1772_v17  ;;  %v1919_v58 = vld [vmem:[%s9019_s5 + $0x4e0] sm:$0xff]  ;;  %v1845_v17 = vld [vmem:[%s9019_s5 + $0x290] sm:$0xff] }
 0x19a   : > { %2029 = vmatpush.msra.mxu0 %v1874_v48  ;;  %2059 = vmatpush.msra.mxu2 %v1919_v58  ;;  %v1800_v48 = vld [vmem:[%s9019_s5 + $0x128] sm:$0xff] }
 0x19b   : > { %1998 = vmatpush.msra.mxu3 %v1832_v46  ;;  %1974 = vmatpush.msra.mxu1 %v1769_v16  ;;  %v1868_v46 = vld [vmem:[%s9019_s5 + $0x348] sm:$0xff]  ;;  %v1899_v16 = vld [vmem:[%s9019_s5 + $0x440] sm:$0xff] }
 0x19c   : > { %2030 = vmatpush.msra.mxu0 %v1871_v41  ;;  %2060 = vmatpush.msra.mxu2 %v1916_v52  ;;  %v1836_v58 = vld [vmem:[%s9019_s5 + $0x248] sm:$0xff] }
 0x19d   : > { %1999 = vmatpush.msra.mxu3 %v1829_v40  ;;  %1975 = vmatpush.msra.mxu1 %v1766_v6  ;;  %v1910_v40 = vld [vmem:[%s9019_s5 + $0x498] sm:$0xff]  ;;  %v1944_v6 = vld [vmem:[%s9019_s5 + $0x5a8] sm:$0xff] }
 0x19e   : > { %2031 = vmatpush.msra.mxu0 %v1868_v46  ;;  %2061 = vmatpush.msra.mxu2 %v1913_v62  ;;  %v1893_v46 = vld [vmem:[%s9019_s5 + $0x410] sm:$0xff]  ;;  %v1938_v62 = vld [vmem:[%s9019_s5 + $0x578] sm:$0xff] }
 0x19f   : > { %2000 = vmatpush.msra.mxu3 %v1826_v31  ;;  %1976 = vmatpush.msra.mxu1 %v1763_v12  ;;  %v1859_v31 = vld [vmem:[%s9019_s5 + $0x300] sm:$0xff] }
 0x1a0   : > { %2032 = vmatpush.msra.mxu0 %v1865_v36  ;;  %2062 = vmatpush.msra.mxu2 %v1910_v40  ;;  %v1839_v12 = vld [vmem:[%s9019_s5 + $0x260] sm:$0xff]  ;;  %v1797_v36 = vld [vmem:[%s9019_s5 + $0x110] sm:$0xff] }
 0x1a1   : > { %2001 = vmatpush.msra.mxu3 %v1823_v63  ;;  %v1848_v63 = vld [vmem:[%s9019_s5 + $0x2a8] sm:$0xff]  ;;  %2077 = vmatpush.msrb.mxu1 %v1809_v28 }
 0x1a2   : > { %2033 = vmatpush.msra.mxu0 %v1862_v19  ;;  %2063 = vmatpush.msra.mxu2 %v1907_v29  ;;  %v1833_v29 = vld [vmem:[%s9019_s5 + $0x230] sm:$0xff] }
 0x1a3   : > { %2002 = vmatpush.msra.mxu3 %v1820_v22  ;;  %v1902_v22 = vld [vmem:[%s9019_s5 + $0x458] sm:$0xff]  ;;  %2078 = vmatpush.msrb.mxu1 %v1806_v38 }
 0x1a4   : > { %2034 = vmatpush.msra.mxu0 %v1859_v31  ;;  %2166 = vmatpush.msrb.mxu2 %v1947_v51  ;;  %v1890_v31 = vld [vmem:[%s9019_s5 + $0x3f8] sm:$0xff] }
 0x1a5   : > { %2003 = vmatpush.msra.mxu3 %v1817_v24 }
 0x1a6   : > { %2135 = vmatpush.msrb.mxu0 %v1905_v35  ;;  %2167 = vmatpush.msrb.mxu2 %v1944_v6 }
 0x1a7   : > { %2004 = vmatpush.msra.mxu3 %v1814_v39  ;;  %v1803_v39 = vld [vmem:[%s9019_s5 + $0x140] sm:$0xff] }
 0x1a8   : > { %2136 = vmatpush.msrb.mxu0 %v1902_v22  ;;  %2079 = vmatpush.msrb.mxu1 %v1803_v39  ;;  %v1794_v22 = vld [vmem:[%s9019_s5 + $0xf8] sm:$0xff]  ;;  %v1932_v39 = vld [vmem:[%s9019_s5 + $0x548] sm:$0xff] }
 0x1a9   : > { %2005 = vmatpush.msra.mxu3 %v1811_v1  ;;  %2168 = vmatpush.msrb.mxu2 %v1941_v45 }
 0x1aa   : > { %2137 = vmatpush.msrb.mxu0 %v1899_v16  ;;  %2080 = vmatpush.msrb.mxu1 %v1800_v48  ;;  %v9092_v16 = vld [vmem:[#allocation37_spill] sm:$0xff] }
 0x1ab   : > { %2106 = vmatpush.msrb.mxu3 %v1857_v61  ;;  %2169 = vmatpush.msrb.mxu2 %v1938_v62  ;;  %v1929_v48 = vld [vmem:[%s9019_s5 + $0x530] sm:$0xff] }
 0x1ac   : > { %2138 = vmatpush.msrb.mxu0 %v1896_v5  ;;  %2081 = vmatpush.msrb.mxu1 %v1797_v36  ;;  %v1791_v5 = vld [vmem:[%s9019_s5 + $0xe0] sm:$0xff]  ;;  %v1881_v62 = vld [vmem:[%s9019_s5 + $0x3b0] sm:$0xff] }
 0x1ad   : > { %2107 = vmatpush.msrb.mxu3 %v1854_v42 }
 0x1ae   : > { %v6604_v13 = vpop.permute.xlu2 %5494  ;;  %2139 = vmatpush.msrb.mxu0 %v1893_v46  ;;  %2082 = vmatpush.msrb.mxu1 %v1794_v22  ;;  %v1824_v46 = vld [vmem:[%s9019_s5 + $0x1e8] sm:$0xff] }
 0x1af   : > { %2108 = vmatpush.msrb.mxu3 %v1851_v43  ;;  %v5496_v15 = vunpack.i.l.bf16 %v6604_v13  ;;  %v5497_v41 = vunpack.i.h.bf16 %v6604_v13  ;;  %v9090_v43 = vld [vmem:[#allocation36_spill] sm:$0xff] }
 0x1b0   : > { %v9091_v13 = vmax.f32 %v9090_v43, 0.0  ;;  %2140 = vmatpush.msrb.mxu0 %v1890_v31  ;;  %2083 = vmatpush.msrb.mxu1 %v1791_v5 }
 0x1b1   : > { %2109 = vmatpush.msrb.mxu3 %v1848_v63 }
 0x1b3   : > { %2110 = vmatpush.msrb.mxu3 %v1845_v17  ;;  %v1935_v17 = vld [vmem:[%s9019_s5 + $0x560] sm:$0xff] }
 0x1b4   : > { %2170 = vmatpush.msrb.mxu2 %v1935_v17 }
 0x1b5   : > { %2111 = vmatpush.msrb.mxu3 %v1842_v49 }
 0x1b6   : > { %2171 = vmatpush.msrb.mxu2 %v1932_v39 }
 0x1b7   : > { %2112 = vmatpush.msrb.mxu3 %v1839_v12 }
 0x1b8   : > { %2172 = vmatpush.msrb.mxu2 %v1929_v48  ;;  %v1773_v48 = vld [vmem:[%s9019_s5 + $0x50] sm:$0xff] }
 0x1b9   : > { %2113 = vmatpush.msrb.mxu3 %v1836_v58  ;;  %v1788_v58 = vld [vmem:[%s9019_s5 + $0xc8] sm:$0xff] }
 0x1ba   : > { %2084 = vmatpush.msrb.mxu1 %v1788_v58  ;;  %2173 = vmatpush.msrb.mxu2 %v1926_v7 }
 0x1bb   : > { %2114 = vmatpush.msrb.mxu3 %v1833_v29 }
 0x1bd   : > { %2115 = vmatpush.msrb.mxu3 %v1830_v8  ;;  %v1815_v8 = vld [vmem:[%s9019_s5 + $0x1a0] sm:$0xff] }
 0x1bf   : > { %2116 = vmatpush.msrb.mxu3 %v1827_v53 }
 0x1c1   : > { %2117 = vmatpush.msrb.mxu3 %v1824_v46 }
 0x1c3   : > { %2118 = vmatpush.msrb.mxu3 %v1821_v57 }
 0x1c5   : > { %2119 = vmatpush.msrb.mxu3 %v1818_v0  ;;  %v1908_v0 = vld [vmem:[%s9019_s5 + $0x488] sm:$0xff] }
 0x1c7   : > { %2120 = vmatpush.msrb.mxu3 %v1815_v8 }
 0x1d6   : > { %v6650_v1 = vpop.permute.xlu2 %5499 }
 0x1d7   : > { %v5502_v61 = vunpack.i.h.bf16 %v6650_v1  ;;  %v5501_v40 = vunpack.i.l.bf16 %v6650_v1 }
 0x1de   : > { %v6606_v11 = vpop.permute.xlu0 %5484 }
 0x1df   : > { %v5487_v24 = vunpack.i.h.bf16 %v6606_v11  ;;  %v5486_v33 = vunpack.i.l.bf16 %v6606_v11 }
 0x1e1   : > { %v1641_v25 = vsel %vm1640_vm7, %v5496_v15, %v5486_v33  ;;  %v1642_v32 = vsel %vm1640_vm7, %v5486_v33, %v5487_v24  ;;  %v9093_v33 = vmax.f32 %v9092_v16, 0.0  ;;  %v1648_v15 = vsel %vm1640_vm7, %v5501_v40, %v5502_v61 }
 0x1e2   : > { %v1669_v63 = vmax.f32 %v9091_v13, %v1641_v25  ;;  %v1670_v35 = vmax.f32 %v1577_v21, %v1642_v32  ;;  %v1887_v21 = vld [vmem:[%s9019_s5 + $0x3e0] sm:$0xff]  ;;  %v6751_v36 = vmax.f32 %v1585_v55, %v1648_v15  ;;  %v1785_v55 = vld [vmem:[%s9019_s5 + $0xb0] sm:$0xff] }
 0x1e3   : > { %2141 = vmatpush.msrb.mxu0 %v1887_v21  ;;  %2085 = vmatpush.msrb.mxu1 %v1785_v55  ;;  %v1872_v21 = vld [vmem:[%s9019_s5 + $0x368] sm:$0xff] }
 0x1e4   : > { %v1701_v12 = vrot.slane %v1669_v63, 1  ;;  %v1704_v25 = vrot.slane %v1670_v35, 1 }
 0x1e6   : > { %v6666_v52 = vpop.permute.xlu0 %5489 }
 0x1e7   : > { %v5492_v19 = vunpack.i.h.bf16 %v6666_v52  ;;  %v5491_v42 = vunpack.i.l.bf16 %v6666_v52 }
 0x1e8   : > { %v1615_v28 = vpop.permute.xlu1 %1614 }
 0x1e9   : > { %v1644_v51 = vsel %vm1640_vm7, %v5497_v41, %v5491_v42  ;;  %v1645_v38 = vsel %vm1640_vm7, %v5491_v42, %v5492_v19  ;;  %v1643_v41 = vsel %vm1640_vm7, %v5487_v24, %v1615_v28  ;;  %v1672_v42 = vmax.f32 %v1579_v20, %v1615_v28  ;;  %v1878_v20 = vld [vmem:[%s9019_s5 + $0x398] sm:$0xff] }
 0x1ea   : > { %v6709_v49 = vmax.f32 %v9093_v33, %v1644_v51  ;;  %v6713_v6 = vmax.f32 %v1581_v3, %v1645_v38  ;;  %v1884_v3 = vld [vmem:[%s9019_s5 + $0x3c8] sm:$0xff]  ;;  %v1671_v43 = vmax.f32 %v1578_v4, %v1643_v41  ;;  %v1715_v28 = vrot.slane %v6751_v36, 1 }
 0x1eb   : > { %2142 = vmatpush.msrb.mxu0 %v1884_v3  ;;  %v1710_v52 = vrot.slane %v1672_v42, 1  ;;  %v1776_v33 = vld [vmem:[%s9019_s5 + $0x68] sm:$0xff]  ;;  %v1917_v3 = vld [vmem:[%s9019_s5 + $0x4d0] sm:$0xff] }
 0x1ec   : > { %v1702_v32 = vrot.slane %v6709_v49, 1  ;;  %v1705_v45 = vrot.slane %v6713_v6, 1  ;;  %v1707_v22 = vrot.slane %v1671_v43, 1 }
 0x1ed   : > { %2143 = vmatpush.msrb.mxu0 %v1881_v62 }
 0x1ee   : > { %v1703_v11 = vsel %vm690_vm4, %v1701_v12, %v1702_v32  ;;  %v1706_v24 = vsel %vm690_vm4, %v1704_v25, %v1705_v45  ;;  %v1716_v38 = vsel %vm690_vm4, %v1705_v45, %v1715_v28  ;;  %v1812_v12 = vld [vmem:[%s9019_s5 + $0x188] sm:$0xff] }
 0x1ef   : > { %v6759_v29 = vmax.f32 %v1669_v63, %v1703_v11  ;;  %v6761_v31 = vmax.f32 %v1670_v35, %v1706_v24  ;;  %v1923_v63 = vld [vmem:[%s9019_s5 + $0x500] sm:$0xff]  ;;  %v1782_v35 = vld [vmem:[%s9019_s5 + $0x98] sm:$0xff]  ;;  %2144 = vmatpush.msrb.mxu0 %v1878_v20  ;;  %v6830_v53 = vmax.f32 %v6713_v6, %v1716_v38  ;;  %v1869_v6 = vld [vmem:[%s9019_s5 + $0x350] sm:$0xff]  ;;  %2121 = vmatpush.msrb.mxu3 %v1812_v12 }
 0x1f0   : > { %v1623_v13 = vpop.permute.xlu1 %1622  ;;  %2174 = vmatpush.msrb.mxu2 %v1923_v63  ;;  %2086 = vmatpush.msrb.mxu1 %v1782_v35  ;;  %v1914_v11 = vld [vmem:[%s9019_s5 + $0x4b8] sm:$0xff]  ;;  %v1767_v20 = vld [vmem:[%s9019_s5 + $0x20] sm:$0xff] }
 0x1f1   : > { %1977 = vmatmul.f32.vlgmr.msra.gmra.mxu1 %v6759_v29  ;;  %2006 = vmatmul.f32.vlgmr.msra.gmra.mxu3 %v6761_v31  ;;  %v1646_v18 = vsel %vm1640_vm7, %v5492_v19, %v1623_v13  ;;  %v6784_v4 = vmax.f32 %v1583_v37, %v1623_v13  ;;  %v1875_v37 = vld [vmem:[%s9019_s5 + $0x380] sm:$0xff]  ;;  %v1858_v24 = vld [vmem:[%s9019_s5 + $0x2f8] sm:$0xff] }
 0x1f2   : > { %v6795_v17 = vmax.f32 %v1582_v9, %v1646_v18  ;;  %v1779_v9 = vld [vmem:[%s9019_s5 + $0x80] sm:$0xff]  ;;  %2145 = vmatpush.msrb.mxu0 %v1875_v37  ;;  %2175 = vmatpush.msrb.mxu2 %v1920_v27  ;;  %v1860_v37 = vld [vmem:[%s9019_s5 + $0x308] sm:$0xff]  ;;  %v1849_v27 = vld [vmem:[%s9019_s5 + $0x2b0] sm:$0xff] }
 0x1f3   : > { %v1711_v19 = vrot.slane %v6784_v4, 1  ;;  %2087 = vmatpush.msrb.mxu1 %v1779_v9  ;;  %2222 = vmatpush.msra.mxu3 %v1858_v24  ;;  %v1942_v24 = vld [vmem:[%s9019_s5 + $0x598] sm:$0xff] }
 0x1f4   : > { %v1708_v51 = vrot.slane %v6795_v17, 1  ;;  %2146 = vmatpush.msrb.mxu0 %v1872_v21  ;;  %2176 = vmatpush.msrb.mxu2 %v1917_v3 }
 0x1f5   : > { %v1712_v16 = vsel %vm690_vm4, %v1710_v52, %v1711_v19  ;;  %2088 = vmatpush.msrb.mxu1 %v1776_v33  ;;  %v1807_v33 = vld [vmem:[%s9019_s5 + $0x160] sm:$0xff] }
 0x1f6   : > { %v1709_v39 = vsel %vm690_vm4, %v1707_v22, %v1708_v51  ;;  %v6825_v5 = vmax.f32 %v1672_v42, %v1712_v16  ;;  %v1637_v42 = vpop.permute.xlu2 %1636  ;;  %2147 = vmatpush.msrb.mxu0 %v1869_v6  ;;  %2177 = vmatpush.msrb.mxu2 %v1914_v11  ;;  %v1900_v6 = vld [vmem:[%s9019_s5 + $0x448] sm:$0xff]  ;;  %v1897_v11 = vld [vmem:[%s9019_s5 + $0x430] sm:$0xff] }
 0x1f7   : > { %v6827_v15 = vmax.f32 %v1671_v43, %v1709_v39  ;;  %2089 = vmatpush.msrb.mxu1 %v1773_v48  ;;  %v1855_v43 = vld [vmem:[%s9019_s5 + $0x2e0] sm:$0xff]  ;;  %v1945_v48 = vld [vmem:[%s9019_s5 + $0x5b0] sm:$0xff] }
 0x1f8   : > { %5064 = vmatmul.msk.f32.vlgmr.msra.gmra.mxu2 %vm1640_vm7, %v6825_v5  ;;  %v1631_v25 = vpop.permute.xlu0 %1630  ;;  %v5505_v45 = vpop.permute.xlu1 %5504  ;;  %2148 = vmatpush.msrb.mxu0 %v1866_v47  ;;  %v1894_v47 = vld [vmem:[%s9019_s5 + $0x418] sm:$0xff] }
 0x1f9   : > { %2009 = vmatmul.f32.gmra.mxu3 %v6830_v53  ;;  %v1649_v58 = vsel %vm1640_vm7, %v5502_v61, %v1631_v25  ;;  %v6852_v41 = vmax.f32 %v1587_v14, %v1631_v25  ;;  %v5507_v46 = vunpack.i.h.bf16 %v5505_v45  ;;  %v5506_v62 = vunpack.i.l.bf16 %v5505_v45  ;;  %2035 = vmatmul.f32.vlgmr.msra.gmra.mxu0 %v6827_v15  ;;  %v1770_v14 = vld [vmem:[%s9019_s5 + $0x38] sm:$0xff]  ;;  %v1843_v25 = vld [vmem:[%s9019_s5 + $0x280] sm:$0xff] }
 0x1fa   : > { %v6863_v61 = vmax.f32 %v1586_v10, %v1649_v58  ;;  %v1911_v10 = vld [vmem:[%s9019_s5 + $0x4a0] sm:$0xff]  ;;  %2090 = vmatpush.msrb.mxu1 %v1770_v14  ;;  %2223 = vmatpush.msra.mxu3 %v1855_v43  ;;  %v1840_v58 = vld [vmem:[%s9019_s5 + $0x268] sm:$0xff] }
 0x1fb   : > { %v1719_v7 = vrot.slane %v6852_v41, 1  ;;  %v1647_v55 = vsel %vm1640_vm7, %v5506_v62, %v5501_v40  ;;  %v1651_v44 = vsel %vm1640_vm7, %v5507_v46, %v1637_v42  ;;  %v1863_v40 = vld [vmem:[%s9019_s5 + $0x320] sm:$0xff]  ;;  %2178 = vmatpush.msrb.mxu2 %v1911_v10 }
 0x1fc   : > { %v1717_v13 = vrot.slane %v6863_v61, 1  ;;  %v6885_v57 = vmax.f32 %v1584_v54, %v1647_v55  ;;  %v6889_v1 = vmax.f32 %v1589_v50, %v1651_v44  ;;  %2149 = vmatpush.msrb.mxu0 %v1863_v40  ;;  %2091 = vmatpush.msrb.mxu1 %v1767_v20  ;;  %v1939_v14 = vld [vmem:[%s9019_s5 + $0x580] sm:$0xff]  ;;  %v1834_v44 = vld [vmem:[%s9019_s5 + $0x238] sm:$0xff]  ;;  %v1888_v20 = vld [vmem:[%s9019_s5 + $0x3e8] sm:$0xff] }
 0x1fd   : > { %v1720_v18 = vsel %vm690_vm4, %v1711_v19, %v1719_v7  ;;  %2224 = vmatpush.msra.mxu3 %v1852_v56  ;;  %2179 = vmatpush.msrb.mxu2 %v1908_v0  ;;  %v1891_v43 = vld [vmem:[%s9019_s5 + $0x400] sm:$0xff]  ;;  %v1792_v56 = vld [vmem:[%s9019_s5 + $0xe8] sm:$0xff]  ;;  %v1789_v0 = vld [vmem:[%s9019_s5 + $0xd0] sm:$0xff] }
 0x1fe   : > { %v1713_v60 = vrot.slane %v6885_v57, 1  ;;  %v1723_v50 = vrot.slane %v6889_v1, 1  ;;  %v6904_v54 = vmax.f32 %v6784_v4, %v1720_v18  ;;  %v1718_v63 = vsel %vm690_vm4, %v1708_v51, %v1717_v13  ;;  %2150 = vmatpush.msrb.mxu0 %v1860_v37  ;;  %v1795_v40 = vld [vmem:[%s9019_s5 + $0x100] sm:$0xff]  ;;  %v1933_v18 = vld [vmem:[%s9019_s5 + $0x550] sm:$0xff] }
 0x1ff   : > { %v6908_v35 = vmax.f32 %v6795_v17, %v1718_v63  ;;  %2225 = vmatpush.msra.mxu3 %v1849_v27  ;;  %v1930_v63 = vld [vmem:[%s9019_s5 + $0x538] sm:$0xff]  ;;  %v1825_v37 = vld [vmem:[%s9019_s5 + $0x1f0] sm:$0xff]  ;;  %v1879_v27 = vld [vmem:[%s9019_s5 + $0x3a0] sm:$0xff] }
 0x200   : > { %5065 = vmatmul.msk.f32.gmra.mxu2 %vm1640_vm7, %v6904_v54  ;;  %v1639_v4 = vpop.permute.xlu0 %1638  ;;  %v1633_v52 = vpop.permute.xlu1 %1632  ;;  %v1714_v17 = vsel %vm690_vm4, %v1702_v32, %v1713_v60  ;;  %v1724_v19 = vsel %vm690_vm4, %v1715_v28, %v1723_v50  ;;  %v1764_v28 = vld [vmem:[%s9019_s5 + $0x8] sm:$0xff]  ;;  %v6999_v62 = vmax.f32 %v6889_v1, %v1723_v50  ;;  %v1885_v50 = vld [vmem:[%s9019_s5 + $0x3d0] sm:$0xff] }
 0x201   : > { %v1652_v9 = vsel %vm1640_vm7, %v1637_v42, %v1639_v4  ;;  %v1684_v22 = vmax.f32 %v1591_v26, %v1639_v4  ;;  %v1650_v51 = vsel %vm1640_vm7, %v1633_v52, %v5507_v46  ;;  %2038 = vmatmul.f32.gmra.mxu0 %v6908_v35  ;;  %v6933_v32 = vmax.f32 %v6709_v49, %v1714_v17  ;;  %v1906_v26 = vld [vmem:[%s9019_s5 + $0x478] sm:$0xff]  ;;  %v1804_v46 = vld [vmem:[%s9019_s5 + $0x148] sm:$0xff]  ;;  %v1801_v42 = vld [vmem:[%s9019_s5 + $0x130] sm:$0xff] }
 0x202   : > { %v1683_v38 = vmax.f32 %v1590_v30, %v1652_v9  ;;  %v6942_v8 = vmax.f32 %v1588_v34, %v1650_v51  ;;  %v6945_v2 = vmax.f32 %v6751_v36, %v1724_v19  ;;  %v1810_v49 = vld [vmem:[%s9019_s5 + $0x178] sm:$0xff]  ;;  %2092 = vmatpush.msrb.mxu1 %v1764_v28  ;;  %v1903_v34 = vld [vmem:[%s9019_s5 + $0x460] sm:$0xff]  ;;  %v1948_v36 = vld [vmem:[%s9019_s5 + $0x5c8] sm:$0xff]  ;;  %2251 = vmatpush.msra.mxu0 %v1906_v26 }
 0x203   : > { %v1727_v21 = vrot.slane %v1684_v22, 1  ;;  %1980 = vmatmul.f32.gmra.mxu1 %v6933_v32  ;;  %2226 = vmatpush.msra.mxu3 %v1846_v23  ;;  %v1882_v4 = vld [vmem:[%s9019_s5 + $0x3b8] sm:$0xff]  ;;  %v1927_v52 = vld [vmem:[%s9019_s5 + $0x520] sm:$0xff]  ;;  %v1924_v9 = vld [vmem:[%s9019_s5 + $0x508] sm:$0xff] }
 0x204   : > { %v1725_v30 = vrot.slane %v1683_v38, 1  ;;  %v1721_v59 = vrot.slane %v6942_v8, 1  ;;  %2012 = vmatmul.f32.gmra.mxu3 %v6945_v2  ;;  %2193 = vmatpush.msra.mxu1 %v1810_v49  ;;  %v1822_v17 = vld [vmem:[%s9019_s5 + $0x1d8] sm:$0xff]  ;;  %v1819_v51 = vld [vmem:[%s9019_s5 + $0x1c0] sm:$0xff]  ;;  %v1876_v28 = vld [vmem:[%s9019_s5 + $0x388] sm:$0xff] }
 0x205   : > { %v1728_v16 = vsel %vm690_vm4, %v1719_v7, %v1727_v21  ;;  %2252 = vmatpush.msra.mxu0 %v1903_v34  ;;  %2282 = vmatpush.msra.mxu2 %v1948_v36  ;;  %v1798_v7 = vld [vmem:[%s9019_s5 + $0x118] sm:$0xff]  ;;  %v7024_v55 = vmax.f32 %v1684_v22, %v1727_v21  ;;  %v1783_v22 = vld [vmem:[%s9019_s5 + $0xa0] sm:$0xff]  ;;  %v1816_v26 = vld [vmem:[%s9019_s5 + $0x1a8] sm:$0xff] }
 0x206   : > { %v6970_v39 = vmax.f32 %v6852_v41, %v1728_v16  ;;  %v1726_v3 = vsel %vm690_vm4, %v1717_v13, %v1725_v30  ;;  %v1722_v12 = vsel %vm690_vm4, %v1713_v60, %v1721_v59  ;;  %2194 = vmatpush.msra.mxu1 %v1807_v33  ;;  %2227 = vmatpush.msra.mxu3 %v1843_v25  ;;  %v1936_v13 = vld [vmem:[%s9019_s5 + $0x568] sm:$0xff]  ;;  %v1786_v19 = vld [vmem:[%s9019_s5 + $0xb8] sm:$0xff]  ;;  %v1873_v49 = vld [vmem:[%s9019_s5 + $0x370] sm:$0xff] }
 0x207   : > { %v6978_v45 = vmax.f32 %v6863_v61, %v1726_v3  ;;  %v6993_v41 = vmax.f32 %v6885_v57, %v1722_v12  ;;  %2253 = vmatpush.msra.mxu0 %v1900_v6  ;;  %2283 = vmatpush.msra.mxu2 %v1945_v48  ;;  %v1837_v61 = vld [vmem:[%s9019_s5 + $0x250] sm:$0xff]  ;;  %v7029_v10 = vmax.f32 %v1683_v38, %v1725_v30  ;;  %v1831_v57 = vld [vmem:[%s9019_s5 + $0x220] sm:$0xff]  ;;  %v1828_v60 = vld [vmem:[%s9019_s5 + $0x208] sm:$0xff] }
 0x208   : > { %5066 = vmatmul.msk.f32.gmra.mxu2 %vm1640_vm7, %v6970_v39  ;;  %2228 = vmatpush.msra.mxu3 %v1840_v58  ;;  %v7044_v1 = vmax.f32 %v6942_v8, %v1721_v59  ;;  %v1921_v38 = vld [vmem:[%s9019_s5 + $0x4f0] sm:$0xff]  ;;  %v1780_v8 = vld [vmem:[%s9019_s5 + $0x88] sm:$0xff]  ;;  %v1918_v21 = vld [vmem:[%s9019_s5 + $0x4d8] sm:$0xff] }
 0x209   : > { %2041 = vmatmul.f32.gmra.mxu0 %v6978_v45  ;;  %2195 = vmatpush.msra.mxu1 %v1804_v46  ;;  %v1813_v23 = vld [vmem:[%s9019_s5 + $0x190] sm:$0xff]  ;;  %v1870_v59 = vld [vmem:[%s9019_s5 + $0x358] sm:$0xff]  ;;  %v1915_v34 = vld [vmem:[%s9019_s5 + $0x4c0] sm:$0xff] }
 0x20a   : > { %2254 = vmatpush.msra.mxu0 %v1897_v11  ;;  %2284 = vmatpush.msra.mxu2 %v1942_v24  ;;  %v1777_v30 = vld [vmem:[%s9019_s5 + $0x70] sm:$0xff]  ;;  %v1774_v36 = vld [vmem:[%s9019_s5 + $0x58] sm:$0xff]  ;;  %v1867_v16 = vld [vmem:[%s9019_s5 + $0x340] sm:$0xff] }
 0x20b   : > { %1983 = vmatmul.f32.gmra.mxu1 %v6993_v41  ;;  %2229 = vmatpush.msra.mxu3 %v1837_v61  ;;  %v1912_v33 = vld [vmem:[%s9019_s5 + $0x4a8] sm:$0xff]  ;;  %v1771_v3 = vld [vmem:[%s9019_s5 + $0x40] sm:$0xff]  ;;  %v1909_v12 = vld [vmem:[%s9019_s5 + $0x490] sm:$0xff] }
 0x20c   : > { %2015 = vmatmul.f32.gmra.mxu3 %v6999_v62  ;;  %2196 = vmatpush.msra.mxu1 %v1801_v42  ;;  %v1864_v25 = vld [vmem:[%s9019_s5 + $0x328] sm:$0xff]  ;;  %v1861_v48 = vld [vmem:[%s9019_s5 + $0x310] sm:$0xff] }
 0x20d   : > { %2255 = vmatpush.msra.mxu0 %v1894_v47  ;;  %2285 = vmatpush.msra.mxu2 %v1939_v14  ;;  %v1768_v6 = vld [vmem:[%s9019_s5 + $0x28] sm:$0xff]  ;;  %v1765_v58 = vld [vmem:[%s9019_s5 + $0x10] sm:$0xff] }
 0x20e   : > { %2197 = vmatpush.msra.mxu1 %v1798_v7  ;;  %2230 = vmatpush.msra.mxu3 %v1834_v44 }
 0x20f   : > { %2256 = vmatpush.msra.mxu0 %v1891_v43  ;;  %2286 = vmatpush.msra.mxu2 %v1936_v13 }
 0x210   : > { %5067 = vmatmul.msk.f32.gmra.mxu2 %vm1640_vm7, %v7024_v55  ;;  %2231 = vmatpush.msra.mxu3 %v1831_v57 }
 0x211   : > { %2044 = vmatmul.f32.gmra.mxu0 %v7029_v10  ;;  %2198 = vmatpush.msra.mxu1 %v1795_v40 }
 0x212   : > { %2257 = vmatpush.msra.mxu0 %v1888_v20  ;;  %2287 = vmatpush.msra.mxu2 %v1933_v18 }
 0x213   : > { %1986 = vmatmul.f32.gmra.mxu1 %v7044_v1  ;;  %2232 = vmatpush.msra.mxu3 %v1828_v60  ;;  %v7199_v60 = vld [vmem:[%s9020_s6] sm:$0xff] }
 0x214   : > { %2122 = vmatmul.f32.vlgmr.msrb.gmra.mxu3 %v6761_v31  ;;  %2199 = vmatpush.msra.mxu1 %v1792_v56 }
 0x215   : > { %2258 = vmatpush.msra.mxu0 %v1885_v50  ;;  %2288 = vmatpush.msra.mxu2 %v1930_v63 }
 0x216   : > { %2200 = vmatpush.msra.mxu1 %v1789_v0  ;;  %2233 = vmatpush.msra.mxu3 %v1825_v37 }
 0x217   : > { %2259 = vmatpush.msra.mxu0 %v1882_v4  ;;  %2289 = vmatpush.msra.mxu2 %v1927_v52  ;;  %v7206_v4 = vld [vmem:[%s9020_s6 + $0x8] sm:$0xff] }
 0x218   : > { %5068 = vmatmul.msk.f32.vlgmr.msrb.gmra.mxu2 %vm1640_vm7, %v6825_v5  ;;  %2234 = vmatpush.msra.mxu3 %v1822_v17 }
 0x219   : > { %2151 = vmatmul.f32.vlgmr.msrb.gmra.mxu0 %v6827_v15  ;;  %2201 = vmatpush.msra.mxu1 %v1786_v19 }
 0x21a   : > { %2260 = vmatpush.msra.mxu0 %v1879_v27  ;;  %2290 = vmatpush.msra.mxu2 %v1924_v9 }
 0x21b   : > { %2093 = vmatmul.f32.vlgmr.msrb.gmra.mxu1 %v6759_v29  ;;  %2235 = vmatpush.msra.mxu3 %v1819_v51 }
 0x21c   : > { %2125 = vmatmul.f32.gmra.mxu3 %v6830_v53  ;;  %2202 = vmatpush.msra.mxu1 %v1783_v22 }
 0x21d   : > { %2261 = vmatpush.msra.mxu0 %v1876_v28  ;;  %2291 = vmatpush.msra.mxu2 %v1921_v38 }
 0x21e   : > { %2203 = vmatpush.msra.mxu1 %v1780_v8  ;;  %2236 = vmatpush.msra.mxu3 %v1816_v26 }
 0x21f   : > { %2262 = vmatpush.msra.mxu0 %v1873_v49  ;;  %2292 = vmatpush.msra.mxu2 %v1918_v21 }
 0x220   : > { %5069 = vmatmul.msk.f32.gmra.mxu2 %vm1640_vm7, %v6904_v54  ;;  %2237 = vmatpush.msra.mxu3 %v1813_v23 }
 0x221   : > { %2154 = vmatmul.f32.gmra.mxu0 %v6908_v35  ;;  %2204 = vmatpush.msra.mxu1 %v1777_v30 }
 0x222   : > { %2263 = vmatpush.msra.mxu0 %v1870_v59  ;;  %2293 = vmatpush.msra.mxu2 %v1915_v34 }
 0x223   : > { %2096 = vmatmul.f32.gmra.mxu1 %v6933_v32 }
 0x224   : > { %2128 = vmatmul.f32.gmra.mxu3 %v6945_v2  ;;  %2205 = vmatpush.msra.mxu1 %v1774_v36 }
 0x225   : > { %2264 = vmatpush.msra.mxu0 %v1867_v16  ;;  %2294 = vmatpush.msra.mxu2 %v1912_v33 }
 0x226   : > { %2206 = vmatpush.msra.mxu1 %v1771_v3 }
 0x227   : > { %2295 = vmatpush.msra.mxu2 %v1909_v12  ;;  %2265 = vmatpush.msra.mxu0 %v1864_v25 }
 0x228   : > { %5070 = vmatmul.msk.f32.gmra.mxu2 %vm1640_vm7, %v6970_v39  ;;  %2207 = vmatpush.msra.mxu1 %v1768_v6 }
 0x229   : > { %2157 = vmatmul.f32.gmra.mxu0 %v6978_v45 }
 0x22a   : > { %2266 = vmatpush.msra.mxu0 %v1861_v48  ;;  %2208 = vmatpush.msra.mxu1 %v1765_v58 }
 0x22b   : > { %2099 = vmatmul.f32.gmra.mxu1 %v6993_v41 }
 0x22c   : > { %2131 = vmatmul.f32.gmra.mxu3 %v6999_v62 }
 0x230   : > { %5071 = vmatmul.msk.f32.gmra.mxu2 %vm1640_vm7, %v7024_v55 }
 0x231   : > { %2160 = vmatmul.f32.gmra.mxu0 %v7029_v10 }
 0x233   : > { %2102 = vmatmul.f32.gmra.mxu1 %v7044_v1 }
 0x234   : > { %2238 = vmatmul.f32.vlgmr.msra.gmra.mxu3 %v6761_v31 }
 0x238   : > { %5072 = vmatmul.msk.f32.vlgmr.msra.gmra.mxu2 %vm1640_vm7, %v6825_v5 }
 0x239   : > { %2267 = vmatmul.f32.vlgmr.msra.gmra.mxu0 %v6827_v15 }
 0x23b   : > { %2209 = vmatmul.f32.vlgmr.msra.gmra.mxu1 %v6759_v29 }
 0x23c   : > { %2241 = vmatmul.f32.gmra.mxu3 %v6830_v53 }
 0x240   : > { %5073 = vmatmul.msk.f32.gmra.mxu2 %vm1640_vm7, %v6904_v54 }
 0x241   : > { %2270 = vmatmul.f32.gmra.mxu0 %v6908_v35 }
 0x243   : > { %2212 = vmatmul.f32.gmra.mxu1 %v6933_v32 }
 0x244   : > { %2244 = vmatmul.f32.gmra.mxu3 %v6945_v2 }
 0x248   : > { %5074 = vmatmul.msk.f32.gmra.mxu2 %vm1640_vm7, %v6970_v39 }
 0x249   : > { %2273 = vmatmul.f32.gmra.mxu0 %v6978_v45 }
 0x24b   : > { %2215 = vmatmul.f32.gmra.mxu1 %v6993_v41 }
 0x24c   : > { %2247 = vmatmul.f32.gmra.mxu3 %v6999_v62 }
 0x250   : > { %5075 = vmatmul.msk.f32.gmra.mxu2 %vm1640_vm7, %v7024_v55 }
 0x251   : > { %2276 = vmatmul.f32.gmra.mxu0 %v7029_v10 }
 0x253   : > { %2218 = vmatmul.f32.gmra.mxu1 %v7044_v1 }
 0x26e   : > { %v1978_v5 = vpop.f32.mrf.mxu1 }
 0x274   : > { %v2007_v29 = vpop.f32.mrf.mxu3 }
 0x275   : > { %v2008_v43 = vadd.f32 %v2007_v29, %v1978_v5  ;;  %v5145_v5 = vld [vmem:[%s9017_s3 + $0x660] sm:$0xff] }
 0x276   : > { %v2036_v31 = vpop.f32.mrf.mxu0  ;;  %2763 = vmatpush.msrb.mxu0 %v5145_v5  ;;  %v5126_v5 = vld [vmem:[%s9017_s3 + $0x5c8] sm:$0xff] }
 0x277   : > { %v2037_v40 = vadd.f32 %v2036_v31, %v2008_v43  ;;  %v5113_v43 = vld [vmem:[%s9017_s3 + $0x560] sm:$0xff] }
 0x27b   : > { %v2065_v15 = vpop.f32.mrf.mxu2 }
 0x27c   : > { %v2010_v54 = vpop.f32.mrf.mxu3  ;;  %v2066_v18 = vadd.f32 %v2065_v15, %v2037_v40  ;;  %v5141_v15 = vld [vmem:[%s9017_s3 + $0x640] sm:$0xff] }
 0x27d   : > { %2764 = vmatpush.msrb.mxu0 %v5141_v15 }
 0x27e   : > { %v2039_v53 = vpop.f32.mrf.mxu0 }
 0x280   : > { %v1981_v35 = vpop.f32.mrf.mxu1 }
 0x281   : > { %v2011_v42 = vadd.f32 %v2010_v54, %v1981_v35 }
 0x283   : > { %v2068_v32 = vpop.f32.mrf.mxu2  ;;  %v2040_v55 = vadd.f32 %v2039_v53, %v2011_v42 }
 0x285   : > { %v2069_v20 = vadd.f32 %v2068_v32, %v2040_v55  ;;  %v5137_v32 = vld [vmem:[%s9017_s3 + $0x620] sm:$0xff] }
 0x286   : > { %v2042_v2 = vpop.f32.mrf.mxu0  ;;  %2765 = vmatpush.msrb.mxu0 %v5137_v32  ;;  %v5118_v32 = vld [vmem:[%s9017_s3 + $0x588] sm:$0xff] }
 0x287   : > { %v2013_v39 = vpop.f32.mrf.mxu3 }
 0x288   : > { %v1984_v45 = vpop.f32.mrf.mxu1 }
 0x289   : > { %v2014_v62 = vadd.f32 %v2013_v39, %v1984_v45  ;;  %v5129_v45 = vld [vmem:[%s9017_s3 + $0x5e0] sm:$0xff] }
 0x28b   : > { %v2071_v41 = vpop.f32.mrf.mxu2  ;;  %v2043_v47 = vadd.f32 %v2042_v2, %v2014_v62  ;;  %v5133_v2 = vld [vmem:[%s9017_s3 + $0x600] sm:$0xff] }
 0x28c   : > { %2766 = vmatpush.msrb.mxu0 %v5133_v2  ;;  %v5114_v2 = vld [vmem:[%s9017_s3 + $0x568] sm:$0xff] }
 0x28d   : > { %v2072_v13 = vadd.f32 %v2071_v41, %v2043_v47  ;;  %v5125_v41 = vld [vmem:[%s9017_s3 + $0x5c0] sm:$0xff] }
 0x28e   : > { %v2045_v46 = vpop.f32.mrf.mxu0  ;;  %2767 = vmatpush.msrb.mxu0 %v5129_v45  ;;  %v5110_v45 = vld [vmem:[%s9017_s3 + $0x548] sm:$0xff] }
 0x28f   : > { %v2016_v11 = vpop.f32.mrf.mxu3 }
 0x290   : > { %v1987_v24 = vpop.f32.mrf.mxu1  ;;  %2768 = vmatpush.msrb.mxu0 %v5125_v41 }
 0x291   : > { %v2017_v61 = vadd.f32 %v2016_v11, %v1987_v24  ;;  %v5121_v24 = vld [vmem:[%s9017_s3 + $0x5a0] sm:$0xff] }
 0x292   : > { %2769 = vmatpush.msrb.mxu0 %v5121_v24  ;;  %v5169_v24 = vld [vmem:[%s9017_s3 + $0x720] sm:$0xff] }
 0x293   : > { %v2046_v14 = vadd.f32 %v2045_v46, %v2017_v61  ;;  %v2074_v7 = vpop.f32.mrf.mxu2 }
 0x295   : > { %v2075_v44 = vadd.f32 %v2074_v7, %v2046_v14  ;;  %v5117_v14 = vld [vmem:[%s9017_s3 + $0x580] sm:$0xff] }
 0x296   : > { %v2152_v10 = vpop.f32.mrf.mxu0  ;;  %2770 = vmatpush.msrb.mxu0 %v5117_v14 }
 0x297   : > { %v2123_v57 = vpop.f32.mrf.mxu3  ;;  %5076 = vmatpush.msk.msrb.mxu1 %vm690_vm4, %v2075_v44 }
 0x298   : > { %v2094_v1 = vpop.f32.mrf.mxu1  ;;  %2771 = vmatpush.msrb.mxu0 %v5113_v43 }
 0x299   : > { %2338 = vmatpush.msrb.mxu1 %v2072_v13  ;;  %v2124_v26 = vadd.f32 %v2123_v57, %v2094_v1  ;;  %v5109_v1 = vld [vmem:[%s9017_s3 + $0x540] sm:$0xff] }
 0x29a   : > { %2772 = vmatpush.msrb.mxu0 %v5109_v1  ;;  %v2492_v1 = vld [vmem:[%s9017_s3 + $0x1c0] sm:$0xff] }
 0x29b   : > { %v2181_v56 = vpop.f32.mrf.mxu2  ;;  %2339 = vmatpush.msrb.mxu1 %v2069_v20  ;;  %v2153_v36 = vadd.f32 %v2152_v10, %v2124_v26  ;;  %v5205_v26 = vld [vmem:[%s9017_s3 + $0x840] sm:$0xff] }
 0x29d   : > { %2340 = vmatpush.msrb.mxu1 %v2066_v18  ;;  %v2182_v25 = vadd.f32 %v2181_v56, %v2153_v36  ;;  %v5105_v18 = vld [vmem:[%s9017_s3 + $0x520] sm:$0xff]  ;;  %v5167_v36 = vld [vmem:[%s9017_s3 + $0x710] sm:$0xff] }
 0x29e   : > { %v2155_v50 = vpop.f32.mrf.mxu0  ;;  %5077 = vmatmul.msk.f32.vlgmr.msrb.gmra.mxu1 %vm2309_vm8, %v7199_v60  ;;  %2773 = vmatpush.msrb.mxu0 %v5105_v18  ;;  %v9094_v18 = vlaneseq }
 0x29f   : > { %v2126_v63 = vpop.f32.mrf.mxu3 }
 0x2a0   : > { %v2097_v0 = vpop.f32.mrf.mxu1  ;;  %vm470_vm9 = vcmp.lt.s32.totalorder %v9094_v18, 288  ;;  %vm8874_vm14 = vcmp.lt.s32.totalorder %v9094_v18, 256 }
 0x2a1   : > { %v2127_v38 = vadd.f32 %v2126_v63, %v2097_v0  ;;  %v5097_v0 = vld [vmem:[%s9017_s3 + $0x4e0] sm:$0xff] }
 0x2a3   : > { %v2184_v37 = vpop.f32.mrf.mxu2  ;;  %v2156_v30 = vadd.f32 %v2155_v50, %v2127_v38  ;;  %v5101_v50 = vld [vmem:[%s9017_s3 + $0x500] sm:$0xff]  ;;  %v5183_v38 = vld [vmem:[%s9017_s3 + $0x790] sm:$0xff] }
 0x2a4   : > { %2774 = vmatpush.msrb.mxu0 %v5101_v50  ;;  %v9095_v50 = vmov 0.0  }
 0x2a5   : > { %v2185_v12 = vadd.f32 %v2184_v37, %v2156_v30  ;;  %v5093_v37 = vld [vmem:[%s9017_s3 + $0x4c0] sm:$0xff]  ;;  %472 = vst.msk [vmem:[#allocation3] ss:$8 sm:$0x7] %vm470_vm9, %v9095_v50 }
 0x2a6   : > { %v2158_v52 = vpop.f32.mrf.mxu0  ;;  %5078 = vmatmul.msk.f32.gmra.mxu1 %vm2309_vm8, %v7206_v4  ;;  %2775 = vmatpush.msrb.mxu0 %v5097_v0  ;;  %v5197_v30 = vld [vmem:[%s9017_s3 + $0x800] sm:$0xff]  ;;  %475 = vst.msk [vmem:[#allocation3 + $0x31] ss:$8 sm:$0x7] %vm470_vm9, %v9095_v50  ;;  %v5220_v50 = vld [vmem:[%s9017_s3 + $0x8b8] sm:$0xff] }
 0x2a7   : > { %v2129_v17 = vpop.f32.mrf.mxu3  ;;  %v5153_v0 = vld [vmem:[%s9017_s3 + $0x6a0] sm:$0xff] }
 0x2a8   : > { %v2100_v19 = vpop.f32.mrf.mxu1  ;;  %2776 = vmatpush.msrb.mxu0 %v5093_v37  ;;  %v5221_v37 = vld [vmem:[%s9017_s3 + $0x8c0] sm:$0xff] }
 0x2a9   : > { %v2130_v22 = vadd.f32 %v2129_v17, %v2100_v19  ;;  %v5085_v17 = vld [vmem:[%s9017_s3 + $0x480] sm:$0xff]  ;;  %v5211_v19 = vld [vmem:[%s9017_s3 + $0x870] sm:$0xff] }
 0x2ab   : > { %v2187_v27 = vpop.f32.mrf.mxu2  ;;  %v2159_v49 = vadd.f32 %v2158_v52, %v2130_v22  ;;  %v5089_v52 = vld [vmem:[%s9017_s3 + $0x4a0] sm:$0xff]  ;;  %v5195_v22 = vld [vmem:[%s9017_s3 + $0x7f0] sm:$0xff] }
 0x2ac   : > { %2777 = vmatpush.msrb.mxu0 %v5089_v52  ;;  %v2484_v52 = vld [vmem:[%s9017_s3 + $0x180] sm:$0xff] }
 0x2ad   : > { %v2188_v16 = vadd.f32 %v2187_v27, %v2159_v49  ;;  %v5203_v27 = vld [vmem:[%s9017_s3 + $0x830] sm:$0xff] }
 0x2ae   : > { %v2161_v9 = vpop.f32.mrf.mxu0  ;;  %2778 = vmatpush.msrb.mxu0 %v5085_v17  ;;  %v5175_v49 = vld [vmem:[%s9017_s3 + $0x750] sm:$0xff] }
 0x2af   : > { %v2132_v51 = vpop.f32.mrf.mxu3 }
 0x2b0   : > { %v2103_v28 = vpop.f32.mrf.mxu1  ;;  %2924 = vmatpush.msra.mxu0 %v5211_v19  ;;  %v5149_v19 = vld [vmem:[%s9017_s3 + $0x680] sm:$0xff] }
 0x2b1   : > { %v2133_v8 = vadd.f32 %v2132_v51, %v2103_v28  ;;  %v5209_v51 = vld [vmem:[%s9017_s3 + $0x860] sm:$0xff]  ;;  %v5187_v28 = vld [vmem:[%s9017_s3 + $0x7b0] sm:$0xff] }
 0x2b2   : > { %2786 = vmatpush.msrb.mxu2 %v5209_v51 }
 0x2b3   : > { %v2162_v21 = vadd.f32 %v2161_v9, %v2133_v8  ;;  %v2190_v23 = vpop.f32.mrf.mxu2  ;;  %v5199_v9 = vld [vmem:[%s9017_s3 + $0x810] sm:$0xff] }
 0x2b4   : > { %v5179_v8 = vld [vmem:[%s9017_s3 + $0x770] sm:$0xff]  ;;  %2787 = vmatpush.msrb.mxu2 %v5205_v26  ;;  %v5210_v26 = vld [vmem:[%s9017_s3 + $0x868] sm:$0xff] }
 0x2b5   : > { %v2191_v59 = vadd.f32 %v2190_v23, %v2162_v21  ;;  %v5201_v21 = vld [vmem:[%s9017_s3 + $0x820] sm:$0xff]  ;;  %v5171_v23 = vld [vmem:[%s9017_s3 + $0x730] sm:$0xff] }
 0x2b6   : > { %v2268_v34 = vpop.f32.mrf.mxu0  ;;  %2788 = vmatpush.msrb.mxu2 %v5201_v21  ;;  %v2472_v21 = vld [vmem:[%s9017_s3 + $0x120] sm:$0xff] }
 0x2b7   : > { %v2239_v33 = vpop.f32.mrf.mxu3  ;;  %5079 = vmatpush.msk.msrb.mxu3 %vm690_vm4, %v2191_v59  ;;  %v5146_v59 = vld [vmem:[%s9017_s3 + $0x668] sm:$0xff] }
 0x2b8   : > { %v2210_v3 = vpop.f32.mrf.mxu1  ;;  %2789 = vmatpush.msrb.mxu2 %v5197_v30  ;;  %v5214_v30 = vld [vmem:[%s9017_s3 + $0x888] sm:$0xff] }
 0x2b9   : > { %2361 = vmatpush.msrb.mxu3 %v2188_v16  ;;  %v2240_v7 = vadd.f32 %v2239_v33, %v2210_v3  ;;  %v5193_v16 = vld [vmem:[%s9017_s3 + $0x7e0] sm:$0xff]  ;;  %v5138_v33 = vld [vmem:[%s9017_s3 + $0x628] sm:$0xff]  ;;  %v5163_v3 = vld [vmem:[%s9017_s3 + $0x6f0] sm:$0xff] }
 0x2ba   : > { %2790 = vmatpush.msrb.mxu2 %v5193_v16  ;;  %v5198_v16 = vld [vmem:[%s9017_s3 + $0x808] sm:$0xff] }
 0x2bb   : > { %v2297_v6 = vpop.f32.mrf.mxu2  ;;  %2362 = vmatpush.msrb.mxu3 %v2185_v12  ;;  %v2269_v40 = vadd.f32 %v2268_v34, %v2240_v7  ;;  %v5142_v34 = vld [vmem:[%s9017_s3 + $0x648] sm:$0xff]  ;;  %v5189_v12 = vld [vmem:[%s9017_s3 + $0x7c0] sm:$0xff] }
 0x2bc   : > { %2791 = vmatpush.msrb.mxu2 %v5189_v12  ;;  %v2452_v12 = vld [vmem:[%s9017_s3 + $0x80] sm:$0xff] }
 0x2bd   : > { %2363 = vmatpush.msrb.mxu3 %v2182_v25  ;;  %v2298_v63 = vadd.f32 %v2297_v6, %v2269_v40  ;;  %v5134_v25 = vld [vmem:[%s9017_s3 + $0x608] sm:$0xff]  ;;  %v5159_v6 = vld [vmem:[%s9017_s3 + $0x6d0] sm:$0xff]  ;;  %v5157_v40 = vld [vmem:[%s9017_s3 + $0x6c0] sm:$0xff] }
 0x2be   : > { %v2271_v48 = vpop.f32.mrf.mxu0  ;;  %5080 = vmatmul.msk.f32.vlgmr.msrb.gmra.mxu3 %vm2309_vm8, %v7199_v60 }
 0x2bf   : > { %v2242_v58 = vpop.f32.mrf.mxu3 }
 0x2c0   : > { %v2213_v29 = vpop.f32.mrf.mxu1 }
 0x2c1   : > { %v2243_v42 = vadd.f32 %v2242_v58, %v2213_v29  ;;  %v5130_v58 = vld [vmem:[%s9017_s3 + $0x5e8] sm:$0xff]  ;;  %v5155_v29 = vld [vmem:[%s9017_s3 + $0x6b0] sm:$0xff] }
 0x2c3   : > { %v2300_v31 = vpop.f32.mrf.mxu2  ;;  %v2272_v13 = vadd.f32 %v2271_v48, %v2243_v42  ;;  %v5185_v48 = vld [vmem:[%s9017_s3 + $0x7a0] sm:$0xff] }
 0x2c4   : > { %2792 = vmatpush.msrb.mxu2 %v5185_v48  ;;  %v2448_v48 = vld [vmem:[%s9017_s3 + $0x60] sm:$0xff] }
 0x2c5   : > { %v2301_v56 = vadd.f32 %v2300_v31, %v2272_v13  ;;  %v5181_v31 = vld [vmem:[%s9017_s3 + $0x780] sm:$0xff] }
 0x2c6   : > { %5081 = vmatmul.msk.f32.gmra.mxu3 %vm2309_vm8, %v7206_v4  ;;  %v2274_v54 = vpop.f32.mrf.mxu0  ;;  %2793 = vmatpush.msrb.mxu2 %v5181_v31  ;;  %v5161_v13 = vld [vmem:[%s9017_s3 + $0x6e0] sm:$0xff] }
 0x2c7   : > { %v2245_v53 = vpop.f32.mrf.mxu3 }
 0x2c8   : > { %v2216_v35 = vpop.f32.mrf.mxu1 }
 0x2c9   : > { %v2246_v46 = vadd.f32 %v2245_v53, %v2216_v35  ;;  %v5122_v53 = vld [vmem:[%s9017_s3 + $0x5a8] sm:$0xff]  ;;  %v5151_v35 = vld [vmem:[%s9017_s3 + $0x690] sm:$0xff] }
 0x2cb   : > { %v2303_v39 = vpop.f32.mrf.mxu2  ;;  %v2275_v55 = vadd.f32 %v2274_v54, %v2246_v46  ;;  %v5173_v46 = vld [vmem:[%s9017_s3 + $0x740] sm:$0xff] }
 0x2cd   : > { %v2304_v20 = vadd.f32 %v2303_v39, %v2275_v55  ;;  %v5177_v39 = vld [vmem:[%s9017_s3 + $0x760] sm:$0xff] }
 0x2ce   : > { %v2277_v47 = vpop.f32.mrf.mxu0  ;;  %2794 = vmatpush.msrb.mxu2 %v5177_v39  ;;  %v5223_v39 = vld [vmem:[%s9017_s3 + $0x8d0] sm:$0xff] }
 0x2cf   : > { %v2248_v62 = vpop.f32.mrf.mxu3 }
 0x2d0   : > { %v2219_v11 = vpop.f32.mrf.mxu1  ;;  %2795 = vmatpush.msrb.mxu2 %v5173_v46  ;;  %v5219_v46 = vld [vmem:[%s9017_s3 + $0x8b0] sm:$0xff] }
 0x2d1   : > { %v2249_v61 = vadd.f32 %v2248_v62, %v2219_v11  ;;  %v5106_v62 = vld [vmem:[%s9017_s3 + $0x528] sm:$0xff] }
 0x2d2   : > { %2796 = vmatpush.msrb.mxu2 %v5169_v24  ;;  %v5166_v24 = vld [vmem:[%s9017_s3 + $0x708] sm:$0xff] }
 0x2d3   : > { %v2278_v44 = vadd.f32 %v2277_v47, %v2249_v61  ;;  %v2306_v10 = vpop.f32.mrf.mxu2  ;;  %v5165_v61 = vld [vmem:[%s9017_s3 + $0x700] sm:$0xff]  ;;  %v5102_v47 = vld [vmem:[%s9017_s3 + $0x508] sm:$0xff] }
 0x2d4   : > { %2797 = vmatpush.msrb.mxu2 %v5165_v61 }
 0x2d5   : > { %v2307_v57 = vadd.f32 %v2306_v10, %v2278_v44  ;;  %v5098_v44 = vld [vmem:[%s9017_s3 + $0x4e8] sm:$0xff]  ;;  %v2496_v10 = vld [vmem:[%s9017_s3 + $0x1e0] sm:$0xff] }
 0x2d6   : > { %2798 = vmatpush.msrb.mxu2 %v5161_v13 }
 0x2d7   : > { %5082 = vmatpush.msk.msra.mxu1 %vm690_vm4, %v2307_v57  ;;  %v5094_v57 = vld [vmem:[%s9017_s3 + $0x4c8] sm:$0xff] }
 0x2d8   : > { %2799 = vmatpush.msrb.mxu2 %v5157_v40  ;;  %v5143_v40 = vld [vmem:[%s9017_s3 + $0x650] sm:$0xff] }
 0x2d9   : > { %2384 = vmatpush.msra.mxu1 %v2304_v20  ;;  %v5090_v20 = vld [vmem:[%s9017_s3 + $0x4a8] sm:$0xff] }
 0x2da   : > { %2800 = vmatpush.msrb.mxu2 %v5153_v0  ;;  %v2569_v0 = vld [vmem:[%s9017_s3 + $0x428] sm:$0xff] }
 0x2db   : > { %2385 = vmatpush.msra.mxu1 %v2301_v56  ;;  %v2488_v56 = vld [vmem:[%s9017_s3 + $0x1a0] sm:$0xff] }
 0x2dc   : > { %2801 = vmatpush.msrb.mxu2 %v5149_v19  ;;  %v5135_v19 = vld [vmem:[%s9017_s3 + $0x610] sm:$0xff] }
 0x2dd   : > { %2386 = vmatpush.msra.mxu1 %v2298_v63  ;;  %v5225_v63 = vld [vmem:[%s9017_s3 + $0x8e0] sm:$0xff] }
 0x2de   : > { %5083 = vmatmul.msk.f32.vlgmr.msra.gmra.mxu1 %vm2309_vm8, %v7199_v60  ;;  %v5207_v60 = vld [vmem:[%s9017_s3 + $0x850] sm:$0xff]  ;;  %2821 = vmatpush.msra.mxu3 %v5225_v63 }
 0x2df   : > { %2925 = vmatpush.msra.mxu0 %v5207_v60  ;;  %2832 = vmatpush.msrb.mxu1 %v5146_v59  ;;  %v2468_v59 = vld [vmem:[%s9017_s3 + $0x100] sm:$0xff]  ;;  %v5139_v63 = vld [vmem:[%s9017_s3 + $0x630] sm:$0xff] }
 0x2e0   : > { %2822 = vmatpush.msra.mxu3 %v5221_v37 }
 0x2e1   : > { %2926 = vmatpush.msra.mxu0 %v5203_v27  ;;  %2833 = vmatpush.msrb.mxu1 %v5142_v34  ;;  %v5217_v27 = vld [vmem:[%s9017_s3 + $0x8a0] sm:$0xff]  ;;  %v5202_v34 = vld [vmem:[%s9017_s3 + $0x828] sm:$0xff] }
 0x2e2   : > { %2823 = vmatpush.msra.mxu3 %v5217_v27  ;;  %v2565_v27 = vld [vmem:[%s9017_s3 + $0x408] sm:$0xff] }
 0x2e3   : > { %2927 = vmatpush.msra.mxu0 %v5199_v9  ;;  %2834 = vmatpush.msrb.mxu1 %v5138_v33  ;;  %v5226_v9 = vld [vmem:[%s9017_s3 + $0x8e8] sm:$0xff]  ;;  %v2460_v33 = vld [vmem:[%s9017_s3 + $0xc0] sm:$0xff] }
 0x2e4   : > { %2890 = vmatpush.msra.mxu2 %v5226_v9 }
 0x2e5   : > { %2928 = vmatpush.msra.mxu0 %v5195_v22  ;;  %2835 = vmatpush.msrb.mxu1 %v5134_v25  ;;  %v2480_v22 = vld [vmem:[%s9017_s3 + $0x160] sm:$0xff]  ;;  %v5194_v25 = vld [vmem:[%s9017_s3 + $0x7e8] sm:$0xff] }
 0x2e6   : > { %5084 = vmatmul.msk.f32.gmra.mxu1 %vm2309_vm8, %v7206_v4  ;;  %v5191_v4 = vld [vmem:[%s9017_s3 + $0x7d0] sm:$0xff] }
 0x2e7   : > { %2929 = vmatpush.msra.mxu0 %v5191_v4  ;;  %2836 = vmatpush.msrb.mxu1 %v5130_v58  ;;  %v5222_v4 = vld [vmem:[%s9017_s3 + $0x8c8] sm:$0xff] }
 0x2e8   : > { %2891 = vmatpush.msra.mxu2 %v5222_v4  ;;  %v5186_v58 = vld [vmem:[%s9017_s3 + $0x7a8] sm:$0xff] }
 0x2e9   : > { %2930 = vmatpush.msra.mxu0 %v5187_v28  ;;  %2837 = vmatpush.msrb.mxu1 %v5126_v5  ;;  %v5213_v28 = vld [vmem:[%s9017_s3 + $0x880] sm:$0xff]  ;;  %v5150_v4 = vld [vmem:[%s9017_s3 + $0x688] sm:$0xff] }
 0x2ea   : > { %2824 = vmatpush.msra.mxu3 %v5213_v28  ;;  %v2444_v5 = vld [vmem:[%s9017_s3 + $0x40] sm:$0xff]  ;;  %v5127_v28 = vld [vmem:[%s9017_s3 + $0x5d0] sm:$0xff] }
 0x2eb   : > { %2931 = vmatpush.msra.mxu0 %v5183_v38  ;;  %2838 = vmatpush.msrb.mxu1 %v5122_v53  ;;  %v5086_v38 = vld [vmem:[%s9017_s3 + $0x488] sm:$0xff]  ;;  %v2440_v53 = vld [vmem:[%s9017_s3 + $0x20] sm:$0xff] }
 0x2ec   : > { %2855 = vmatpush.msrb.mxu3 %v5210_v26 }
 0x2ed   : > { %2932 = vmatpush.msra.mxu0 %v5179_v8  ;;  %2839 = vmatpush.msrb.mxu1 %v5118_v32  ;;  %v2476_v8 = vld [vmem:[%s9017_s3 + $0x140] sm:$0xff]  ;;  %v5227_v32 = vld [vmem:[%s9017_s3 + $0x8f0] sm:$0xff] }
 0x2ef   : > { %2933 = vmatpush.msra.mxu0 %v5175_v49  ;;  %2840 = vmatpush.msrb.mxu1 %v5114_v2  ;;  %v5218_v49 = vld [vmem:[%s9017_s3 + $0x8a8] sm:$0xff] }
 0x2f0   : > { %2892 = vmatpush.msra.mxu2 %v5218_v49  ;;  %v5174_v2 = vld [vmem:[%s9017_s3 + $0x748] sm:$0xff]  ;;  %v5119_v49 = vld [vmem:[%s9017_s3 + $0x590] sm:$0xff] }
 0x2f1   : > { %2934 = vmatpush.msra.mxu0 %v5171_v23  ;;  %2841 = vmatpush.msrb.mxu1 %v5110_v45  ;;  %v5206_v23 = vld [vmem:[%s9017_s3 + $0x848] sm:$0xff] }
 0x2f2   : > { %2856 = vmatpush.msrb.mxu3 %v5206_v23  ;;  %2893 = vmatpush.msra.mxu2 %v5214_v30  ;;  %v2562_v23 = vld [vmem:[%s9017_s3 + $0x3f0] sm:$0xff] }
 0x2f3   : > { %2935 = vmatpush.msra.mxu0 %v5167_v36  ;;  %2842 = vmatpush.msrb.mxu1 %v5106_v62  ;;  %v2464_v36 = vld [vmem:[%s9017_s3 + $0xe0] sm:$0xff] }
 0x2f4   : > { %2857 = vmatpush.msrb.mxu3 %v5202_v34  ;;  %v2558_v34 = vld [vmem:[%s9017_s3 + $0x3d0] sm:$0xff] }
 0x2f5   : > { %2936 = vmatpush.msra.mxu0 %v5163_v3  ;;  %2843 = vmatpush.msrb.mxu1 %v5102_v47  ;;  %v2456_v3 = vld [vmem:[%s9017_s3 + $0xa0] sm:$0xff] }
 0x2f6   : > { %2858 = vmatpush.msrb.mxu3 %v5198_v16  ;;  %v2554_v16 = vld [vmem:[%s9017_s3 + $0x3b0] sm:$0xff] }
 0x2f7   : > { %2937 = vmatpush.msra.mxu0 %v5159_v6  ;;  %2844 = vmatpush.msrb.mxu1 %v5098_v44  ;;  %v5190_v6 = vld [vmem:[%s9017_s3 + $0x7c8] sm:$0xff]  ;;  %v5147_v44 = vld [vmem:[%s9017_s3 + $0x670] sm:$0xff] }
 0x2f8   : > { %2859 = vmatpush.msrb.mxu3 %v5194_v25  ;;  %v2550_v25 = vld [vmem:[%s9017_s3 + $0x390] sm:$0xff] }
 0x2f9   : > { %2938 = vmatpush.msra.mxu0 %v5155_v29  ;;  %2845 = vmatpush.msrb.mxu1 %v5094_v57  ;;  %v5162_v57 = vld [vmem:[%s9017_s3 + $0x6e8] sm:$0xff] }
 0x2fa   : > { %2860 = vmatpush.msrb.mxu3 %v5190_v6 }
 0x2fb   : > { %2939 = vmatpush.msra.mxu0 %v5151_v35  ;;  %2846 = vmatpush.msrb.mxu1 %v5090_v20  ;;  %v5178_v35 = vld [vmem:[%s9017_s3 + $0x768] sm:$0xff] }
 0x2fc   : > { %2861 = vmatpush.msrb.mxu3 %v5186_v58  ;;  %v2573_v20 = vld [vmem:[%s9017_s3 + $0x448] sm:$0xff]  ;;  %v2546_v58 = vld [vmem:[%s9017_s3 + $0x370] sm:$0xff] }
 0x2fd   : > { %2847 = vmatpush.msrb.mxu1 %v5086_v38  ;;  %v5123_v38 = vld [vmem:[%s9017_s3 + $0x5b0] sm:$0xff] }
 0x2ff   : > { %2959 = vmatpush.msra.mxu1 %v5227_v32 }
 0x301   : > { %2960 = vmatpush.msra.mxu1 %v5223_v39 }
 0x303   : > { %2961 = vmatpush.msra.mxu1 %v5219_v46  ;;  %v5148_v46 = vld [vmem:[%s9017_s3 + $0x678] sm:$0xff] }
 0x31b   : > { %v2342_v15 = vpop.f32.mrf.mxu1 }
 0x31c   : > { %v2400_v54 = vrot.slane %v2342_v15, 7  ;;  %v5182_v15 = vld [vmem:[%s9017_s3 + $0x788] sm:$0xff] }
 0x31d   : > { %2862 = vmatpush.msrb.mxu3 %v5182_v15  ;;  %v2538_v15 = vld [vmem:[%s9017_s3 + $0x330] sm:$0xff] }
 0x31e   : > { %2418 = vst [vmem:[#allocation3] sm:$0xfe] %v2400_v54 }
 0x31f   : > { %2863 = vmatpush.msrb.mxu3 %v5178_v35  ;;  %v2534_v35 = vld [vmem:[%s9017_s3 + $0x310] sm:$0xff] }
 0x321   : > { %2864 = vmatpush.msrb.mxu3 %v5174_v2  ;;  %v2530_v2 = vld [vmem:[%s9017_s3 + $0x2f0] sm:$0xff] }
 0x323   : > { %v2345_v41 = vpop.f32.mrf.mxu1 }
 0x324   : > { %v2403_v11 = vrot.slane %v2345_v41, 7  ;;  %v5170_v41 = vld [vmem:[%s9017_s3 + $0x728] sm:$0xff] }
 0x325   : > { %v2580_v42 = vld [vmem:[#allocation3] sm:$0xfe]  ;;  %2865 = vmatpush.msrb.mxu3 %v5170_v41 }
 0x326   : > { %v7389_v14 = vsel %vm493_vm1, %v2400_v54, %v2403_v11  ;;  %2426 = vst [vmem:[#allocation3 + $0x30] sm:$0x1] %v2403_v11  ;;  %v2740_v7 = vrot.slane %v2580_v42, 1  ;;  %v2436_v54 = vld [vmem:[%s9017_s3] sm:$0xff]  ;;  %v5215_v42 = vld [vmem:[%s9017_s3 + $0x890] sm:$0xff]  ;;  %v7631_v30 = vld [vmem:[#allocation3] sm:$0xff] }
 0x327   : > { %2422 = vst [vmem:[#allocation3 + $0x18] sm:$0xff] %v7389_v14  ;;  %v2741_v55 = vrot.slane %v7389_v14, 1  ;;  %2866 = vmatpush.msrb.mxu3 %v5166_v24  ;;  %2962 = vmatpush.msra.mxu1 %v5215_v42  ;;  %v5212_v24 = vld [vmem:[%s9017_s3 + $0x878] sm:$0xff] }
 0x328   : > { %v5144_v42 = vld [vmem:[%s9017_s3 + $0x658] sm:$0xff] }
 0x329   : > { %v7400_v43 = vsel %vm690_vm4, %v2740_v7, %v2741_v55  ;;  %v5228_v7 = vld [vmem:[%s9017_s3 + $0x8f8] sm:$0xff]  ;;  %2867 = vmatpush.msrb.mxu3 %v5162_v57  ;;  %v2522_v57 = vld [vmem:[%s9017_s3 + $0x2b0] sm:$0xff] }
 0x32a   : > { %2779 = vmatmul.f32.vlgmr.msrb.gmra.mxu0 %v7400_v43  ;;  %2848 = vmatmul.f32.vlgmr.msrb.gmra.mxu1 %v7400_v43 }
 0x32b   : > { %3044 = vmatpush.msrb.mxu0 %v2496_v10  ;;  %v2577_v10 = vld [vmem:[%s9017_s3 + $0x468] sm:$0xff]  ;;  %3028 = vmatpush.msrb.mxu1 %v5228_v7  ;;  %v2526_v7 = vld [vmem:[%s9017_s3 + $0x2d0] sm:$0xff] }
 0x32d   : > { %3045 = vmatpush.msrb.mxu0 %v2492_v1  ;;  %v2583_v17 = vld [vmem:[#allocation3 + $0x30] sm:$0x1]  ;;  %v5224_v1 = vld [vmem:[%s9017_s3 + $0x8d8] sm:$0xff] }
 0x32e   : > { %v2749_v60 = vrot.slane %v2583_v17, 1  ;;  %3029 = vmatpush.msrb.mxu1 %v5224_v1  ;;  %v5216_v17 = vld [vmem:[%s9017_s3 + $0x898] sm:$0xff]  ;;  %v2552_v1 = vld [vmem:[%s9017_s3 + $0x3a0] sm:$0xff] }
 0x32f   : > { %3046 = vmatpush.msrb.mxu0 %v2488_v56  ;;  %v5158_v56 = vld [vmem:[%s9017_s3 + $0x6c8] sm:$0xff] }
 0x330   : > { %v7452_v51 = vsel %vm690_vm4, %v2741_v55, %v2749_v60  ;;  %2868 = vmatpush.msrb.mxu3 %v5158_v56  ;;  %3030 = vmatpush.msrb.mxu1 %v5220_v50  ;;  %v5136_v56 = vld [vmem:[%s9017_s3 + $0x618] sm:$0xff]  ;;  %v2518_v50 = vld [vmem:[%s9017_s3 + $0x290] sm:$0xff] }
 0x331   : > { %3047 = vmatpush.msrb.mxu0 %v2484_v52  ;;  %v5154_v52 = vld [vmem:[%s9017_s3 + $0x6a8] sm:$0xff] }
 0x332   : > { %2782 = vmatmul.f32.gmra.mxu0 %v7452_v51  ;;  %2851 = vmatmul.f32.gmra.mxu1 %v7452_v51 }
 0x333   : > { %3048 = vmatpush.msrb.mxu0 %v2480_v22  ;;  %v5131_v22 = vld [vmem:[%s9017_s3 + $0x5f0] sm:$0xff]  ;;  %2869 = vmatpush.msrb.mxu3 %v5154_v52  ;;  %v2544_v52 = vld [vmem:[%s9017_s3 + $0x360] sm:$0xff] }
 0x334   : > { %3031 = vmatpush.msrb.mxu1 %v5216_v17  ;;  %v5200_v17 = vld [vmem:[%s9017_s3 + $0x818] sm:$0xff] }
 0x335   : > { %3049 = vmatpush.msrb.mxu0 %v2476_v8  ;;  %2870 = vmatpush.msrb.mxu3 %v5150_v4  ;;  %v5124_v4 = vld [vmem:[%s9017_s3 + $0x5b8] sm:$0xff] }
 0x337   : > { %3050 = vmatpush.msrb.mxu0 %v2472_v21  ;;  %v5115_v21 = vld [vmem:[%s9017_s3 + $0x570] sm:$0xff] }
 0x339   : > { %3051 = vmatpush.msrb.mxu0 %v2468_v59  ;;  %v5111_v59 = vld [vmem:[%s9017_s3 + $0x550] sm:$0xff] }
 0x33b   : > { %3052 = vmatpush.msrb.mxu0 %v2464_v36  ;;  %v5107_v36 = vld [vmem:[%s9017_s3 + $0x530] sm:$0xff] }
 0x33d   : > { %3053 = vmatpush.msrb.mxu0 %v2460_v33 }
 0x33f   : > { %3054 = vmatpush.msrb.mxu0 %v2456_v3 }
 0x341   : > { %v2365_v29 = vpop.f32.mrf.mxu3  ;;  %3055 = vmatpush.msrb.mxu0 %v2452_v12  ;;  %v5103_v12 = vld [vmem:[%s9017_s3 + $0x510] sm:$0xff] }
 0x342   : > { %v2401_v31 = vrot.slane %v2365_v29, 7  ;;  %v5095_v29 = vld [vmem:[%s9017_s3 + $0x4d0] sm:$0xff] }
 0x343   : > { %3056 = vmatpush.msrb.mxu0 %v2448_v48  ;;  %v5099_v48 = vld [vmem:[%s9017_s3 + $0x4f0] sm:$0xff] }
 0x344   : > { %2419 = vst [vmem:[#allocation3 + $0x8] sm:$0xfe] %v2401_v31 }
 0x345   : > { %3057 = vmatpush.msrb.mxu0 %v2444_v5  ;;  %v5091_v5 = vld [vmem:[%s9017_s3 + $0x4b0] sm:$0xff] }
 0x347   : > { %3058 = vmatpush.msrb.mxu0 %v2440_v53 }
 0x349   : > { %v2368_v45 = vpop.f32.mrf.mxu3  ;;  %3059 = vmatpush.msrb.mxu0 %v2436_v54  ;;  %v5087_v54 = vld [vmem:[%s9017_s3 + $0x490] sm:$0xff] }
 0x34a   : > { %v2405_v62 = vrot.slane %v2368_v45, 7 }
 0x34b   : > { %v2581_v11 = vld [vmem:[#allocation3 + $0x8] sm:$0xfe] }
 0x34c   : > { %v7551_v61 = vsel %vm493_vm1, %v2401_v31, %v2405_v62  ;;  %2427 = vst [vmem:[#allocation3 + $0x38] sm:$0x1] %v2405_v62  ;;  %v2743_v47 = vrot.slane %v2581_v11, 1  ;;  %v2542_v31 = vld [vmem:[%s9017_s3 + $0x350] sm:$0xff]  ;;  %v2560_v11 = vld [vmem:[%s9017_s3 + $0x3e0] sm:$0xff] }
 0x34d   : > { %2423 = vst [vmem:[#allocation3 + $0x20] sm:$0xff] %v7551_v61  ;;  %v2744_v55 = vrot.slane %v7551_v61, 1 }
 0x34f   : > { %v7565_v13 = vsel %vm690_vm4, %v2743_v47, %v2744_v55 }
 0x350   : > { %2802 = vmatmul.f32.vlgmr.msrb.gmra.mxu2 %v7565_v13  ;;  %2940 = vmatmul.f32.vlgmr.msra.gmra.mxu0 %v7565_v13 }
 0x351   : > { %2901 = vmatpush.msrb.mxu2 %v5147_v44  ;;  %3171 = vmatpush.msra.mxu0 %v2577_v10  ;;  %v5208_v44 = vld [vmem:[%s9017_s3 + $0x858] sm:$0xff] }
 0x352   : > { %v5140_v10 = vld [vmem:[%s9017_s3 + $0x638] sm:$0xff] }
 0x353   : > { %2902 = vmatpush.msrb.mxu2 %v5143_v40  ;;  %v2584_v37 = vld [vmem:[#allocation3 + $0x38] sm:$0x1]  ;;  %3172 = vmatpush.msra.mxu0 %v2573_v20  ;;  %v5204_v20 = vld [vmem:[%s9017_s3 + $0x838] sm:$0xff] }
 0x354   : > { %v2751_v60 = vrot.slane %v2584_v37, 1  ;;  %v5132_v37 = vld [vmem:[%s9017_s3 + $0x5f8] sm:$0xff] }
 0x355   : > { %2903 = vmatpush.msrb.mxu2 %v5139_v63  ;;  %3173 = vmatpush.msra.mxu0 %v2569_v0  ;;  %v2548_v63 = vld [vmem:[%s9017_s3 + $0x380] sm:$0xff] }
 0x356   : > { %v7606_v9 = vsel %vm690_vm4, %v2744_v55, %v2751_v60  ;;  %v2556_v55 = vld [vmem:[%s9017_s3 + $0x3c0] sm:$0xff] }
 0x357   : > { %2904 = vmatpush.msrb.mxu2 %v5135_v19  ;;  %3174 = vmatpush.msra.mxu0 %v2565_v27  ;;  %v5128_v19 = vld [vmem:[%s9017_s3 + $0x5d8] sm:$0xff]  ;;  %v2540_v60 = vld [vmem:[%s9017_s3 + $0x340] sm:$0xff] }
 0x358   : > { %2805 = vmatmul.f32.gmra.mxu2 %v7606_v9  ;;  %2943 = vmatmul.f32.gmra.mxu0 %v7606_v9  ;;  %v5196_v27 = vld [vmem:[%s9017_s3 + $0x7f8] sm:$0xff] }
 0x359   : > { %2905 = vmatpush.msrb.mxu2 %v5131_v22  ;;  %v2514_v22 = vld [vmem:[%s9017_s3 + $0x270] sm:$0xff] }
 0x35b   : > { %v2388_v8 = vpop.f32.mrf.mxu1  ;;  %2906 = vmatpush.msrb.mxu2 %v5127_v28  ;;  %v2536_v28 = vld [vmem:[%s9017_s3 + $0x320] sm:$0xff] }
 0x35c   : > { %v2402_v26 = vrot.slane %v2388_v8, 7  ;;  %v2510_v8 = vld [vmem:[%s9017_s3 + $0x250] sm:$0xff] }
 0x35d   : > { %2907 = vmatpush.msrb.mxu2 %v5123_v38  ;;  %v5192_v38 = vld [vmem:[%s9017_s3 + $0x7d8] sm:$0xff] }
 0x35e   : > { %2421 = vst.msk [vmem:[#allocation3 + $0x10] sm:$0xfe] %vm2420_vm10, %v2402_v26 }
 0x35f   : > { %2908 = vmatpush.msrb.mxu2 %v5119_v49  ;;  %v2532_v49 = vld [vmem:[%s9017_s3 + $0x300] sm:$0xff] }
 0x360   : > { %3060 = vmatmul.f32.vlgmr.msrb.gmra.mxu0 %v7631_v30 }
 0x361   : > { %2909 = vmatpush.msrb.mxu2 %v5115_v21  ;;  %3205 = vmatpush.msrb.mxu0 %v2562_v23  ;;  %v5116_v21 = vld [vmem:[%s9017_s3 + $0x578] sm:$0xff]  ;;  %v2528_v23 = vld [vmem:[%s9017_s3 + $0x2e0] sm:$0xff] }
 0x363   : > { %v2391_v33 = vpop.f32.mrf.mxu1  ;;  %2910 = vmatpush.msrb.mxu2 %v5111_v59  ;;  %3206 = vmatpush.msrb.mxu0 %v2558_v34  ;;  %v5188_v59 = vld [vmem:[%s9017_s3 + $0x7b8] sm:$0xff] }
 0x364   : > { %v2407_v3 = vrot.slane %v2391_v33, 7  ;;  %v5112_v34 = vld [vmem:[%s9017_s3 + $0x558] sm:$0xff] }
 0x365   : > { %2911 = vmatpush.msrb.mxu2 %v5107_v36  ;;  %3207 = vmatpush.msrb.mxu0 %v2554_v16  ;;  %v2582_v53 = vld [vmem:[#allocation3 + $0x10] sm:$0xfe]  ;;  %v2506_v36 = vld [vmem:[%s9017_s3 + $0x230] sm:$0xff]  ;;  %v2524_v16 = vld [vmem:[%s9017_s3 + $0x2c0] sm:$0xff] }
 0x366   : > { %v2408_v6 = vsel %vm493_vm1, %v2402_v26, %v2407_v3  ;;  %2429 = vst.msk [vmem:[#allocation3 + $0x40] sm:$0x1] %vm2428_vm11, %v2407_v3  ;;  %v2746_v39 = vrot.slane %v2582_v53, 1  ;;  %v7685_v41 = vld [vmem:[#allocation3 + $0x10] sm:$0xff]  ;;  %v5120_v26 = vld [vmem:[%s9017_s3 + $0x598] sm:$0xff] }
 0x367   : > { %2425 = vst.msk [vmem:[#allocation3 + $0x28] sm:$0xff] %vm2424_vm12, %v2408_v6  ;;  %2912 = vmatpush.msrb.mxu2 %v5103_v12  ;;  %3208 = vmatpush.msrb.mxu0 %v2550_v25  ;;  %v5184_v33 = vld [vmem:[%s9017_s3 + $0x798] sm:$0xff]  ;;  %v2502_v12 = vld [vmem:[%s9017_s3 + $0x210] sm:$0xff]  ;;  %v2520_v25 = vld [vmem:[%s9017_s3 + $0x2a0] sm:$0xff] }
 0x368   : > { %3063 = vmatmul.f32.gmra.mxu0 %v7389_v14  ;;  %v5108_v3 = vld [vmem:[%s9017_s3 + $0x538] sm:$0xff] }
 0x369   : > { %2913 = vmatpush.msrb.mxu2 %v5099_v48  ;;  %3209 = vmatpush.msrb.mxu0 %v2546_v58  ;;  %v5180_v6 = vld [vmem:[%s9017_s3 + $0x778] sm:$0xff]  ;;  %v5305_v48 = vld [vmem:[%s9017_s3 + $0xae0] sm:$0xff] }
 0x36a   : > { %v5104_v58 = vld [vmem:[%s9017_s3 + $0x518] sm:$0xff] }
 0x36b   : > { %2914 = vmatpush.msrb.mxu2 %v5095_v29  ;;  %3210 = vmatpush.msrb.mxu0 %v2542_v31  ;;  %v2516_v29 = vld [vmem:[%s9017_s3 + $0x280] sm:$0xff]  ;;  %v5176_v31 = vld [vmem:[%s9017_s3 + $0x758] sm:$0xff] }
 0x36c   : > { %v5100_v53 = vld [vmem:[%s9017_s3 + $0x4f8] sm:$0xff] }
 0x36d   : > { %2915 = vmatpush.msrb.mxu2 %v5091_v5  ;;  %3211 = vmatpush.msrb.mxu0 %v2538_v15  ;;  %v2585_v47 = vld [vmem:[#allocation3 + $0x40] sm:$0x1]  ;;  %v5301_v5 = vld [vmem:[%s9017_s3 + $0xac0] sm:$0xff] }
 0x36e   : > { %v7679_v32 = vld [vmem:[#allocation3 + $0x28] sm:$0xff]  ;;  %v2753_v40 = vrot.slane %v2585_v47, 1 }
 0x36f   : > { %v2747_v45 = vrot.slane %v7679_v32, 1  ;;  %2916 = vmatpush.msrb.mxu2 %v5087_v54  ;;  %3212 = vmatpush.msrb.mxu0 %v2534_v35  ;;  %v7842_v15 = vld [vmem:[#allocation3 + $0x8] sm:$0xff]  ;;  %v5172_v35 = vld [vmem:[%s9017_s3 + $0x738] sm:$0xff] }
 0x370   : > { %5239 = vmatmul.msk.f32.vlgmr.msra.gmra.mxu0 %vm2424_vm12, %v7685_v41  ;;  %v2512_v54 = vld [vmem:[%s9017_s3 + $0x260] sm:$0xff] }
 0x371   : > { %v7693_v62 = vsel %vm690_vm4, %v2746_v39, %v2747_v45  ;;  %3213 = vmatpush.msrb.mxu0 %v2530_v2  ;;  %v7741_v0 = vsel %vm690_vm4, %v2747_v45, %v2753_v40  ;;  %v5297_v2 = vld [vmem:[%s9017_s3 + $0xaa0] sm:$0xff]  ;;  %v5096_v39 = vld [vmem:[%s9017_s3 + $0x4d8] sm:$0xff] }
 0x372   : > { %5229 = vmatmul.msk.f32.vlgmr.msra.gmra.mxu3 %vm2424_vm12, %v7693_v62  ;;  %5231 = vmatmul.msk.f32.vlgmr.msra.gmra.mxu2 %vm2424_vm12, %v7693_v62  ;;  %v2508_v45 = vld [vmem:[%s9017_s3 + $0x240] sm:$0xff]  ;;  %v5156_v40 = vld [vmem:[%s9017_s3 + $0x6b8] sm:$0xff] }
 0x373   : > { %5233 = vmatmul.msk.f32.vlgmr.msra.gmra.mxu1 %vm2424_vm12, %v7693_v62  ;;  %2970 = vmatpush.msra.mxu3 %v5148_v46  ;;  %v5168_v46 = vld [vmem:[%s9017_s3 + $0x718] sm:$0xff]  ;;  %v5289_v47 = vld [vmem:[%s9017_s3 + $0xa60] sm:$0xff] }
 0x374   : > { %3067 = vmatpush.msra.mxu1 %v2560_v11  ;;  %2993 = vmatpush.msra.mxu2 %v5212_v24  ;;  %v5092_v11 = vld [vmem:[%s9017_s3 + $0x4b8] sm:$0xff]  ;;  %v2504_v24 = vld [vmem:[%s9017_s3 + $0x220] sm:$0xff] }
 0x375   : > { %2971 = vmatpush.msra.mxu3 %v5144_v42  ;;  %3214 = vmatpush.msrb.mxu0 %v2526_v7  ;;  %v5164_v42 = vld [vmem:[%s9017_s3 + $0x6f8] sm:$0xff] }
 0x376   : > { %3068 = vmatpush.msra.mxu1 %v2556_v55  ;;  %2994 = vmatpush.msra.mxu2 %v5208_v44  ;;  %v5088_v7 = vld [vmem:[%s9017_s3 + $0x498] sm:$0xff]  ;;  %v2500_v55 = vld [vmem:[%s9017_s3 + $0x200] sm:$0xff] }
 0x377   : > { %2972 = vmatpush.msra.mxu3 %v5140_v10  ;;  %3215 = vmatpush.msrb.mxu0 %v2522_v57  ;;  %v5160_v44 = vld [vmem:[%s9017_s3 + $0x6d8] sm:$0xff]  ;;  %v2576_v10 = vld [vmem:[%s9017_s3 + $0x460] sm:$0xff]  ;;  %v2498_v57 = vld [vmem:[%s9017_s3 + $0x1f0] sm:$0xff] }
 0x378   : > { %3069 = vmatpush.msra.mxu1 %v2552_v1  ;;  %2995 = vmatpush.msra.mxu2 %v5204_v20  ;;  %v5285_v1 = vld [vmem:[%s9017_s3 + $0xa40] sm:$0xff] }
 0x379   : > { %2973 = vmatpush.msra.mxu3 %v5136_v56  ;;  %3216 = vmatpush.msrb.mxu0 %v2518_v50  ;;  %v2572_v20 = vld [vmem:[%s9017_s3 + $0x440] sm:$0xff]  ;;  %v2494_v56 = vld [vmem:[%s9017_s3 + $0x1d0] sm:$0xff] }
 0x37a   : > { %3070 = vmatpush.msra.mxu1 %v2548_v63  ;;  %5230 = vmatmul.msk.f32.gmra.mxu3 %vm2424_vm12, %v7741_v0  ;;  %v5281_v50 = vld [vmem:[%s9017_s3 + $0xa20] sm:$0xff]  ;;  %v5152_v63 = vld [vmem:[%s9017_s3 + $0x698] sm:$0xff] }
 0x37b   : > { %5232 = vmatmul.msk.f32.gmra.mxu2 %vm2424_vm12, %v7741_v0  ;;  %5234 = vmatmul.msk.f32.gmra.mxu1 %vm2424_vm12, %v7741_v0 }
 0x37c   : > { %2974 = vmatpush.msra.mxu3 %v5132_v37  ;;  %3071 = vmatpush.msra.mxu1 %v2544_v52  ;;  %v2490_v37 = vld [vmem:[%s9017_s3 + $0x1b0] sm:$0xff]  ;;  %v2564_v52 = vld [vmem:[%s9017_s3 + $0x400] sm:$0xff] }
 0x37d   : > { %2996 = vmatpush.msra.mxu2 %v5200_v17  ;;  %5240 = vmatmul.msk.f32.gmra.mxu0 %vm2424_vm12, %v7679_v32  ;;  %v2497_v17 = vld [vmem:[%s9017_s3 + $0x1e8] sm:$0xff] }
 0x37e   : > { %2975 = vmatpush.msra.mxu3 %v5128_v19  ;;  %3072 = vmatpush.msra.mxu1 %v2540_v60  ;;  %v2486_v19 = vld [vmem:[%s9017_s3 + $0x190] sm:$0xff]  ;;  %v5273_v60 = vld [vmem:[%s9017_s3 + $0x9e0] sm:$0xff] }
 0x37f   : > { %2997 = vmatpush.msra.mxu2 %v5196_v27  ;;  %3217 = vmatpush.msrb.mxu0 %v2514_v22  ;;  %v2561_v27 = vld [vmem:[%s9017_s3 + $0x3e8] sm:$0xff] }
 0x380   : > { %2976 = vmatpush.msra.mxu3 %v5124_v4  ;;  %3073 = vmatpush.msra.mxu1 %v2536_v28  ;;  %v2493_v22 = vld [vmem:[%s9017_s3 + $0x1c8] sm:$0xff]  ;;  %v2482_v4 = vld [vmem:[%s9017_s3 + $0x170] sm:$0xff]  ;;  %v5269_v28 = vld [vmem:[%s9017_s3 + $0x9c0] sm:$0xff] }
 0x381   : > { %2998 = vmatpush.msra.mxu2 %v5192_v38  ;;  %3218 = vmatpush.msrb.mxu0 %v2510_v8  ;;  %v2557_v38 = vld [vmem:[%s9017_s3 + $0x3c8] sm:$0xff]  ;;  %v2478_v8 = vld [vmem:[%s9017_s3 + $0x150] sm:$0xff] }
 0x382   : > { %2977 = vmatpush.msra.mxu3 %v5120_v26  ;;  %3074 = vmatpush.msra.mxu1 %v2532_v49  ;;  %v5265_v26 = vld [vmem:[%s9017_s3 + $0x9a0] sm:$0xff]  ;;  %v2485_v49 = vld [vmem:[%s9017_s3 + $0x188] sm:$0xff] }
 0x383   : > { %2871 = vmatmul.f32.vlgmr.msrb.gmra.mxu3 %v7565_v13  ;;  %2917 = vmatmul.f32.vlgmr.msrb.gmra.mxu2 %v7400_v43 }
 0x384   : > { %2978 = vmatpush.msra.mxu3 %v5116_v21  ;;  %5235 = vmatmul.msk.f32.vlgmr.msrb.gmra.mxu1 %vm2424_vm12, %v7693_v62  ;;  %v5293_v62 = vld [vmem:[%s9017_s3 + $0xa80] sm:$0xff]  ;;  %v2553_v21 = vld [vmem:[%s9017_s3 + $0x3a8] sm:$0xff] }
 0x385   : > { %3075 = vmatpush.msra.mxu1 %v2528_v23  ;;  %2999 = vmatpush.msra.mxu2 %v5188_v59  ;;  %v2474_v23 = vld [vmem:[%s9017_s3 + $0x130] sm:$0xff]  ;;  %v2481_v59 = vld [vmem:[%s9017_s3 + $0x168] sm:$0xff] }
 0x386   : > { %2979 = vmatpush.msra.mxu3 %v5112_v34  ;;  %3219 = vmatpush.msrb.mxu0 %v2506_v36  ;;  %v2549_v34 = vld [vmem:[%s9017_s3 + $0x388] sm:$0xff]  ;;  %v2470_v36 = vld [vmem:[%s9017_s3 + $0x110] sm:$0xff] }
 0x387   : > { %3076 = vmatpush.msra.mxu1 %v2524_v16  ;;  %3000 = vmatpush.msra.mxu2 %v5184_v33  ;;  %v5257_v16 = vld [vmem:[%s9017_s3 + $0x960] sm:$0xff]  ;;  %v2477_v33 = vld [vmem:[%s9017_s3 + $0x148] sm:$0xff] }
 0x388   : > { %2980 = vmatpush.msra.mxu3 %v5108_v3  ;;  %3220 = vmatpush.msrb.mxu0 %v2502_v12  ;;  %v2545_v3 = vld [vmem:[%s9017_s3 + $0x368] sm:$0xff]  ;;  %v2466_v12 = vld [vmem:[%s9017_s3 + $0xf0] sm:$0xff] }
 0x389   : > { %3077 = vmatpush.msra.mxu1 %v2520_v25  ;;  %3001 = vmatpush.msra.mxu2 %v5180_v6  ;;  %v5253_v25 = vld [vmem:[%s9017_s3 + $0x940] sm:$0xff]  ;;  %v3320_v6 = vld [vmem:[#allocation3] sm:$0xfc] }
 0x38a   : > { %3500 = vmatpush.msra.mxu0 %v5305_v48  ;;  %2981 = vmatpush.msra.mxu3 %v5104_v58  ;;  %v2541_v48 = vld [vmem:[%s9017_s3 + $0x348] sm:$0xff]  ;;  %v2462_v58 = vld [vmem:[%s9017_s3 + $0xd0] sm:$0xff] }
 0x38b   : > { %3078 = vmatpush.msra.mxu1 %v2516_v29  ;;  %3221 = vmatmul.f32.vlgmr.msrb.gmra.mxu0 %v7842_v15  ;;  %v5249_v29 = vld [vmem:[%s9017_s3 + $0x920] sm:$0xff] }
 0x38c   : > { %3002 = vmatpush.msra.mxu2 %v5176_v31  ;;  %3501 = vmatpush.msra.mxu0 %v5301_v5  ;;  %v2469_v31 = vld [vmem:[%s9017_s3 + $0x108] sm:$0xff] }
 0x38d   : > { %2874 = vmatmul.f32.gmra.mxu3 %v7606_v9  ;;  %2920 = vmatmul.f32.gmra.mxu2 %v7452_v51  ;;  %v2537_v5 = vld [vmem:[%s9017_s3 + $0x328] sm:$0xff] }
 0x38e   : > { %2982 = vmatpush.msra.mxu3 %v5100_v53  ;;  %5236 = vmatmul.msk.f32.gmra.mxu1 %vm2424_vm12, %v7741_v0  ;;  %v2568_v0 = vld [vmem:[%s9017_s3 + $0x420] sm:$0xff]  ;;  %v2458_v53 = vld [vmem:[%s9017_s3 + $0xb0] sm:$0xff] }
 0x38f   : > { %3079 = vmatpush.msra.mxu1 %v2512_v54  ;;  %3003 = vmatpush.msra.mxu2 %v5172_v35  ;;  %v3477_v54 = vrot.slane %v3320_v6, 2  ;;  %v3478_v35 = vrot.slane %v7389_v14, 2  ;;  %v5386_v14 = vld [vmem:[%s9017_s3 + $0xd68] sm:$0xff]  ;;  %v2495_v6 = vld [vmem:[%s9017_s3 + $0x1d8] sm:$0xff] }
 0x390   : > { %3502 = vmatpush.msra.mxu0 %v5297_v2  ;;  %2983 = vmatpush.msra.mxu3 %v5096_v39  ;;  %v5245_v2 = vld [vmem:[%s9017_s3 + $0x900] sm:$0xff]  ;;  %v2465_v39 = vld [vmem:[%s9017_s3 + $0xe8] sm:$0xff] }
 0x391   : > { %3080 = vmatpush.msra.mxu1 %v2508_v45  ;;  %3004 = vmatpush.msra.mxu2 %v5168_v46  ;;  %v2533_v45 = vld [vmem:[%s9017_s3 + $0x308] sm:$0xff]  ;;  %v2454_v46 = vld [vmem:[%s9017_s3 + $0x90] sm:$0xff] }
 0x392   : > { %3503 = vmatpush.msra.mxu0 %v5293_v62  ;;  %2984 = vmatpush.msra.mxu3 %v5092_v11  ;;  %v8046_v62 = vsel %vm1271_vm6, %v3477_v54, %v3478_v35  ;;  %v2461_v11 = vld [vmem:[%s9017_s3 + $0xc8] sm:$0xff]  ;;  %v5361_v54 = vld [vmem:[%s9017_s3 + $0xca0] sm:$0xff] }
 0x393   : > { %3081 = vmatpush.msra.mxu1 %v2504_v24  ;;  %3005 = vmatpush.msra.mxu2 %v5164_v42  ;;  %v2529_v24 = vld [vmem:[%s9017_s3 + $0x2e8] sm:$0xff] }
 0x394   : > { %3504 = vmatpush.msra.mxu0 %v5289_v47  ;;  %2985 = vmatpush.msra.mxu3 %v5088_v7  ;;  %v5382_v42 = vld [vmem:[%s9017_s3 + $0xd48] sm:$0xff]  ;;  %v2450_v47 = vld [vmem:[%s9017_s3 + $0x70] sm:$0xff] }
 0x395   : > { %3082 = vmatpush.msra.mxu1 %v2500_v55  ;;  %3224 = vmatmul.f32.gmra.mxu0 %v7551_v61  ;;  %v2457_v7 = vld [vmem:[%s9017_s3 + $0xa8] sm:$0xff] }
 0x396   : > { %3006 = vmatpush.msra.mxu2 %v5160_v44  ;;  %3102 = vmatpush.msrb.mxu3 %v2576_v10  ;;  %v2525_v55 = vld [vmem:[%s9017_s3 + $0x2c8] sm:$0xff] }
 0x397   : > { %3182 = vmatpush.msrb.mxu1 %v2498_v57  ;;  %3505 = vmatpush.msra.mxu0 %v5285_v1  ;;  %v5378_v44 = vld [vmem:[%s9017_s3 + $0xd28] sm:$0xff]  ;;  %v2446_v57 = vld [vmem:[%s9017_s3 + $0x50] sm:$0xff] }
 0x398   : > { %2986 = vmatmul.f32.vlgmr.msra.gmra.mxu3 %v7400_v43  ;;  %3083 = vmatmul.f32.vlgmr.msra.gmra.mxu1 %v7842_v15  ;;  %v5277_v43 = vld [vmem:[%s9017_s3 + $0xa00] sm:$0xff]  ;;  %v3323_v10 = vld [vmem:[#allocation3 + $0x30] sm:$0x3] }
 0x399   : > { %3007 = vmatpush.msra.mxu2 %v5156_v40  ;;  %3103 = vmatpush.msrb.mxu3 %v2572_v20  ;;  %v2453_v1 = vld [vmem:[%s9017_s3 + $0x88] sm:$0xff] }
 0x39a   : > { %3183 = vmatpush.msrb.mxu1 %v2494_v56  ;;  %3506 = vmatpush.msra.mxu0 %v5281_v50  ;;  %v2521_v40 = vld [vmem:[%s9017_s3 + $0x2a8] sm:$0xff]  ;;  %v2442_v56 = vld [vmem:[%s9017_s3 + $0x30] sm:$0xff] }
 0x39b   : > { %3008 = vmatpush.msra.mxu2 %v5152_v63  ;;  %3104 = vmatpush.msrb.mxu3 %v2568_v0  ;;  %v5374_v20 = vld [vmem:[%s9017_s3 + $0xd08] sm:$0xff]  ;;  %v5371_v50 = vld [vmem:[%s9017_s3 + $0xcf0] sm:$0xff]  ;;  %v3486_v63 = vrot.slane %v3323_v10, 2  ;;  %v2479_v10 = vld [vmem:[%s9017_s3 + $0x158] sm:$0xff] }
 0x39c   : > { %3184 = vmatpush.msrb.mxu1 %v2490_v37  ;;  %3507 = vmatpush.msra.mxu0 %v5277_v43  ;;  %v2449_v0 = vld [vmem:[%s9017_s3 + $0x68] sm:$0xff]  ;;  %v2438_v43 = vld [vmem:[%s9017_s3 + $0x10] sm:$0xff] }
 0x39d   : > { %3009 = vmatmul.f32.vlgmr.msra.gmra.mxu2 %v7565_v13  ;;  %3105 = vmatpush.msrb.mxu3 %v2564_v52  ;;  %v2489_v13 = vld [vmem:[%s9017_s3 + $0x1a8] sm:$0xff]  ;;  %v5367_v52 = vld [vmem:[%s9017_s3 + $0xcd0] sm:$0xff] }
 0x39e   : > { %3113 = vmatpush.msrb.mxu2 %v2497_v17  ;;  %3185 = vmatpush.msrb.mxu1 %v2486_v19  ;;  %v2517_v37 = vld [vmem:[%s9017_s3 + $0x288] sm:$0xff]  ;;  %v8106_v19 = vsel %vm1271_vm6, %v3478_v35, %v3486_v63  ;;  %v5343_v35 = vld [vmem:[%s9017_s3 + $0xc10] sm:$0xff]  ;;  %v2471_v63 = vld [vmem:[%s9017_s3 + $0x118] sm:$0xff] }
 0x39f   : > { %3508 = vmatpush.msra.mxu0 %v5273_v60  ;;  %3136 = vmatpush.msra.mxu3 %v2561_v27  ;;  %v2445_v17 = vld [vmem:[%s9017_s3 + $0x48] sm:$0xff]  ;;  %v2579_v27 = vld [vmem:[%s9017_s3 + $0x478] sm:$0xff] }
 0x3a0   : > { %3114 = vmatpush.msrb.mxu2 %v2493_v22  ;;  %3186 = vmatpush.msrb.mxu1 %v2482_v4  ;;  %v2513_v60 = vld [vmem:[%s9017_s3 + $0x268] sm:$0xff]  ;;  %v5363_v22 = vld [vmem:[%s9017_s3 + $0xcb0] sm:$0xff] }
 0x3a1   : > { %3509 = vmatpush.msra.mxu0 %v5269_v28  ;;  %2989 = vmatmul.f32.gmra.mxu3 %v7452_v51  ;;  %v5261_v51 = vld [vmem:[%s9017_s3 + $0x980] sm:$0xff]  ;;  %v2441_v4 = vld [vmem:[%s9017_s3 + $0x28] sm:$0xff] }
 0x3a2   : > { %3086 = vmatmul.f32.gmra.mxu1 %v7551_v61  ;;  %3115 = vmatpush.msrb.mxu2 %v2489_v13  ;;  %v2509_v28 = vld [vmem:[%s9017_s3 + $0x248] sm:$0xff]  ;;  %v2575_v13 = vld [vmem:[%s9017_s3 + $0x458] sm:$0xff] }
 0x3a3   : > { %3137 = vmatpush.msra.mxu3 %v2557_v38  ;;  %3187 = vmatpush.msrb.mxu1 %v2478_v8  ;;  %v5359_v38 = vld [vmem:[%s9017_s3 + $0xc90] sm:$0xff]  ;;  %v2437_v8 = vld [vmem:[%s9017_s3 + $0x8] sm:$0xff] }
 0x3a4   : > { %3510 = vmatpush.msra.mxu0 %v5265_v26  ;;  %3116 = vmatpush.msrb.mxu2 %v2485_v49  ;;  %v2505_v26 = vld [vmem:[%s9017_s3 + $0x228] sm:$0xff]  ;;  %v2571_v49 = vld [vmem:[%s9017_s3 + $0x438] sm:$0xff] }
 0x3a5   : > { %3138 = vmatpush.msra.mxu3 %v2553_v21  ;;  %3188 = vmatpush.msrb.mxu1 %v2474_v23  ;;  %v3322_v21 = vld [vmem:[#allocation3 + $0x10] sm:$0xfc]  ;;  %v2578_v23 = vld [vmem:[%s9017_s3 + $0x470] sm:$0xff] }
 0x3a6   : > { %3511 = vmatpush.msra.mxu0 %v5261_v51  ;;  %3012 = vmatmul.f32.gmra.mxu2 %v7606_v9  ;;  %v2473_v9 = vld [vmem:[%s9017_s3 + $0x128] sm:$0xff]  ;;  %v5355_v51 = vld [vmem:[%s9017_s3 + $0xc70] sm:$0xff] }
 0x3a7   : > { %3117 = vmatpush.msrb.mxu2 %v2481_v59  ;;  %3139 = vmatpush.msra.mxu3 %v2549_v34  ;;  %v3484_v59 = vrot.slane %v7679_v32, 2  ;;  %v2501_v34 = vld [vmem:[%s9017_s3 + $0x208] sm:$0xff] }
 0x3a8   : > { %3189 = vmatpush.msrb.mxu1 %v2470_v36  ;;  %3512 = vmatpush.msra.mxu0 %v5257_v16  ;;  %v2567_v36 = vld [vmem:[%s9017_s3 + $0x418] sm:$0xff]  ;;  %v3483_v16 = vrot.slane %v3322_v21, 2 }
 0x3a9   : > { %3118 = vmatpush.msrb.mxu2 %v2477_v33  ;;  %3140 = vmatpush.msra.mxu3 %v2545_v3  ;;  %v2574_v33 = vld [vmem:[%s9017_s3 + $0x450] sm:$0xff]  ;;  %v2499_v3 = vld [vmem:[%s9017_s3 + $0x1f8] sm:$0xff] }
 0x3aa   : > { %3190 = vmatpush.msrb.mxu1 %v2466_v12  ;;  %3513 = vmatpush.msra.mxu0 %v5253_v25  ;;  %v8161_v12 = vsel %vm1271_vm6, %v3483_v16, %v3484_v59  ;;  %v5351_v25 = vld [vmem:[%s9017_s3 + $0xc50] sm:$0xff]  ;;  %v8309_v21 = vld [vmem:[#allocation3 + $0x20] sm:$0xff] }
 0x3ab   : > { %5237 = vmatmul.msk.f32.vlgmr.msrb.gmra.mxu3 %vm2424_vm12, %v7685_v41  ;;  %3119 = vmatpush.msrb.mxu2 %v2473_v9  ;;  %v2570_v9 = vld [vmem:[%s9017_s3 + $0x430] sm:$0xff] }
 0x3ac   : > { %3141 = vmatpush.msra.mxu3 %v2541_v48  ;;  %3191 = vmatpush.msrb.mxu1 %v2462_v58  ;;  %v5365_v48 = vld [vmem:[%s9017_s3 + $0xcc0] sm:$0xff]  ;;  %v5347_v58 = vld [vmem:[%s9017_s3 + $0xc30] sm:$0xff] }
 0x3ad   : > { %3514 = vmatpush.msra.mxu0 %v5249_v29  ;;  %3120 = vmatpush.msrb.mxu2 %v2469_v31  ;;  %v2566_v29 = vld [vmem:[%s9017_s3 + $0x410] sm:$0xff]  ;;  %v3325_v31 = vld [vmem:[#allocation3 + $0x40] sm:$0x3] }
 0x3ae   : > { %3142 = vmatpush.msra.mxu3 %v2537_v5  ;;  %3192 = vmatpush.msrb.mxu1 %v2458_v53  ;;  %v8187_v5 = vld [vmem:[#allocation3 + $0x18] sm:$0xff]  ;;  %v2491_v53 = vld [vmem:[%s9017_s3 + $0x1b8] sm:$0xff] }
 0x3af   : > { %3515 = vmatpush.msra.mxu0 %v5245_v2  ;;  %3121 = vmatpush.msrb.mxu2 %v2465_v39  ;;  %v2563_v2 = vld [vmem:[%s9017_s3 + $0x3f8] sm:$0xff] }
 0x3b0   : > { %3143 = vmatpush.msra.mxu3 %v2533_v45  ;;  %3516 = vmatmul.f32.vlgmr.msra.gmra.mxu0 %v8046_v62  ;;  %v2487_v39 = vld [vmem:[%s9017_s3 + $0x198] sm:$0xff]  ;;  %v3490_v45 = vrot.slane %v3325_v31, 2 }
 0x3b1   : > { %3627 = vmatpush.msrb.mxu0 %v5386_v14  ;;  %3193 = vmatpush.msrb.mxu1 %v2454_v46  ;;  %v5357_v14 = vld [vmem:[%s9017_s3 + $0xc80] sm:$0xff]  ;;  %v5339_v46 = vld [vmem:[%s9017_s3 + $0xbf0] sm:$0xff] }
 0x3b2   : > { %3122 = vmatpush.msrb.mxu2 %v2461_v11  ;;  %3144 = vmatpush.msra.mxu3 %v2529_v24  ;;  %v2559_v11 = vld [vmem:[%s9017_s3 + $0x3d8] sm:$0xff]  ;;  %v5353_v24 = vld [vmem:[%s9017_s3 + $0xc60] sm:$0xff] }
 0x3b3   : > { %3628 = vmatpush.msrb.mxu0 %v5382_v42  ;;  %3194 = vmatpush.msrb.mxu1 %v2450_v47  ;;  %v8218_v42 = vpop.f32.mrf.mxu0  ;;  %v8221_v47 = vsel %vm1271_vm6, %v3484_v59, %v3490_v45  ;;  %v2531_v59 = vld [vmem:[%s9017_s3 + $0x2f8] sm:$0xff]  ;;  %v5309_v45 = vld [vmem:[%s9017_s3 + $0xb00] sm:$0xff] }
 0x3b4   : > { %5238 = vmatmul.msk.f32.gmra.mxu3 %vm2424_vm12, %v7679_v32  ;;  %3123 = vmatpush.msrb.mxu2 %v2457_v7  ;;  %v2483_v7 = vld [vmem:[%s9017_s3 + $0x178] sm:$0xff] }
 0x3b5   : > { %3145 = vmatpush.msra.mxu3 %v2525_v55  ;;  %3629 = vmatpush.msrb.mxu0 %v5378_v44  ;;  %v5335_v55 = vld [vmem:[%s9017_s3 + $0xbd0] sm:$0xff]  ;;  %v2555_v44 = vld [vmem:[%s9017_s3 + $0x3b8] sm:$0xff] }
 0x3b6   : > { %3195 = vmatpush.msrb.mxu1 %v2446_v57  ;;  %3124 = vmatpush.msrb.mxu2 %v2453_v1  ;;  %v5349_v57 = vld [vmem:[%s9017_s3 + $0xc40] sm:$0xff]  ;;  %v5331_v1 = vld [vmem:[%s9017_s3 + $0xbb0] sm:$0xff] }
 0x3b7   : > { %3146 = vmatpush.msra.mxu3 %v2521_v40  ;;  %3630 = vmatpush.msrb.mxu0 %v5374_v20  ;;  %v2551_v40 = vld [vmem:[%s9017_s3 + $0x398] sm:$0xff]  ;;  %v5345_v20 = vld [vmem:[%s9017_s3 + $0xc20] sm:$0xff] }
 0x3b8   : > { %3196 = vmatpush.msrb.mxu1 %v2442_v56  ;;  %3125 = vmatpush.msrb.mxu2 %v2449_v0  ;;  %v5327_v56 = vld [vmem:[%s9017_s3 + $0xb90] sm:$0xff]  ;;  %v5341_v0 = vld [vmem:[%s9017_s3 + $0xc00] sm:$0xff] }
 0x3b9   : > { %3661 = vmatpush.msra.mxu0 %v5371_v50  ;;  %3147 = vmatpush.msra.mxu3 %v2517_v37  ;;  %v2547_v50 = vld [vmem:[%s9017_s3 + $0x378] sm:$0xff]  ;;  %v5323_v37 = vld [vmem:[%s9017_s3 + $0xb70] sm:$0xff] }
 0x3ba   : > { %3519 = vmatmul.f32.gmra.mxu0 %v8106_v19  ;;  %3197 = vmatpush.msrb.mxu1 %v2438_v43  ;;  %v2543_v43 = vld [vmem:[%s9017_s3 + $0x358] sm:$0xff] }
 0x3bb   : > { %3662 = vmatpush.msra.mxu0 %v5367_v52  ;;  %3126 = vmatpush.msrb.mxu2 %v2445_v17  ;;  %v2467_v52 = vld [vmem:[%s9017_s3 + $0xf8] sm:$0xff]  ;;  %v5337_v17 = vld [vmem:[%s9017_s3 + $0xbe0] sm:$0xff] }
 0x3bc   : > { %3148 = vmatpush.msra.mxu3 %v2513_v60  ;;  %3198 = vmatmul.f32.vlgmr.msrb.gmra.mxu1 %v7631_v30  ;;  %v5319_v60 = vld [vmem:[%s9017_s3 + $0xb50] sm:$0xff] }
 0x3bd   : > { %3309 = vmatpush.msra.mxu1 %v2579_v27  ;;  %3663 = vmatpush.msra.mxu0 %v5363_v22  ;;  %v8284_v27 = vpop.f32.mrf.mxu0  ;;  %v2539_v22 = vld [vmem:[%s9017_s3 + $0x338] sm:$0xff] }
 0x3be   : > { %3127 = vmatpush.msrb.mxu2 %v2441_v4  ;;  %3149 = vmatpush.msra.mxu3 %v2509_v28  ;;  %v3321_v4 = vld [vmem:[#allocation3 + $0x8] sm:$0xfc] }
 0x3bf   : > { %3310 = vmatpush.msra.mxu1 %v2575_v13  ;;  %3664 = vmatpush.msra.mxu0 %v5359_v38  ;;  %v5333_v28 = vld [vmem:[%s9017_s3 + $0xbc0] sm:$0xff]  ;;  %v5315_v13 = vld [vmem:[%s9017_s3 + $0xb30] sm:$0xff]  ;;  %v2535_v38 = vld [vmem:[%s9017_s3 + $0x318] sm:$0xff] }
 0x3c0   : > { %3128 = vmatpush.msrb.mxu2 %v2437_v8  ;;  %3150 = vmatpush.msra.mxu3 %v2505_v26  ;;  %v2459_v8 = vld [vmem:[%s9017_s3 + $0xb8] sm:$0xff]  ;;  %v5329_v26 = vld [vmem:[%s9017_s3 + $0xba0] sm:$0xff] }
 0x3c1   : > { %3311 = vmatpush.msra.mxu1 %v2571_v49  ;;  %3129 = vmatmul.f32.vlgmr.msrb.gmra.mxu2 %v7631_v30  ;;  %v5369_v30 = vld [vmem:[%s9017_s3 + $0xce0] sm:$0xff]  ;;  %v3480_v49 = vrot.slane %v3321_v4, 2  ;;  %v5294_v4 = vld [vmem:[%s9017_s3 + $0xa88] sm:$0xff] }
 0x3c2   : > { %3240 = vmatpush.msra.mxu2 %v2578_v23  ;;  %3665 = vmatpush.msra.mxu0 %v5355_v51  ;;  %v3481_v23 = vrot.slane %v8309_v21, 2  ;;  %v5311_v51 = vld [vmem:[%s9017_s3 + $0xb10] sm:$0xff] }
 0x3c3   : > { %3151 = vmatpush.msra.mxu3 %v2501_v34  ;;  %3312 = vmatpush.msra.mxu1 %v2567_v36  ;;  %v2455_v34 = vld [vmem:[%s9017_s3 + $0x98] sm:$0xff]  ;;  %v5325_v36 = vld [vmem:[%s9017_s3 + $0xb80] sm:$0xff] }
 0x3c4   : > { %5391 = vmatmul.msk.f32.vlgmr.msrb.gmra.mxu0 %vm2424_vm12, %v8161_v12  ;;  %3152 = vmatmul.f32.vlgmr.msra.gmra.mxu3 %v7842_v15  ;;  %v8325_v16 = vsel %vm1271_vm6, %v3480_v49, %v3481_v23  ;;  %v5279_v49 = vld [vmem:[%s9017_s3 + $0xa10] sm:$0xff] }
 0x3c5   : > { %3241 = vmatpush.msra.mxu2 %v2574_v33  ;;  %3251 = vmatpush.msrb.mxu3 %v2499_v3  ;;  %v2527_v33 = vld [vmem:[%s9017_s3 + $0x2d8] sm:$0xff]  ;;  %v8330_v3 = vpop.f32.mrf.mxu1 }
 0x3c6   : > { %3523 = vmatpush.msrb.mxu1 %v5369_v30  ;;  %3666 = vmatpush.msra.mxu0 %v5351_v25  ;;  %v2451_v30 = vld [vmem:[%s9017_s3 + $0x78] sm:$0xff]  ;;  %v5321_v25 = vld [vmem:[%s9017_s3 + $0xb60] sm:$0xff] }
 0x3c7   : > { %3201 = vmatmul.f32.gmra.mxu1 %v8187_v5  ;;  %3242 = vmatpush.msra.mxu2 %v2570_v9  ;;  %v3324_v9 = vld [vmem:[#allocation3 + $0x38] sm:$0x3] }
 0x3c8   : > { %3252 = vmatpush.msrb.mxu3 %v2495_v6  ;;  %3524 = vmatpush.msrb.mxu1 %v5365_v48  ;;  %v2523_v6 = vld [vmem:[%s9017_s3 + $0x2b8] sm:$0xff]  ;;  %v3488_v31 = vrot.slane %v3324_v9, 2 }
 0x3c9   : > { %3667 = vmatpush.msra.mxu0 %v5347_v58  ;;  %3243 = vmatpush.msra.mxu2 %v2566_v29  ;;  %v5317_v58 = vld [vmem:[%s9017_s3 + $0xb40] sm:$0xff]  ;;  %v2519_v29 = vld [vmem:[%s9017_s3 + $0x298] sm:$0xff] }
 0x3ca   : > { %3253 = vmatpush.msrb.mxu3 %v2491_v53  ;;  %3525 = vmatpush.msrb.mxu1 %v5361_v54  ;;  %v2443_v53 = vld [vmem:[%s9017_s3 + $0x38] sm:$0xff]  ;;  %v5313_v54 = vld [vmem:[%s9017_s3 + $0xb20] sm:$0xff] }
 0x3cb   : > { %3668 = vmatpush.msra.mxu0 %v5343_v35  ;;  %3274 = vmatpush.msrb.mxu2 %v2563_v2  ;;  %v2515_v2 = vld [vmem:[%s9017_s3 + $0x278] sm:$0xff] }
 0x3cc   : > { %3132 = vmatmul.f32.gmra.mxu2 %v8187_v5  ;;  %3254 = vmatpush.msrb.mxu3 %v2487_v39  ;;  %v2439_v39 = vld [vmem:[%s9017_s3 + $0x18] sm:$0xff] }
 0x3cd   : > { %3526 = vmatpush.msrb.mxu1 %v5357_v14  ;;  %3669 = vmatpush.msra.mxu0 %v5339_v46  ;;  %v8344_v48 = vpop.f32.mrf.mxu0  ;;  %v8373_v14 = vsel %vm1271_vm6, %v3481_v23, %v3488_v31  ;;  %v2511_v46 = vld [vmem:[%s9017_s3 + $0x258] sm:$0xff]  ;;  %v5286_v23 = vld [vmem:[%s9017_s3 + $0xa48] sm:$0xff] }
 0x3ce   : > { %3275 = vmatpush.msrb.mxu2 %v2559_v11  ;;  %5392 = vmatmul.msk.f32.gmra.mxu0 %vm2424_vm12, %v8221_v47  ;;  %v5385_v11 = vld [vmem:[%s9017_s3 + $0xd60] sm:$0xff] }
 0x3cf   : > { %3155 = vmatmul.f32.gmra.mxu3 %v7551_v61  ;;  %3527 = vmatpush.msrb.mxu1 %v5353_v24  ;;  %v2475_v61 = vld [vmem:[%s9017_s3 + $0x138] sm:$0xff]  ;;  %v5307_v24 = vld [vmem:[%s9017_s3 + $0xaf0] sm:$0xff] }
 0x3d0   : > { %3255 = vmatpush.msrb.mxu3 %v2483_v7  ;;  %3670 = vmatpush.msra.mxu0 %v5335_v55  ;;  %v2507_v7 = vld [vmem:[%s9017_s3 + $0x238] sm:$0xff]  ;;  %v8388_v55 = vpop.f32.mrf.mxu1 }
 0x3d1   : > { %3276 = vmatpush.msrb.mxu2 %v2555_v44  ;;  %5243 = vmatmul.msk.f32.vlgmr.msra.gmra.mxu1 %vm2424_vm12, %v7685_v41  ;;  %v5525_v44 = vld [vmem:[#allocation3] sm:$0xff] }
 0x3d2   : > { %3256 = vmatpush.msrb.mxu3 %v2479_v10  ;;  %3528 = vmatpush.msrb.mxu1 %v5349_v57  ;;  %v5381_v10 = vld [vmem:[%s9017_s3 + $0xd40] sm:$0xff]  ;;  %v5303_v57 = vld [vmem:[%s9017_s3 + $0xad0] sm:$0xff] }
 0x3d3   : > { %3671 = vmatpush.msra.mxu0 %v5331_v1  ;;  %3277 = vmatpush.msrb.mxu2 %v2551_v40  ;;  %v8361_v35 = vpop.f32.mrf.mxu2  ;;  %v2503_v1 = vld [vmem:[%s9017_s3 + $0x218] sm:$0xff] }
 0x3d4   : > { %3257 = vmatpush.msrb.mxu3 %v2475_v61  ;;  %3529 = vmatpush.msrb.mxu1 %v5345_v20  ;;  %v5377_v61 = vld [vmem:[%s9017_s3 + $0xd20] sm:$0xff]  ;;  %v5299_v20 = vld [vmem:[%s9017_s3 + $0xab0] sm:$0xff] }
 0x3d5   : > { %3672 = vmatpush.msra.mxu0 %v5327_v56  ;;  %3278 = vmatpush.msrb.mxu2 %v2547_v50  ;;  %v8400_v40 = vpop.f32.mrf.mxu0  ;;  %v5306_v56 = vld [vmem:[%s9017_s3 + $0xae8] sm:$0xff]  ;;  %v5373_v50 = vld [vmem:[%s9017_s3 + $0xd00] sm:$0xff] }
 0x3d6   : > { %5241 = vmatmul.msk.f32.vlgmr.msra.gmra.mxu2 %vm2424_vm12, %v7685_v41  ;;  %3258 = vmatpush.msrb.mxu3 %v2471_v63  ;;  %v2463_v41 = vld [vmem:[%s9017_s3 + $0xd8] sm:$0xff] }
 0x3d7   : > { %3530 = vmatpush.msrb.mxu1 %v5341_v0  ;;  %3673 = vmatpush.msra.mxu0 %v5323_v37  ;;  %v5295_v0 = vld [vmem:[%s9017_s3 + $0xa90] sm:$0xff]  ;;  %v5302_v37 = vld [vmem:[%s9017_s3 + $0xac8] sm:$0xff] }
 0x3d8   : > { %3279 = vmatpush.msrb.mxu2 %v2543_v43  ;;  %3259 = vmatpush.msrb.mxu3 %v2467_v52  ;;  %v5370_v43 = vld [vmem:[%s9017_s3 + $0xce8] sm:$0xff]  ;;  %v5291_v52 = vld [vmem:[%s9017_s3 + $0xa70] sm:$0xff] }
 0x3d9   : > { %3531 = vmatpush.msrb.mxu1 %v5337_v17  ;;  %3674 = vmatpush.msra.mxu0 %v5319_v60  ;;  %v5298_v17 = vld [vmem:[%s9017_s3 + $0xaa8] sm:$0xff] }
 0x3da   : > { %3280 = vmatpush.msrb.mxu2 %v2539_v22  ;;  %5244 = vmatmul.msk.f32.gmra.mxu1 %vm2424_vm12, %v7679_v32  ;;  %v5366_v60 = vld [vmem:[%s9017_s3 + $0xcc8] sm:$0xff]  ;;  %v5287_v22 = vld [vmem:[%s9017_s3 + $0xa50] sm:$0xff] }
 0x3db   : > { %3260 = vmatpush.msrb.mxu3 %v2463_v41  ;;  %3532 = vmatpush.msrb.mxu1 %v5333_v28  ;;  %v2806_v63 = vpop.f32.mrf.mxu2  ;;  %v5362_v41 = vld [vmem:[%s9017_s3 + $0xca8] sm:$0xff]  ;;  %v5283_v28 = vld [vmem:[%s9017_s3 + $0xa30] sm:$0xff] }
 0x3dc   : > { %3675 = vmatpush.msra.mxu0 %v5315_v13  ;;  %3281 = vmatpush.msrb.mxu2 %v2535_v38  ;;  %v5358_v38 = vld [vmem:[%s9017_s3 + $0xc88] sm:$0xff]  ;;  %v2807_v9 = vadd.f32 %v2806_v63, %v8284_v27  ;;  %v5263_v27 = vld [vmem:[%s9017_s3 + $0x990] sm:$0xff] }
 0x3dd   : > { %3261 = vmatpush.msrb.mxu3 %v2459_v8  ;;  %3533 = vmatpush.msrb.mxu1 %v5329_v26  ;;  %v8449_v13 = vpop.f32.mrf.mxu0  ;;  %v5254_v63 = vld [vmem:[%s9017_s3 + $0x948] sm:$0xff] }
 0x3de   : > { %3676 = vmatpush.msra.mxu0 %v5311_v51  ;;  %3282 = vmatpush.msrb.mxu2 %v2531_v59  ;;  %v5354_v51 = vld [vmem:[%s9017_s3 + $0xc68] sm:$0xff]  ;;  %v5275_v59 = vld [vmem:[%s9017_s3 + $0x9f0] sm:$0xff] }
 0x3df   : > { %3677 = vmatmul.f32.vlgmr.msra.gmra.mxu0 %v8325_v16  ;;  %5242 = vmatmul.msk.f32.gmra.mxu2 %vm2424_vm12, %v7679_v32  ;;  %v2447_v32 = vld [vmem:[%s9017_s3 + $0x58] sm:$0xff] }
 0x3e0   : > { %3262 = vmatpush.msrb.mxu3 %v2455_v34  ;;  %3534 = vmatpush.msrb.mxu1 %v5325_v36  ;;  %v5350_v36 = vld [vmem:[%s9017_s3 + $0xc48] sm:$0xff] }
 0x3e1   : > { %3283 = vmatpush.msrb.mxu2 %v2527_v33  ;;  %v5271_v33 = vld [vmem:[%s9017_s3 + $0x9d0] sm:$0xff] }
 0x3e2   : > { %3263 = vmatpush.msrb.mxu3 %v2451_v30  ;;  %3535 = vmatpush.msrb.mxu1 %v5321_v25  ;;  %v5278_v30 = vld [vmem:[%s9017_s3 + $0xa08] sm:$0xff] }
 0x3e3   : > { %3284 = vmatpush.msrb.mxu2 %v2523_v6  ;;  %v5346_v25 = vld [vmem:[%s9017_s3 + $0xc28] sm:$0xff]  ;;  %v5267_v6 = vld [vmem:[%s9017_s3 + $0x9b0] sm:$0xff] }
 0x3e4   : > { %3264 = vmatpush.msrb.mxu3 %v2447_v32  ;;  %3536 = vmatpush.msrb.mxu1 %v5317_v58  ;;  %v5274_v32 = vld [vmem:[%s9017_s3 + $0x9e8] sm:$0xff] }
 0x3e5   : > { %3285 = vmatpush.msrb.mxu2 %v2519_v29  ;;  %v5342_v58 = vld [vmem:[%s9017_s3 + $0xc08] sm:$0xff] }
 0x3e6   : > { %3265 = vmatpush.msrb.mxu3 %v2443_v53  ;;  %3537 = vmatpush.msrb.mxu1 %v5313_v54  ;;  %v3064_v54 = vpop.f32.mrf.mxu0 }
 0x3e7   : > { %3286 = vmatpush.msrb.mxu2 %v2515_v2  ;;  %3680 = vmatmul.f32.gmra.mxu0 %v8373_v14  ;;  %v5270_v2 = vld [vmem:[%s9017_s3 + $0x9c8] sm:$0xff] }
 0x3e8   : > { %3266 = vmatpush.msrb.mxu3 %v2439_v39  ;;  %3538 = vmatpush.msrb.mxu1 %v5309_v45  ;;  %v5338_v39 = vld [vmem:[%s9017_s3 + $0xbe8] sm:$0xff]  ;;  %v5259_v45 = vld [vmem:[%s9017_s3 + $0x970] sm:$0xff] }
 0x3e9   : > { %3267 = vmatmul.f32.vlgmr.msrb.gmra.mxu3 %v5525_v44  ;;  %3287 = vmatpush.msrb.mxu2 %v2511_v46  ;;  %v5255_v44 = vld [vmem:[%s9017_s3 + $0x950] sm:$0xff] }
 0x3ea   : > { %3539 = vmatmul.f32.vlgmr.msrb.gmra.mxu1 %v8325_v16  ;;  %3558 = vmatpush.msra.mxu3 %v5385_v11  ;;  %v5266_v11 = vld [vmem:[%s9017_s3 + $0x9a8] sm:$0xff] }
 0x3eb   : > { %3638 = vmatpush.msra.mxu1 %v5307_v24  ;;  %3288 = vmatpush.msrb.mxu2 %v2507_v7  ;;  %v5334_v24 = vld [vmem:[%s9017_s3 + $0xbc8] sm:$0xff] }
 0x3ec   : > { %3559 = vmatpush.msra.mxu3 %v5381_v10  ;;  %v5262_v10 = vld [vmem:[%s9017_s3 + $0x988] sm:$0xff] }
 0x3ed   : > { %3639 = vmatpush.msra.mxu1 %v5303_v57  ;;  %3289 = vmatpush.msrb.mxu2 %v2503_v1  ;;  %v5330_v57 = vld [vmem:[%s9017_s3 + $0xba8] sm:$0xff]  ;;  %v5251_v1 = vld [vmem:[%s9017_s3 + $0x930] sm:$0xff] }
 0x3ee   : > { %3560 = vmatpush.msra.mxu3 %v5377_v61  ;;  %3290 = vmatmul.f32.vlgmr.msrb.gmra.mxu2 %v7842_v15  ;;  %v5258_v61 = vld [vmem:[%s9017_s3 + $0x968] sm:$0xff] }
 0x3ef   : > { %3640 = vmatpush.msra.mxu1 %v5299_v20  ;;  %3569 = vmatpush.msra.mxu2 %v5306_v56  ;;  %v5326_v20 = vld [vmem:[%s9017_s3 + $0xb88] sm:$0xff]  ;;  %v5247_v56 = vld [vmem:[%s9017_s3 + $0x910] sm:$0xff] }
 0x3f0   : > { %3561 = vmatpush.msra.mxu3 %v5373_v50  ;;  %v8427_v15 = vpop.f32.mrf.mxu1 }
 0x3f1   : > { %3641 = vmatpush.msra.mxu1 %v5295_v0  ;;  %3570 = vmatpush.msra.mxu2 %v5302_v37  ;;  %v5322_v0 = vld [vmem:[%s9017_s3 + $0xb68] sm:$0xff] }
 0x3f2   : > { %3592 = vmatpush.msrb.mxu3 %v5370_v43  ;;  %3542 = vmatmul.f32.gmra.mxu1 %v8373_v14 }
 0x3f3   : > { %3270 = vmatmul.f32.gmra.mxu3 %v8187_v5  ;;  %3642 = vmatpush.msra.mxu1 %v5291_v52  ;;  %v5290_v5 = vld [vmem:[%s9017_s3 + $0xa68] sm:$0xff] }
 0x3f4   : > { %3571 = vmatpush.msra.mxu2 %v5298_v17  ;;  %3593 = vmatpush.msrb.mxu3 %v5366_v60  ;;  %v5250_v52 = vld [vmem:[%s9017_s3 + $0x928] sm:$0xff] }
 0x3f5   : > { %3643 = vmatpush.msra.mxu1 %v5287_v22  ;;  %v8457_v8 = vpop.f32.mrf.mxu3  ;;  %v8459_v26 = vpop.f32.mrf.mxu2  ;;  %v5318_v17 = vld [vmem:[%s9017_s3 + $0xb48] sm:$0xff] }
 0x3f6   : > { %3572 = vmatpush.msra.mxu2 %v5294_v4  ;;  %3594 = vmatpush.msrb.mxu3 %v5362_v41  ;;  %v5246_v22 = vld [vmem:[%s9017_s3 + $0x908] sm:$0xff] }
 0x3f7   : > { %3644 = vmatpush.msra.mxu1 %v5283_v28  ;;  %3293 = vmatmul.f32.gmra.mxu2 %v8309_v21  ;;  %v5282_v21 = vld [vmem:[%s9017_s3 + $0xa28] sm:$0xff]  ;;  %v5387_v28 = vld [vmem:[%s9017_s3 + $0xd70] sm:$0xff] }
 0x3f8   : > { %3573 = vmatpush.msra.mxu2 %v5290_v5  ;;  %3595 = vmatpush.msrb.mxu3 %v5358_v38  ;;  %v8474_v34 = vpop.f32.mrf.mxu1  ;;  %v5314_v4 = vld [vmem:[%s9017_s3 + $0xb28] sm:$0xff]  ;;  %v2804_v38 = vadd.f32 %v8361_v35, %v8218_v42  ;;  %v5379_v35 = vld [vmem:[%s9017_s3 + $0xd30] sm:$0xff] }
 0x3f9   : > { %3645 = vmatpush.msra.mxu1 %v5279_v49  ;;  %v5310_v5 = vld [vmem:[%s9017_s3 + $0xb08] sm:$0xff]  ;;  %v5380_v49 = vld [vmem:[%s9017_s3 + $0xd38] sm:$0xff] }
 0x3fa   : > { %3574 = vmatpush.msra.mxu2 %v5286_v23  ;;  %3596 = vmatpush.msrb.mxu3 %v5354_v51  ;;  %v5383_v23 = vld [vmem:[%s9017_s3 + $0xd50] sm:$0xff]  ;;  %v5308_v51 = vld [vmem:[%s9017_s3 + $0xaf8] sm:$0xff] }
 0x3fb   : > { %5389 = vmatmul.msk.f32.vlgmr.msra.gmra.mxu3 %vm2424_vm12, %v8161_v12  ;;  %3646 = vmatpush.msra.mxu1 %v5275_v59  ;;  %v2827_v59 = vadd.f32 %v8457_v8, %v2804_v38  ;;  %v5376_v8 = vld [vmem:[%s9017_s3 + $0xd18] sm:$0xff] }
 0x3fc   : > { %3575 = vmatpush.msra.mxu2 %v5282_v21  ;;  %3597 = vmatpush.msrb.mxu3 %v5350_v36  ;;  %v5304_v21 = vld [vmem:[%s9017_s3 + $0xad8] sm:$0xff] }
 0x3fd   : > { %3647 = vmatpush.msra.mxu1 %v5271_v33  ;;  %v2829_v29 = vpop.f32.mrf.mxu3  ;;  %v5248_v38 = vld [vmem:[%s9017_s3 + $0x918] sm:$0xff] }
 0x3fe   : > { %3576 = vmatpush.msra.mxu2 %v5278_v30  ;;  %3598 = vmatpush.msrb.mxu3 %v5346_v25  ;;  %v2830_v31 = vadd.f32 %v2829_v29, %v2807_v9  ;;  %v8506_v53 = vpop.f32.mrf.mxu2  ;;  %v5375_v30 = vld [vmem:[%s9017_s3 + $0xd10] sm:$0xff]  ;;  %v5300_v25 = vld [vmem:[%s9017_s3 + $0xab8] sm:$0xff] }
 0x3ff   : > { %3648 = vmatpush.msra.mxu1 %v5267_v6  ;;  %v3062_v6 = vadd.f32 %v8449_v13, %v2827_v59  ;;  %v5364_v13 = vld [vmem:[%s9017_s3 + $0xcb8] sm:$0xff] }
 0x400   : > { %3577 = vmatpush.msra.mxu2 %v5274_v32  ;;  %3599 = vmatpush.msrb.mxu3 %v5342_v58  ;;  %v8517_v46 = vadd.f32 %v3064_v54, %v2830_v31  ;;  %v5296_v32 = vld [vmem:[%s9017_s3 + $0xa98] sm:$0xff] }
 0x401   : > { %3649 = vmatpush.msra.mxu1 %v5263_v27  ;;  %v8525_v7 = vpop.f32.mrf.mxu1  ;;  %v5292_v27 = vld [vmem:[%s9017_s3 + $0xa78] sm:$0xff] }
 0x402   : > { %3578 = vmatpush.msra.mxu2 %v5270_v2  ;;  %3600 = vmatpush.msrb.mxu3 %v5338_v39  ;;  %v5288_v31 = vld [vmem:[%s9017_s3 + $0xa58] sm:$0xff] }
 0x403   : > { %5390 = vmatmul.msk.f32.gmra.mxu3 %vm2424_vm12, %v8221_v47  ;;  %3650 = vmatpush.msra.mxu1 %v5259_v45  ;;  %v5360_v54 = vld [vmem:[%s9017_s3 + $0xc98] sm:$0xff] }
 0x404   : > { %3579 = vmatpush.msra.mxu2 %v5266_v11  ;;  %3601 = vmatpush.msrb.mxu3 %v5334_v24  ;;  %v5284_v2 = vld [vmem:[%s9017_s3 + $0xa38] sm:$0xff] }
 0x405   : > { %3651 = vmatpush.msra.mxu1 %v5255_v44  ;;  %v5356_v45 = vld [vmem:[%s9017_s3 + $0xc78] sm:$0xff] }
 0x406   : > { %3580 = vmatpush.msra.mxu2 %v5262_v10  ;;  %3602 = vmatpush.msrb.mxu3 %v5330_v57  ;;  %v2918_v50 = vpop.f32.mrf.mxu2  ;;  %v8556_v37 = vpop.f32.mrf.mxu3  ;;  %v5280_v11 = vld [vmem:[%s9017_s3 + $0xa18] sm:$0xff] }
 0x407   : > { %3652 = vmatpush.msra.mxu1 %v5251_v1  ;;  %v2942_v43 = vadd.f32 %v8344_v48, %v2918_v50  ;;  %v5388_v48 = vld [vmem:[%s9017_s3 + $0xd78] sm:$0xff] }
 0x408   : > { %3581 = vmatpush.msra.mxu2 %v5258_v61  ;;  %3603 = vmatpush.msrb.mxu3 %v5326_v20  ;;  %v5352_v24 = vld [vmem:[%s9017_s3 + $0xc58] sm:$0xff] }
 0x409   : > { %3653 = vmatpush.msra.mxu1 %v5247_v56  ;;  %v8566_v60 = vadd.f32 %v8427_v15, %v2942_v43  ;;  %v5384_v15 = vld [vmem:[%s9017_s3 + $0xd58] sm:$0xff] }
 0x40a   : > { %3582 = vmatpush.msra.mxu2 %v5254_v63  ;;  %3604 = vmatpush.msrb.mxu3 %v5322_v0  ;;  %v5276_v44 = vld [vmem:[%s9017_s3 + $0x9f8] sm:$0xff] }
 0x40b   : > { %3654 = vmatmul.f32.vlgmr.msra.gmra.mxu1 %v8046_v62  ;;  %v8578_v41 = vpop.f32.mrf.mxu1  ;;  %v5348_v57 = vld [vmem:[%s9017_s3 + $0xc38] sm:$0xff] }
 0x40c   : > { %3583 = vmatpush.msra.mxu2 %v5250_v52  ;;  %3605 = vmatpush.msrb.mxu3 %v5318_v17  ;;  %v5272_v20 = vld [vmem:[%s9017_s3 + $0x9d8] sm:$0xff] }
 0x40d   : > { %3765 = vmatpush.msrb.mxu1 %v5388_v48  ;;  %v5344_v50 = vld [vmem:[%s9017_s3 + $0xc18] sm:$0xff] }
 0x40e   : > { %3584 = vmatpush.msra.mxu2 %v5246_v22  ;;  %3606 = vmatpush.msrb.mxu3 %v5314_v4  ;;  %v5340_v63 = vld [vmem:[%s9017_s3 + $0xbf8] sm:$0xff] }
 0x40f   : > { %3585 = vmatmul.f32.vlgmr.msra.gmra.mxu2 %v8046_v62  ;;  %3766 = vmatpush.msrb.mxu1 %v5384_v15  ;;  %v5264_v43 = vld [vmem:[%s9017_s3 + $0x998] sm:$0xff] }
 0x410   : > { %3696 = vmatpush.msrb.mxu2 %v5387_v28  ;;  %3607 = vmatpush.msrb.mxu3 %v5310_v5  ;;  %v2921_v42 = vpop.f32.mrf.mxu2  ;;  %v8609_v36 = vpop.f32.mrf.mxu3  ;;  %v5336_v52 = vld [vmem:[%s9017_s3 + $0xbd8] sm:$0xff] }
 0x411   : > { %3608 = vmatmul.f32.vlgmr.msrb.gmra.mxu3 %v8325_v16  ;;  %3767 = vmatpush.msrb.mxu1 %v5380_v49  ;;  %v2945_v33 = vadd.f32 %v8400_v40, %v2921_v42  ;;  %v5372_v40 = vld [vmem:[%s9017_s3 + $0xcf8] sm:$0xff] }
 0x412   : > { %3697 = vmatpush.msrb.mxu2 %v5383_v23  ;;  %3707 = vmatpush.msra.mxu3 %v5308_v51  ;;  %v5332_v17 = vld [vmem:[%s9017_s3 + $0xbb8] sm:$0xff] }
 0x413   : > { %3657 = vmatmul.f32.gmra.mxu1 %v8106_v19  ;;  %v8623_v9 = vadd.f32 %v8474_v34, %v2945_v33  ;;  %v5368_v34 = vld [vmem:[%s9017_s3 + $0xcd8] sm:$0xff] }
 0x414   : > { %3698 = vmatpush.msrb.mxu2 %v5379_v35  ;;  %3708 = vmatpush.msra.mxu3 %v5304_v21  ;;  %v5256_v48 = vld [vmem:[%s9017_s3 + $0x958] sm:$0xff]  ;;  %v2873_v21 = vadd.f32 %v8556_v37, %v8330_v3 }
 0x415   : > { %3768 = vmatpush.msrb.mxu1 %v5376_v8  ;;  %v3084_v58 = vpop.f32.mrf.mxu1  ;;  %v5328_v4 = vld [vmem:[%s9017_s3 + $0xb98] sm:$0xff] }
 0x416   : > { %3699 = vmatpush.msrb.mxu2 %v5375_v30  ;;  %3709 = vmatpush.msra.mxu3 %v5300_v25  ;;  %v8635_v29 = vadd.f32 %v3084_v58, %v3062_v6  ;;  %v5324_v28 = vld [vmem:[%s9017_s3 + $0xb78] sm:$0xff]  ;;  %v2876_v30 = vadd.f32 %v8609_v36, %v8388_v55  ;;  %v3176_v6 = vpop.f32.mrf.mxu0 }
 0x417   : > { %3588 = vmatmul.f32.gmra.mxu2 %v8106_v19  ;;  %v5320_v49 = vld [vmem:[%s9017_s3 + $0xb58] sm:$0xff] }
 0x418   : > { %3730 = vmatpush.msra.mxu2 %v5372_v40  ;;  %3710 = vmatpush.msra.mxu3 %v5296_v32  ;;  %v5312_v59 = vld [vmem:[%s9017_s3 + $0xb18] sm:$0xff]  ;;  %v2899_v25 = vadd.f32 %v8506_v53, %v2876_v30 }
 0x419   : > { %3611 = vmatmul.f32.gmra.mxu3 %v8373_v14 }
 0x41a   : > { %3731 = vmatpush.msra.mxu2 %v5368_v34  ;;  %3711 = vmatpush.msra.mxu3 %v5292_v27 }
 0x41b   : > { %5395 = vmatmul.msk.f32.vlgmr.msrb.gmra.mxu1 %vm2424_vm12, %v8161_v12  ;;  %v2987_v39 = vpop.f32.mrf.mxu3 }
 0x41c   : > { %3732 = vmatpush.msra.mxu2 %v5364_v13  ;;  %3712 = vmatpush.msra.mxu3 %v5288_v31 }
 0x41e   : > { %3733 = vmatpush.msra.mxu2 %v5360_v54  ;;  %3713 = vmatpush.msra.mxu3 %v5284_v2  ;;  %v8749_v32 = vpop.f32.mrf.mxu0 }
 0x41f   : > { %v3087_v10 = vpop.f32.mrf.mxu1  ;;  %5393 = vmatmul.msk.f32.vlgmr.msrb.gmra.mxu2 %vm2424_vm12, %v8161_v12  ;;  %v5268_v12 = vld [vmem:[%s9017_s3 + $0x9b8] sm:$0xff] }
 0x420   : > { %3734 = vmatpush.msra.mxu2 %v5356_v45  ;;  %3714 = vmatpush.msra.mxu3 %v5280_v11  ;;  %v3088_v1 = vadd.f32 %v3087_v10, %v8517_v46  ;;  %v3010_v61 = vpop.f32.mrf.mxu2 }
 0x421   : > { %v3011_v56 = vadd.f32 %v3010_v61, %v2987_v39 }
 0x422   : > { %3735 = vmatpush.msra.mxu2 %v5352_v24  ;;  %3715 = vmatpush.msra.mxu3 %v5276_v44 }
 0x423   : > { %5396 = vmatmul.msk.f32.gmra.mxu1 %vm2424_vm12, %v8221_v47  ;;  %v8686_v46 = vadd.f32 %v8525_v7, %v3011_v56  ;;  %v5260_v7 = vld [vmem:[%s9017_s3 + $0x978] sm:$0xff] }
 0x424   : > { %3736 = vmatpush.msra.mxu2 %v5348_v57  ;;  %3716 = vmatpush.msra.mxu3 %v5272_v20  ;;  %v2990_v0 = vpop.f32.mrf.mxu3 }
 0x426   : > { %3737 = vmatpush.msra.mxu2 %v5344_v50  ;;  %3717 = vmatpush.msra.mxu3 %v5268_v12 }
 0x427   : > { %5394 = vmatmul.msk.f32.gmra.mxu2 %vm2424_vm12, %v8221_v47  ;;  %v5252_v47 = vld [vmem:[%s9017_s3 + $0x938] sm:$0xff] }
 0x428   : > { %3738 = vmatpush.msra.mxu2 %v5340_v63  ;;  %3718 = vmatpush.msra.mxu3 %v5264_v43 }
 0x429   : > { %v3013_v22 = vpop.f32.mrf.mxu2 }
 0x42a   : > { %3739 = vmatpush.msra.mxu2 %v5336_v52  ;;  %3719 = vmatpush.msra.mxu3 %v5260_v7  ;;  %v3014_v15 = vadd.f32 %v3013_v22, %v2990_v0 }
 0x42c   : > { %3740 = vmatpush.msra.mxu2 %v5332_v17  ;;  %3720 = vmatpush.msra.mxu3 %v5256_v48  ;;  %v8718_v5 = vadd.f32 %v8578_v41, %v3014_v15  ;;  %v5316_v41 = vld [vmem:[%s9017_s3 + $0xb38] sm:$0xff]  ;;  %v8764_v15 = vld [vmem:[%s9018_s4] sm:$0xf] }
 0x42e   : > { %3741 = vmatpush.msra.mxu2 %v5328_v4  ;;  %3721 = vmatpush.msra.mxu3 %v5252_v47  ;;  %v3107_v23 = vpop.f32.mrf.mxu3 }
 0x42f   : > { %v8727_v51 = vadd.f32 %v3107_v23, %v8635_v29 }
 0x430   : > { %3742 = vmatpush.msra.mxu2 %v5324_v28  ;;  %3722 = vmatpush.msra.mxu3 %v5248_v38  ;;  %v3788_v38 = vperm.slane %v8764_v15, 2 }
 0x431   : > { %3723 = vmatmul.f32.vlgmr.msra.gmra.mxu3 %v8046_v62  ;;  %v2896_v62 = vadd.f32 %v8459_v26, %v2873_v21 }
 0x432   : > { %3743 = vmatpush.msra.mxu2 %v5320_v49 }
 0x434   : > { %3744 = vmatpush.msra.mxu2 %v5316_v41 }
 0x436   : > { %3745 = vmatpush.msra.mxu2 %v5312_v59 }
 0x437   : > { %3746 = vmatmul.f32.vlgmr.msra.gmra.mxu2 %v8325_v16  ;;  %v3110_v42 = vpop.f32.mrf.mxu3 }
 0x438   : > { %v8737_v35 = vadd.f32 %v3110_v42, %v3088_v1 }
 0x439   : > { %3726 = vmatmul.f32.gmra.mxu3 %v8106_v19  ;;  %v3199_v19 = vpop.f32.mrf.mxu1 }
 0x43a   : > { %v3200_v56 = vadd.f32 %v3199_v19, %v8566_v60 }
 0x43f   : > { %3749 = vmatmul.f32.gmra.mxu2 %v8373_v14  ;;  %v3222_v14 = vpop.f32.mrf.mxu0 }
 0x440   : > { %v3223_v43 = vadd.f32 %v3222_v14, %v3200_v56  ;;  %v3786_v14 = vperm.slane %v8764_v15, 0 }
 0x444   : > { %v3130_v33 = vpop.f32.mrf.mxu2  ;;  %v3202_v3 = vpop.f32.mrf.mxu1 }
 0x445   : > { %v3131_v8 = vadd.f32 %v3130_v33, %v2896_v62  ;;  %v3203_v0 = vadd.f32 %v3202_v3, %v8623_v9 }
 0x447   : > { %v3153_v58 = vpop.f32.mrf.mxu3  ;;  %v3225_v37 = vpop.f32.mrf.mxu0 }
 0x448   : > { %v3226_v22 = vadd.f32 %v3225_v37, %v3203_v0  ;;  %v3154_v47 = vadd.f32 %v3153_v58, %v3131_v8  ;;  %v3787_v8 = vperm.slane %v8764_v15, 1 }
 0x44a   : > { %v3177_v21 = vadd.f32 %v3176_v6, %v3154_v47  ;;  %v3987_v47 = vld [vmem:[#allocation8 + $0x2f0] sm:$0xff] }
 0x44b   : > { %4065 = vmatpush.msrb.mxu3 %v3987_v47  ;;  %v3961_v47 = vld [vmem:[#allocation8 + $0x220] sm:$0xff] }
 0x44e   : > { %v8751_v13 = vpop.f32.mrf.mxu1 }
 0x44f   : > { %v3133_v16 = vpop.f32.mrf.mxu2  ;;  %v3517_v27 = vpop.f32.mrf.mxu0 }
 0x450   : > { %v8747_v40 = vadd.f32 %v3133_v16, %v2899_v25 }
 0x452   : > { %v3156_v26 = vpop.f32.mrf.mxu3 }
 0x457   : > { %v3520_v53 = vpop.f32.mrf.mxu0  ;;  %v8753_v31 = vpop.f32.mrf.mxu1 }
 0x459   : > { %v3245_v34 = vpop.f32.mrf.mxu2 }
 0x45a   : > { %v3246_v17 = vadd.f32 %v3245_v34, %v3223_v43 }
 0x45f   : > { %v3632_v45 = vpop.f32.mrf.mxu0 }
 0x462   : > { %v3248_v29 = vpop.f32.mrf.mxu2 }
 0x463   : > { %v3249_v23 = vadd.f32 %v3248_v29, %v3226_v22 }
 0x467   : > { %v3540_v39 = vpop.f32.mrf.mxu1  ;;  %v3635_v10 = vpop.f32.mrf.mxu0 }
 0x468   : > { %v3541_v9 = vadd.f32 %v3540_v39, %v3517_v27 }
 0x46c   : > { %v3268_v55 = vpop.f32.mrf.mxu3 }
 0x46d   : > { %v3269_v3 = vadd.f32 %v3268_v55, %v8686_v46 }
 0x46f   : > { %v3543_v44 = vpop.f32.mrf.mxu1  ;;  %v3678_v20 = vpop.f32.mrf.mxu0 }
 0x471   : > { %v3291_v36 = vpop.f32.mrf.mxu2 }
 0x476   : > { %v8755_v54 = vpop.f32.mrf.mxu3 }
 0x477   : > { %v3681_v4 = vpop.f32.mrf.mxu0 }
 0x47a   : > { %v8757_v2 = vpop.f32.mrf.mxu2 }
 0x47e   : > { %v3563_v11 = vpop.f32.mrf.mxu3 }
 0x47f   : > { %v3564_v62 = vadd.f32 %v3563_v11, %v3541_v9  ;;  %v3983_v9 = vld [vmem:[#allocation8 + $0x2d0] sm:$0xff] }
 0x481   : > { %v3776_v19 = vadd.f32 %v3564_v62, %v8727_v51  ;;  %v3157_v51 = vadd.f32 %v3156_v26, %v8747_v40  ;;  %v3789_v26 = vperm.slane %v8764_v15, 3  ;;  %v3949_v62 = vld [vmem:[#allocation8 + $0x1c0] sm:$0xff] }
 0x483   : > { %v8783_v27 = vadd.f32 %v3786_v14, %v3776_v19  ;;  %v3977_v19 = vld [vmem:[#allocation8 + $0x2a0] sm:$0xff] }
 0x486   : > { %v3566_v57 = vpop.f32.mrf.mxu3 }
 0x488   : > { %v3655_v61 = vpop.f32.mrf.mxu1 }
 0x489   : > { %v3679_v63 = vadd.f32 %v3678_v20, %v3655_v61  ;;  %v3802_v61 = vmax.f32 %v8783_v27, 0.0 }
 0x490   : > { %v3658_v7 = vpop.f32.mrf.mxu1 }
 0x491   : > { %v3682_v28 = vadd.f32 %v3681_v4, %v3658_v7 }
 0x492   : > { %v3586_v24 = vpop.f32.mrf.mxu2 }
 0x494   : > { %v3609_v50 = vpop.f32.mrf.mxu3 }
 0x495   : > { %v3610_v48 = vadd.f32 %v3609_v50, %v3586_v24  ;;  %v3544_v24 = vadd.f32 %v3543_v44, %v3520_v53  ;;  %v3180_v50 = vadd.f32 %v8749_v32, %v3157_v51  ;;  %v3943_v51 = vld [vmem:[#allocation8 + $0x190] sm:$0xff] }
 0x497   : > { %v3633_v41 = vadd.f32 %v3632_v45, %v3610_v48  ;;  %v3292_v45 = vadd.f32 %v3291_v36, %v3269_v3  ;;  %v3945_v3 = vld [vmem:[#allocation8 + $0x1a0] sm:$0xff] }
 0x498   : > { %v3770_v46 = vpop.f32.mrf.mxu1 }
 0x499   : > { %v3777_v25 = vadd.f32 %v3633_v41, %v3177_v21  ;;  %v3919_v41 = vld [vmem:[#allocation8 + $0xd0] sm:$0xff]  ;;  %v3917_v21 = vld [vmem:[#allocation8 + $0xc0] sm:$0xff] }
 0x49a   : > { %v3589_v1 = vpop.f32.mrf.mxu2 }
 0x49b   : > { %v8781_v37 = vadd.f32 %v3787_v8, %v3777_v25  ;;  %v3915_v25 = vld [vmem:[#allocation8 + $0xb0] sm:$0xff] }
 0x49c   : > { %v3612_v42 = vpop.f32.mrf.mxu3 }
 0x49d   : > { %v3613_v39 = vadd.f32 %v3612_v42, %v3589_v1  ;;  %v3803_v11 = vmax.f32 %v8781_v37, 0.0  ;;  %v3272_v1 = vadd.f32 %v8755_v54, %v8718_v5  ;;  %v3981_v42 = vld [vmem:[#allocation8 + $0x2c0] sm:$0xff] }
 0x49f   : > { %v3636_v20 = vadd.f32 %v3635_v10, %v3613_v39  ;;  %v5513_v40 = vpack.i.bf16 %v3803_v11, %v3802_v61  ;;  %v3295_v32 = vadd.f32 %v8757_v2, %v3272_v1  ;;  %v3911_v39 = vld [vmem:[#allocation8 + $0x90] sm:$0xff] }
 0x4a0   : > { %v3939_v1 = vld [vmem:[#allocation8 + $0x170] sm:$0xff] }
 0x4a1   : > { %v3781_v36 = vadd.f32 %v3636_v20, %v3180_v50  ;;  %v3318_v7 = vadd.f32 %v8753_v31, %v3295_v32  ;;  %v3941_v20 = vld [vmem:[#allocation8 + $0x180] sm:$0xff]  ;;  %v3935_v32 = vld [vmem:[#allocation8 + $0x150] sm:$0xff] }
 0x4a2   : > { %v3701_v12 = vpop.f32.mrf.mxu2  ;;  %v4005_v50 = vld [vmem:[#allocation8 + $0x380] sm:$0xff] }
 0x4a3   : > { %v3702_v52 = vadd.f32 %v3701_v12, %v3679_v63  ;;  %v3315_v12 = vadd.f32 %v8751_v13, %v3292_v45  ;;  %v3567_v63 = vadd.f32 %v3566_v57, %v3544_v24  ;;  %v8804_v43 = vadd.f32 %v3787_v8, %v3781_v36  ;;  %v3947_v8 = vld [vmem:[#allocation8 + $0x1b0] sm:$0xff]  ;;  %v4009_v45 = vld [vmem:[#allocation8 + $0x3a0] sm:$0xff] }
 0x4a4   : > { %v3909_v24 = vld [vmem:[#allocation8 + $0x80] sm:$0xff]  ;;  %v3967_v36 = vld [vmem:[#allocation8 + $0x250] sm:$0xff] }
 0x4a5   : > { %v3778_v60 = vadd.f32 %v3702_v52, %v3246_v17  ;;  %v3780_v13 = vadd.f32 %v3567_v63, %v8737_v35  ;;  %v3773_v52 = vpop.f32.mrf.mxu1  ;;  %v3807_v35 = vmax.f32 %v8804_v43, 0.0  ;;  %v3969_v63 = vld [vmem:[#allocation8 + $0x260] sm:$0xff] }
 0x4a7   : > { %v8767_v33 = vadd.f32 %v3788_v38, %v3778_v60  ;;  %v8807_v17 = vadd.f32 %v3786_v14, %v3780_v13  ;;  %v3955_v60 = vld [vmem:[#allocation8 + $0x1f0] sm:$0xff]  ;;  %v3913_v14 = vld [vmem:[#allocation8 + $0xa0] sm:$0xff] }
 0x4a8   : > { %4042 = vmatpush.msra.mxu1 %v3955_v60  ;;  %v3965_v13 = vld [vmem:[#allocation8 + $0x240] sm:$0xff] }
 0x4a9   : > { %v3804_v58 = vmax.f32 %v8767_v33, 0.0  ;;  %v3806_v22 = vmax.f32 %v8807_v17, 0.0  ;;  %v3929_v60 = vld [vmem:[#allocation8 + $0x120] sm:$0xff] }
 0x4aa   : > { %v3704_v49 = vpop.f32.mrf.mxu2 }
 0x4ab   : > { %v3705_v59 = vadd.f32 %v3704_v49, %v3682_v28  ;;  %v5518_v31 = vpack.i.bf16 %v3807_v35, %v3806_v22  ;;  %v3923_v28 = vld [vmem:[#allocation8 + $0xf0] sm:$0xff]  ;;  %v3921_v49 = vld [vmem:[#allocation8 + $0xe0] sm:$0xff] }
 0x4ac   : > { %4019 = vmatpush.msrb.mxu0 %v3923_v28  ;;  %v3897_v28 = vld [vmem:[#allocation8 + $0x20] sm:$0xff] }
 0x4ad   : > { %v3782_v30 = vadd.f32 %v3705_v59, %v3249_v23  ;;  %v3953_v23 = vld [vmem:[#allocation8 + $0x1e0] sm:$0xff]  ;;  %v3951_v59 = vld [vmem:[#allocation8 + $0x1d0] sm:$0xff] }
 0x4ae   : > { %4020 = vmatpush.msrb.mxu0 %v3921_v49  ;;  %4043 = vmatpush.msra.mxu1 %v3953_v23  ;;  %v3895_v49 = vld [vmem:[#allocation8 + $0x10] sm:$0xff] }
 0x4af   : > { %v8769_v16 = vadd.f32 %v3788_v38, %v3782_v30  ;;  %v3985_v38 = vld [vmem:[#allocation8 + $0x2e0] sm:$0xff]  ;;  %v3979_v30 = vld [vmem:[#allocation8 + $0x2b0] sm:$0xff] }
 0x4b0   : > { %4066 = vmatpush.msrb.mxu3 %v3985_v38  ;;  %4021 = vmatpush.msrb.mxu0 %v3919_v41  ;;  %v3959_v38 = vld [vmem:[#allocation8 + $0x210] sm:$0xff] }
 0x4b1   : > { %v3808_v34 = vmax.f32 %v8769_v16, 0.0  ;;  %4044 = vmatpush.msra.mxu1 %v3951_v59  ;;  %v3927_v23 = vld [vmem:[#allocation8 + $0x110] sm:$0xff]  ;;  %v3988_v59 = vld [vmem:[#allocation8 + $0x2f8] sm:$0xff] }
 0x4b2   : > { %4067 = vmatpush.msrb.mxu3 %v3983_v9  ;;  %4022 = vmatpush.msrb.mxu0 %v3917_v21  ;;  %v3957_v9 = vld [vmem:[#allocation8 + $0x200] sm:$0xff]  ;;  %v3995_v41 = vld [vmem:[#allocation8 + $0x330] sm:$0xff] }
 0x4b3   : > { %v5508_v6 = vpack.i.bf16 %v3808_v34, %v3804_v58  ;;  %4045 = vmatpush.msra.mxu1 %v3949_v62  ;;  %v3925_v21 = vld [vmem:[#allocation8 + $0x100] sm:$0xff] }
 0x4b4   : > { %v3724_v29 = vpop.f32.mrf.mxu3  ;;  %4068 = vmatpush.msrb.mxu3 %v3981_v42  ;;  %4023 = vmatpush.msrb.mxu0 %v3915_v25  ;;  %v3893_v42 = vld [vmem:[#allocation8] sm:$0xff]  ;;  %v3956_v25 = vld [vmem:[#allocation8 + $0x1f8] sm:$0xff] }
 0x4b5   : > { %5509 = vrot.lane.b32.xlu2 %v5508_v6, %s5699_s14  ;;  %4046 = vmatpush.msra.mxu1 %v3947_v8  ;;  %v3975_v6 = vld [vmem:[#allocation8 + $0x290] sm:$0xff]  ;;  %v3993_v62 = vld [vmem:[#allocation8 + $0x320] sm:$0xff]  ;;  %v3986_v8 = vld [vmem:[#allocation8 + $0x2e8] sm:$0xff] }
 0x4b6   : > { %4069 = vmatpush.msrb.mxu3 %v3979_v30  ;;  %4024 = vmatpush.msrb.mxu0 %v3913_v14  ;;  %v3924_v30 = vld [vmem:[#allocation8 + $0xf8] sm:$0xff]  ;;  %v3922_v14 = vld [vmem:[#allocation8 + $0xe8] sm:$0xff] }
 0x4b7   : > { %4047 = vmatpush.msra.mxu1 %v3945_v3  ;;  %v3954_v3 = vld [vmem:[#allocation8 + $0x1e8] sm:$0xff] }
 0x4b8   : > { %4070 = vmatpush.msrb.mxu3 %v3977_v19  ;;  %4025 = vmatpush.msrb.mxu0 %v3911_v39  ;;  %v3991_v19 = vld [vmem:[#allocation8 + $0x310] sm:$0xff]  ;;  %v3920_v39 = vld [vmem:[#allocation8 + $0xd8] sm:$0xff] }
 0x4b9   : > { %4048 = vmatpush.msra.mxu1 %v3943_v51  ;;  %v3952_v51 = vld [vmem:[#allocation8 + $0x1d8] sm:$0xff] }
 0x4ba   : > { %v3747_v55 = vpop.f32.mrf.mxu2  ;;  %4071 = vmatpush.msrb.mxu3 %v3975_v6  ;;  %4026 = vmatpush.msrb.mxu0 %v3909_v24  ;;  %v3984_v6 = vld [vmem:[#allocation8 + $0x2d8] sm:$0xff]  ;;  %v3950_v24 = vld [vmem:[#allocation8 + $0x1c8] sm:$0xff] }
 0x4bb   : > { %v3748_v56 = vadd.f32 %v3747_v55, %v3724_v29  ;;  %v4011_v29 = vld [vmem:[#allocation8 + $0x3b0] sm:$0xff]  ;;  %4049 = vmatpush.msra.mxu1 %v3941_v20  ;;  %v3980_v20 = vld [vmem:[#allocation8 + $0x2b8] sm:$0xff] }
 0x4bc   : > { %v3727_v44 = vpop.f32.mrf.mxu3  ;;  %4092 = vmatpush.msrb.mxu2 %v4011_v29  ;;  %v4007_v55 = vld [vmem:[#allocation8 + $0x390] sm:$0xff]  ;;  %v3989_v29 = vld [vmem:[#allocation8 + $0x300] sm:$0xff] }
 0x4bd   : > { %v3771_v0 = vadd.f32 %v3770_v46, %v3748_v56  ;;  %5514 = vrot.lane.b32.xlu2 %v5513_v40, %s5699_s14  ;;  %v3973_v46 = vld [vmem:[#allocation8 + $0x280] sm:$0xff]  ;;  %v3971_v56 = vld [vmem:[#allocation8 + $0x270] sm:$0xff]  ;;  %4050 = vmatpush.msra.mxu1 %v3939_v1  ;;  %v3978_v1 = vld [vmem:[#allocation8 + $0x2a8] sm:$0xff] }
 0x4be   : > { %4093 = vmatpush.msrb.mxu2 %v4009_v45  ;;  %4072 = vmatpush.msrb.mxu3 %v3973_v46  ;;  %v3905_v40 = vld [vmem:[#allocation8 + $0x60] sm:$0xff]  ;;  %v3982_v45 = vld [vmem:[#allocation8 + $0x2c8] sm:$0xff]  ;;  %v4012_v46 = vld [vmem:[#allocation8 + $0x3b8] sm:$0xff] }
 0x4bf   : > { %v3779_v53 = vadd.f32 %v3771_v0, %v3315_v12  ;;  %v3907_v12 = vld [vmem:[#allocation8 + $0x70] sm:$0xff] }
 0x4c0   : > { %4094 = vmatpush.msrb.mxu2 %v4007_v55  ;;  %v4003_v0 = vld [vmem:[#allocation8 + $0x370] sm:$0xff]  ;;  %4073 = vmatpush.msrb.mxu3 %v3971_v56  ;;  %v3918_v55 = vld [vmem:[#allocation8 + $0xc8] sm:$0xff] }
 0x4c1   : > { %v8801_v10 = vadd.f32 %v3789_v26, %v3779_v53  ;;  %4027 = vmatpush.msrb.mxu0 %v3907_v12  ;;  %v4001_v53 = vld [vmem:[#allocation8 + $0x360] sm:$0xff]  ;;  %v4010_v56 = vld [vmem:[#allocation8 + $0x3a8] sm:$0xff]  ;;  %v3948_v12 = vld [vmem:[#allocation8 + $0x1b8] sm:$0xff] }
 0x4c2   : > { %v3750_v5 = vpop.f32.mrf.mxu2  ;;  %4095 = vmatpush.msrb.mxu2 %v4005_v50  ;;  %4074 = vmatpush.msrb.mxu3 %v3969_v63  ;;  %v3916_v50 = vld [vmem:[#allocation8 + $0xb8] sm:$0xff] }
 0x4c3   : > { %v3751_v54 = vadd.f32 %v3750_v5, %v3727_v44  ;;  %v3805_v57 = vmax.f32 %v8801_v10, 0.0  ;;  %v3903_v44 = vld [vmem:[#allocation8 + $0x50] sm:$0xff]  ;;  %4028 = vmatpush.msrb.mxu0 %v3905_v40  ;;  %v4008_v63 = vld [vmem:[#allocation8 + $0x398] sm:$0xff]  ;;  %v3946_v40 = vld [vmem:[#allocation8 + $0x1a8] sm:$0xff] }
 0x4c4   : > { %4096 = vmatpush.msrb.mxu2 %v4003_v0  ;;  %v3999_v5 = vld [vmem:[#allocation8 + $0x350] sm:$0xff]  ;;  %4075 = vmatpush.msrb.mxu3 %v3967_v36  ;;  %v3914_v0 = vld [vmem:[#allocation8 + $0xa8] sm:$0xff] }
 0x4c5   : > { %v3774_v48 = vadd.f32 %v3773_v52, %v3751_v54  ;;  %3824 = vrot.lane.b32.xlu0 %v3805_v57, %s5699_s14  ;;  %v3901_v54 = vld [vmem:[#allocation8 + $0x40] sm:$0xff]  ;;  %4029 = vmatpush.msrb.mxu0 %v3903_v44  ;;  %v4006_v36 = vld [vmem:[#allocation8 + $0x388] sm:$0xff]  ;;  %v3944_v44 = vld [vmem:[#allocation8 + $0x198] sm:$0xff] }
 0x4c6   : > { %v3933_v52 = vld [vmem:[#allocation8 + $0x140] sm:$0xff]  ;;  %4097 = vmatpush.msrb.mxu2 %v4001_v53  ;;  %4076 = vmatpush.msrb.mxu3 %v3965_v13  ;;  %v3912_v53 = vld [vmem:[#allocation8 + $0x98] sm:$0xff] }
 0x4c7   : > { %v3783_v2 = vadd.f32 %v3774_v48, %v3318_v7  ;;  %v3963_v7 = vld [vmem:[#allocation8 + $0x230] sm:$0xff]  ;;  %v3997_v48 = vld [vmem:[#allocation8 + $0x340] sm:$0xff]  ;;  %4030 = vmatpush.msrb.mxu0 %v3901_v54  ;;  %v4004_v13 = vld [vmem:[#allocation8 + $0x378] sm:$0xff] }
 0x4c8   : > { %4098 = vmatpush.msrb.mxu2 %v3999_v5  ;;  %4077 = vmatpush.msrb.mxu3 %v3963_v7  ;;  %v3910_v5 = vld [vmem:[#allocation8 + $0x88] sm:$0xff] }
 0x4c9   : > { %v8814_v4 = vadd.f32 %v3789_v26, %v3783_v2  ;;  %v3937_v26 = vld [vmem:[#allocation8 + $0x160] sm:$0xff]  ;;  %v3899_v2 = vld [vmem:[#allocation8 + $0x30] sm:$0xff]  ;;  %v3942_v54 = vld [vmem:[#allocation8 + $0x188] sm:$0xff] }
 0x4ca   : > { %4051 = vmatpush.msra.mxu1 %v3937_v26  ;;  %4099 = vmatpush.msrb.mxu2 %v3997_v48  ;;  %v3976_v26 = vld [vmem:[#allocation8 + $0x298] sm:$0xff]  ;;  %v4002_v7 = vld [vmem:[#allocation8 + $0x368] sm:$0xff] }
 0x4cb   : > { %v3809_v15 = vmax.f32 %v8814_v4, 0.0  ;;  %4031 = vmatpush.msrb.mxu0 %v3899_v2  ;;  %4078 = vmatpush.msrb.mxu3 %v3961_v47  ;;  %v3908_v48 = vld [vmem:[#allocation8 + $0x78] sm:$0xff] }
 0x4cc   : > { %4052 = vmatpush.msra.mxu1 %v3935_v32  ;;  %4100 = vmatpush.msrb.mxu2 %v3995_v41  ;;  %v3974_v32 = vld [vmem:[#allocation8 + $0x288] sm:$0xff]  ;;  %v3940_v2 = vld [vmem:[#allocation8 + $0x178] sm:$0xff] }
 0x4cd   : > { %3832 = vrot.lane.b32.xlu1 %v3809_v15, %s5699_s14  ;;  %5519 = vrot.lane.b32.xlu0 %v5518_v31, %s5699_s14  ;;  %v3931_v31 = vld [vmem:[#allocation8 + $0x130] sm:$0xff]  ;;  %v3936_v41 = vld [vmem:[#allocation8 + $0x158] sm:$0xff] }
 0x4ce   : > { %4053 = vmatpush.msra.mxu1 %v3933_v52  ;;  %4032 = vmatpush.msrb.mxu0 %v3897_v28  ;;  %v3972_v52 = vld [vmem:[#allocation8 + $0x278] sm:$0xff] }
 0x4cf   : > { %4079 = vmatpush.msrb.mxu3 %v3959_v38  ;;  %4101 = vmatpush.msrb.mxu2 %v3993_v62  ;;  %v4000_v28 = vld [vmem:[#allocation8 + $0x358] sm:$0xff]  ;;  %v3938_v38 = vld [vmem:[#allocation8 + $0x168] sm:$0xff] }
 0x4d0   : > { %4054 = vmatpush.msra.mxu1 %v3931_v31  ;;  %4033 = vmatpush.msrb.mxu0 %v3895_v49  ;;  %v3970_v31 = vld [vmem:[#allocation8 + $0x268] sm:$0xff]  ;;  %v3968_v49 = vld [vmem:[#allocation8 + $0x258] sm:$0xff] }
 0x4d1   : > { %4080 = vmatpush.msrb.mxu3 %v3957_v9  ;;  %4102 = vmatpush.msrb.mxu2 %v3991_v19  ;;  %v3904_v9 = vld [vmem:[#allocation8 + $0x58] sm:$0xff]  ;;  %v3934_v62 = vld [vmem:[#allocation8 + $0x148] sm:$0xff] }
 0x4d2   : > { %4055 = vmatpush.msra.mxu1 %v3929_v60  ;;  %4034 = vmatpush.msrb.mxu0 %v3893_v42  ;;  %v3906_v60 = vld [vmem:[#allocation8 + $0x68] sm:$0xff]  ;;  %v3996_v42 = vld [vmem:[#allocation8 + $0x338] sm:$0xff] }
 0x4d3   : > { %4157 = vmatpush.msra.mxu3 %v3988_v59  ;;  %4103 = vmatpush.msrb.mxu2 %v3989_v29  ;;  %v3966_v59 = vld [vmem:[#allocation8 + $0x248] sm:$0xff]  ;;  %v3932_v19 = vld [vmem:[#allocation8 + $0x138] sm:$0xff] }
 0x4d4   : > { %4056 = vmatpush.msra.mxu1 %v3927_v23  ;;  %4111 = vmatpush.msra.mxu0 %v3924_v30  ;;  %v3998_v23 = vld [vmem:[#allocation8 + $0x348] sm:$0xff]  ;;  %v3964_v30 = vld [vmem:[#allocation8 + $0x238] sm:$0xff] }
 0x4d5   : > { %4158 = vmatpush.msra.mxu3 %v3986_v8  ;;  %4184 = vmatpush.msra.mxu2 %v4012_v46  ;;  %v3900_v8 = vld [vmem:[#allocation8 + $0x38] sm:$0xff]  ;;  %v3930_v29 = vld [vmem:[#allocation8 + $0x128] sm:$0xff] }
 0x4d6   : > { %4057 = vmatpush.msra.mxu1 %v3925_v21  ;;  %4112 = vmatpush.msra.mxu0 %v3922_v14  ;;  %v3902_v21 = vld [vmem:[#allocation8 + $0x48] sm:$0xff]  ;;  %v3896_v46 = vld [vmem:[#allocation8 + $0x18] sm:$0xff] }
 0x4d7   : > { %4159 = vmatpush.msra.mxu3 %v3984_v6  ;;  %4185 = vmatpush.msra.mxu2 %v4010_v56  ;;  %v3962_v14 = vld [vmem:[#allocation8 + $0x228] sm:$0xff] }
 0x4d8   : > { %4134 = vmatpush.msrb.mxu1 %v3956_v25  ;;  %4113 = vmatpush.msra.mxu0 %v3920_v39  ;;  %v3994_v25 = vld [vmem:[#allocation8 + $0x328] sm:$0xff]  ;;  %v3960_v39 = vld [vmem:[#allocation8 + $0x218] sm:$0xff] }
 0x4d9   : > { %4160 = vmatpush.msra.mxu3 %v3982_v45  ;;  %4186 = vmatpush.msra.mxu2 %v4008_v63  ;;  %v3898_v6 = vld [vmem:[#allocation8 + $0x28] sm:$0xff] }
 0x4da   : > { %4135 = vmatpush.msrb.mxu1 %v3954_v3  ;;  %4114 = vmatpush.msra.mxu0 %v3918_v55  ;;  %v3992_v3 = vld [vmem:[#allocation8 + $0x318] sm:$0xff] }
 0x4db   : > { %4161 = vmatpush.msra.mxu3 %v3980_v20  ;;  %4187 = vmatpush.msra.mxu2 %v4006_v36  ;;  %v3928_v55 = vld [vmem:[#allocation8 + $0x118] sm:$0xff] }
 0x4dc   : > { %4136 = vmatpush.msrb.mxu1 %v3952_v51  ;;  %4115 = vmatpush.msra.mxu0 %v3916_v50  ;;  %v3990_v51 = vld [vmem:[#allocation8 + $0x308] sm:$0xff] }
 0x4dd   : > { %4162 = vmatpush.msra.mxu3 %v3978_v1  ;;  %4188 = vmatpush.msra.mxu2 %v4004_v13  ;;  %v3926_v1 = vld [vmem:[#allocation8 + $0x108] sm:$0xff] }
 0x4de   : > { %4137 = vmatpush.msrb.mxu1 %v3950_v24  ;;  %4116 = vmatpush.msra.mxu0 %v3914_v0  ;;  %v3958_v24 = vld [vmem:[#allocation8 + $0x208] sm:$0xff] }
 0x4df   : > { %4163 = vmatpush.msra.mxu3 %v3976_v26  ;;  %4189 = vmatpush.msra.mxu2 %v4002_v7 }
 0x4e0   : > { %4138 = vmatpush.msrb.mxu1 %v3948_v12  ;;  %4117 = vmatpush.msra.mxu0 %v3912_v53  ;;  %v3894_v12 = vld [vmem:[#allocation8 + $0x8] sm:$0xff] }
 0x4e1   : > { %4164 = vmatpush.msra.mxu3 %v3974_v32  ;;  %4190 = vmatpush.msra.mxu2 %v4000_v28 }
 0x4e2   : > { %4139 = vmatpush.msrb.mxu1 %v3946_v40  ;;  %4118 = vmatpush.msra.mxu0 %v3910_v5 }
 0x4e3   : > { %4165 = vmatpush.msra.mxu3 %v3972_v52  ;;  %4191 = vmatpush.msra.mxu2 %v3998_v23  ;;  %v4318_v23 = vld [vmem:[#allocation10 + $0x1f8] sm:$0xff] }
 0x4e4   : > { %4140 = vmatpush.msrb.mxu1 %v3944_v44  ;;  %4119 = vmatpush.msra.mxu0 %v3908_v48 }
 0x4e5   : > { %4166 = vmatpush.msra.mxu3 %v3970_v31  ;;  %4192 = vmatpush.msra.mxu2 %v3996_v42  ;;  %v4317_v42 = vld [vmem:[#allocation10 + $0x1f0] sm:$0xff] }
 0x4e6   : > { %4141 = vmatpush.msrb.mxu1 %v3942_v54  ;;  %4120 = vmatpush.msra.mxu0 %v3906_v60 }
 0x4e7   : > { %4167 = vmatpush.msra.mxu3 %v3968_v49  ;;  %4193 = vmatpush.msra.mxu2 %v3994_v25 }
 0x4e8   : > { %4142 = vmatpush.msrb.mxu1 %v3940_v2  ;;  %4121 = vmatpush.msra.mxu0 %v3904_v9 }
 0x4e9   : > { %4168 = vmatpush.msra.mxu3 %v3966_v59  ;;  %4194 = vmatpush.msra.mxu2 %v3992_v3  ;;  %v4285_v59 = vld [vmem:[#allocation10 + $0xf0] sm:$0xff]  ;;  %v4284_v3 = vld [vmem:[#allocation10 + $0xe8] sm:$0xff] }
 0x4ea   : > { %4143 = vmatpush.msrb.mxu1 %v3938_v38  ;;  %4122 = vmatpush.msra.mxu0 %v3902_v21  ;;  %v4286_v38 = vld [vmem:[#allocation10 + $0xf8] sm:$0xff]  ;;  %v4269_v21 = vld [vmem:[#allocation10 + $0x70] sm:$0xff] }
 0x4eb   : > { %4169 = vmatpush.msra.mxu3 %v3964_v30  ;;  %4195 = vmatpush.msra.mxu2 %v3990_v51  ;;  %v4283_v51 = vld [vmem:[#allocation10 + $0xe0] sm:$0xff] }
 0x4ec   : > { %4144 = vmatpush.msrb.mxu1 %v3936_v41  ;;  %4123 = vmatpush.msra.mxu0 %v3900_v8  ;;  %v4302_v41 = vld [vmem:[#allocation10 + $0x178] sm:$0xff] }
 0x4ed   : > { %4170 = vmatpush.msra.mxu3 %v3962_v14  ;;  %v4268_v14 = vld [vmem:[#allocation10 + $0x68] sm:$0xff] }
 0x4ee   : > { %4145 = vmatpush.msrb.mxu1 %v3934_v62  ;;  %4124 = vmatpush.msra.mxu0 %v3898_v6  ;;  %v4301_v62 = vld [vmem:[#allocation10 + $0x170] sm:$0xff]  ;;  %v4300_v6 = vld [vmem:[#allocation10 + $0x168] sm:$0xff] }
 0x4ef   : > { %4171 = vmatpush.msra.mxu3 %v3960_v39  ;;  %v4267_v39 = vld [vmem:[#allocation10 + $0x60] sm:$0xff] }
 0x4f0   : > { %4146 = vmatpush.msrb.mxu1 %v3932_v19  ;;  %4125 = vmatpush.msra.mxu0 %v3896_v46  ;;  %v4315_v46 = vld [vmem:[#allocation10 + $0x1e0] sm:$0xff] }
 0x4f1   : > { %4172 = vmatpush.msra.mxu3 %v3958_v24  ;;  %v4282_v24 = vld [vmem:[#allocation10 + $0xd8] sm:$0xff] }
 0x4f2   : > { %4147 = vmatpush.msrb.mxu1 %v3930_v29  ;;  %4126 = vmatpush.msra.mxu0 %v3894_v12  ;;  %v4316_v29 = vld [vmem:[#allocation10 + $0x1e8] sm:$0xff]  ;;  %v4281_v12 = vld [vmem:[#allocation10 + $0xd0] sm:$0xff] }
 0x4f4   : > { %4148 = vmatpush.msrb.mxu1 %v3928_v55  ;;  %v4266_v55 = vld [vmem:[#allocation10 + $0x58] sm:$0xff] }
 0x4f6   : > { %4149 = vmatpush.msrb.mxu1 %v3926_v1  ;;  %v4297_v1 = vld [vmem:[#allocation10 + $0x150] sm:$0xff] }
 0x50f   : > { %v8825_v47 = vpop.permute.xlu2 %5509 }
 0x510   : > { %v5511_v63 = vunpack.i.l.bf16 %v8825_v47  ;;  %v5512_v36 = vunpack.i.h.bf16 %v8825_v47 }
 0x517   : > { %v5515_v45 = vpop.permute.xlu2 %5514 }
 0x518   : > { %v5517_v56 = vunpack.i.h.bf16 %v5515_v45  ;;  %v5516_v50 = vunpack.i.l.bf16 %v5515_v45  ;;  %v4299_v45 = vld [vmem:[#allocation10 + $0x160] sm:$0xff] }
 0x51a   : > { %v3836_v0 = vsel %vm3834_vm13, %v5517_v56, %v5511_v63  ;;  %v3835_v40 = vsel %vm3834_vm13, %v5516_v50, %v5517_v56  ;;  %v4314_v56 = vld [vmem:[#allocation10 + $0x1d8] sm:$0xff]  ;;  %v4265_v50 = vld [vmem:[#allocation10 + $0x50] sm:$0xff] }
 0x51b   : > { %v3850_v44 = vmax.f32 %v3803_v11, %v3836_v0  ;;  %v3849_v32 = vmax.f32 %v3802_v61, %v3835_v40  ;;  %v4264_v0 = vld [vmem:[#allocation10 + $0x48] sm:$0xff] }
 0x51c   : > { %v4280_v40 = vld [vmem:[#allocation10 + $0xc8] sm:$0xff] }
 0x51d   : > { %v3865_v31 = vrot.slane %v3849_v32, 1 }
 0x537   : > { %v3825_v20 = vpop.permute.xlu0 %3824 }
 0x538   : > { %v3837_v26 = vsel %vm3834_vm13, %v5511_v63, %v3825_v20  ;;  %v3852_v53 = vmax.f32 %v3805_v57, %v3825_v20  ;;  %v4298_v20 = vld [vmem:[#allocation10 + $0x158] sm:$0xff]  ;;  %v4313_v63 = vld [vmem:[#allocation10 + $0x1d0] sm:$0xff] }
 0x539   : > { %v3851_v13 = vmax.f32 %v3804_v58, %v3837_v26  ;;  %v4296_v26 = vld [vmem:[#allocation10 + $0x148] sm:$0xff] }
 0x53a   : > { %v3874_v37 = vrot.slane %v3852_v53, 1 }
 0x53b   : > { %v3871_v33 = vrot.slane %v3851_v13, 1 }
 0x53f   : > { %v3833_v5 = vpop.permute.xlu1 %3832  ;;  %v5520_v54 = vpop.permute.xlu0 %5519 }
 0x540   : > { %v3840_v52 = vsel %vm3834_vm13, %v5512_v36, %v3833_v5  ;;  %v3856_v7 = vmax.f32 %v3809_v15, %v3833_v5  ;;  %v5522_v48 = vunpack.i.h.bf16 %v5520_v54  ;;  %v5521_v2 = vunpack.i.l.bf16 %v5520_v54  ;;  %v4262_v5 = vld [vmem:[#allocation10 + $0x38] sm:$0xff] }
 0x541   : > { %v3855_v10 = vmax.f32 %v3808_v34, %v3840_v52  ;;  %v3868_v15 = vrot.slane %v3850_v44, 1  ;;  %v4278_v54 = vld [vmem:[#allocation10 + $0xb8] sm:$0xff] }
 0x542   : > { %v3875_v11 = vrot.slane %v3856_v7, 1  ;;  %v3839_v27 = vsel %vm3834_vm13, %v5522_v48, %v5512_v36  ;;  %v3838_v61 = vsel %vm3834_vm13, %v5521_v2, %v5522_v48  ;;  %v4312_v36 = vld [vmem:[#allocation10 + $0x1c8] sm:$0xff]  ;;  %v4294_v52 = vld [vmem:[#allocation10 + $0x138] sm:$0xff]  ;;  %v4261_v48 = vld [vmem:[#allocation10 + $0x30] sm:$0xff] }
 0x543   : > { %v3872_v58 = vrot.slane %v3855_v10, 1  ;;  %v3854_v57 = vmax.f32 %v3807_v35, %v3839_v27  ;;  %v3853_v4 = vmax.f32 %v3806_v22, %v3838_v61  ;;  %v4270_v22 = vld [vmem:[#allocation10 + $0x78] sm:$0xff]  ;;  %v4277_v2 = vld [vmem:[#allocation10 + $0xb0] sm:$0xff]  ;;  %v4276_v27 = vld [vmem:[#allocation10 + $0xa8] sm:$0xff] }
 0x544   : > { %v3876_v47 = vsel %vm690_vm4, %v3874_v37, %v3875_v11  ;;  %v3892_v30 = vmax.f32 %v3856_v7, %v3875_v11  ;;  %v4310_v7 = vld [vmem:[#allocation10 + $0x1b8] sm:$0xff]  ;;  %v4309_v37 = vld [vmem:[#allocation10 + $0x1b0] sm:$0xff]  ;;  %v4260_v11 = vld [vmem:[#allocation10 + $0x28] sm:$0xff] }
 0x545   : > { %v3873_v16 = vsel %vm690_vm4, %v3871_v33, %v3872_v58  ;;  %v3888_v34 = vmax.f32 %v3852_v53, %v3876_v47  ;;  %v3869_v28 = vrot.slane %v3854_v57, 1  ;;  %v3866_v60 = vrot.slane %v3853_v4, 1  ;;  %v4263_v53 = vld [vmem:[#allocation10 + $0x40] sm:$0xff]  ;;  %v4292_v61 = vld [vmem:[#allocation10 + $0x128] sm:$0xff]  ;;  %v4274_v47 = vld [vmem:[#allocation10 + $0x98] sm:$0xff] }
 0x546   : > { %v3887_v49 = vmax.f32 %v3851_v13, %v3873_v16  ;;  %v3891_v25 = vmax.f32 %v3855_v10, %v3872_v58  ;;  %v4311_v13 = vld [vmem:[#allocation10 + $0x1c0] sm:$0xff]  ;;  %v4293_v10 = vld [vmem:[#allocation10 + $0x130] sm:$0xff]  ;;  %v4308_v33 = vld [vmem:[#allocation10 + $0x1a8] sm:$0xff] }
 0x547   : > { %v3867_v9 = vsel %vm690_vm4, %v3865_v31, %v3866_v60  ;;  %v3870_v43 = vsel %vm690_vm4, %v3868_v15, %v3869_v28  ;;  %5397 = vmatmul.msk.f32.vlgmr.msrb.gmra.mxu2 %vm3834_vm13, %v3888_v34  ;;  %v3889_v8 = vmax.f32 %v3853_v4, %v3866_v60  ;;  %v3890_v19 = vmax.f32 %v3854_v57, %v3869_v28  ;;  %v4259_v58 = vld [vmem:[#allocation10 + $0x20] sm:$0xff]  ;;  %v4258_v31 = vld [vmem:[#allocation10 + $0x18] sm:$0xff]  ;;  %v4257_v28 = vld [vmem:[#allocation10 + $0x10] sm:$0xff] }
 0x548   : > { %4081 = vmatmul.f32.vlgmr.msrb.gmra.mxu3 %v3887_v49  ;;  %v3885_v17 = vmax.f32 %v3849_v32, %v3867_v9  ;;  %v3886_v35 = vmax.f32 %v3850_v44, %v3870_v43  ;;  %4566 = vmatpush.msrb.mxu2 %v4286_v38  ;;  %v4279_v44 = vld [vmem:[#allocation10 + $0xc0] sm:$0xff]  ;;  %v4290_v16 = vld [vmem:[#allocation10 + $0x118] sm:$0xff]  ;;  %v4273_v60 = vld [vmem:[#allocation10 + $0x90] sm:$0xff] }
 0x549   : > { %4606 = vmatpush.msrb.mxu3 %v4318_v23  ;;  %v4295_v32 = vld [vmem:[#allocation10 + $0x140] sm:$0xff]  ;;  %v4289_v38 = vld [vmem:[#allocation10 + $0x110] sm:$0xff]  ;;  %v4256_v23 = vld [vmem:[#allocation10 + $0x8] sm:$0xff] }
 0x54a   : > { %4035 = vmatmul.f32.vlgmr.msrb.gmra.mxu0 %v3885_v17  ;;  %4058 = vmatmul.f32.vlgmr.msra.gmra.mxu1 %v3886_v35  ;;  %v4275_v57 = vld [vmem:[#allocation10 + $0xa0] sm:$0xff]  ;;  %v4272_v9 = vld [vmem:[#allocation10 + $0x88] sm:$0xff] }
 0x54b   : > { %4546 = vmatpush.msrb.mxu0 %v4270_v22  ;;  %4586 = vmatpush.msra.mxu1 %v4302_v41  ;;  %v4291_v4 = vld [vmem:[#allocation10 + $0x120] sm:$0xff]  ;;  %v4288_v43 = vld [vmem:[#allocation10 + $0x108] sm:$0xff] }
 0x54c   : > { %4567 = vmatpush.msrb.mxu2 %v4285_v59  ;;  %4607 = vmatpush.msrb.mxu3 %v4317_v42  ;;  %v4307_v15 = vld [vmem:[#allocation10 + $0x1a0] sm:$0xff] }
 0x54d   : > { %4547 = vmatpush.msrb.mxu0 %v4269_v21  ;;  %4587 = vmatpush.msra.mxu1 %v4301_v62  ;;  %v4271_v22 = vld [vmem:[#allocation10 + $0x80] sm:$0xff] }
 0x54e   : > { %4568 = vmatpush.msrb.mxu2 %v4284_v3  ;;  %4608 = vmatpush.msrb.mxu3 %v4316_v29  ;;  %v4287_v41 = vld [vmem:[#allocation10 + $0x100] sm:$0xff]  ;;  %v4366_v3 = vld [vmem:[#allocation10 + $0x378] sm:$0xff] }
 0x54f   : > { %5398 = vmatmul.msk.f32.gmra.mxu2 %vm3834_vm13, %v3892_v30  ;;  %4548 = vmatpush.msrb.mxu0 %v4268_v14  ;;  %v4303_v59 = vld [vmem:[#allocation10 + $0x180] sm:$0xff]  ;;  %v4350_v14 = vld [vmem:[#allocation10 + $0x2f8] sm:$0xff] }
 0x550   : > { %4084 = vmatmul.f32.gmra.mxu3 %v3891_v25  ;;  %4588 = vmatpush.msra.mxu1 %v4300_v6  ;;  %v4382_v6 = vld [vmem:[#allocation10 + $0x3f8] sm:$0xff] }
 0x551   : > { %4549 = vmatpush.msrb.mxu0 %v4267_v39  ;;  %4569 = vmatpush.msrb.mxu2 %v4283_v51  ;;  %v4333_v39 = vld [vmem:[#allocation10 + $0x270] sm:$0xff] }
 0x552   : > { %4038 = vmatmul.f32.gmra.mxu0 %v3889_v8  ;;  %4061 = vmatmul.f32.gmra.mxu1 %v3890_v19  ;;  %v4349_v51 = vld [vmem:[#allocation10 + $0x2f0] sm:$0xff] }
 0x553   : > { %4589 = vmatpush.msra.mxu1 %v4299_v45  ;;  %4609 = vmatpush.msrb.mxu3 %v4315_v46  ;;  %v4365_v45 = vld [vmem:[#allocation10 + $0x370] sm:$0xff] }
 0x554   : > { %4550 = vmatpush.msrb.mxu0 %v4266_v55  ;;  %4570 = vmatpush.msrb.mxu2 %v4282_v24  ;;  %v4381_v24 = vld [vmem:[#allocation10 + $0x3f0] sm:$0xff] }
 0x555   : > { %4590 = vmatpush.msra.mxu1 %v4298_v20  ;;  %4610 = vmatpush.msrb.mxu3 %v4314_v56  ;;  %v4332_v20 = vld [vmem:[#allocation10 + $0x268] sm:$0xff] }
 0x556   : > { %4551 = vmatpush.msrb.mxu0 %v4265_v50  ;;  %4571 = vmatpush.msrb.mxu2 %v4281_v12  ;;  %v4348_v56 = vld [vmem:[#allocation10 + $0x2e8] sm:$0xff] }
 0x557   : > { %5399 = vmatmul.msk.f32.vlgmr.msra.gmra.mxu2 %vm3834_vm13, %v3888_v34  ;;  %4591 = vmatpush.msra.mxu1 %v4297_v1  ;;  %v4306_v34 = vld [vmem:[#allocation10 + $0x198] sm:$0xff]  ;;  %v4364_v50 = vld [vmem:[#allocation10 + $0x368] sm:$0xff] }
 0x558   : > { %4173 = vmatmul.f32.vlgmr.msra.gmra.mxu3 %v3887_v49  ;;  %4552 = vmatpush.msrb.mxu0 %v4264_v0  ;;  %v4305_v49 = vld [vmem:[#allocation10 + $0x190] sm:$0xff]  ;;  %v4380_v12 = vld [vmem:[#allocation10 + $0x3e8] sm:$0xff]  ;;  %v4347_v0 = vld [vmem:[#allocation10 + $0x2e0] sm:$0xff] }
 0x559   : > { %4611 = vmatpush.msrb.mxu3 %v4313_v63  ;;  %4572 = vmatpush.msrb.mxu2 %v4280_v40  ;;  %v4331_v63 = vld [vmem:[#allocation10 + $0x260] sm:$0xff] }
 0x55a   : > { %4127 = vmatmul.f32.vlgmr.msra.gmra.mxu0 %v3885_v17  ;;  %4150 = vmatmul.f32.vlgmr.msrb.gmra.mxu1 %v3886_v35  ;;  %v4304_v17 = vld [vmem:[#allocation10 + $0x188] sm:$0xff]  ;;  %v4255_v35 = vld [vmem:[#allocation10] sm:$0xff] }
 0x55b   : > { %4592 = vmatpush.msra.mxu1 %v4296_v26  ;;  %4612 = vmatpush.msrb.mxu3 %v4312_v36  ;;  %v4363_v40 = vld [vmem:[#allocation10 + $0x360] sm:$0xff] }
 0x55c   : > { %4553 = vmatpush.msrb.mxu0 %v4263_v53  ;;  %4573 = vmatpush.msrb.mxu2 %v4279_v44  ;;  %v4379_v36 = vld [vmem:[#allocation10 + $0x3e0] sm:$0xff]  ;;  %v4330_v53 = vld [vmem:[#allocation10 + $0x258] sm:$0xff] }
 0x55d   : > { %4593 = vmatpush.msra.mxu1 %v4295_v32  ;;  %4613 = vmatpush.msrb.mxu3 %v4311_v13  ;;  %v4346_v44 = vld [vmem:[#allocation10 + $0x2d8] sm:$0xff] }
 0x55e   : > { %4554 = vmatpush.msrb.mxu0 %v4262_v5  ;;  %4574 = vmatpush.msrb.mxu2 %v4278_v54  ;;  %v4362_v32 = vld [vmem:[#allocation10 + $0x358] sm:$0xff]  ;;  %v4329_v5 = vld [vmem:[#allocation10 + $0x250] sm:$0xff] }
 0x55f   : > { %5400 = vmatmul.msk.f32.gmra.mxu2 %vm3834_vm13, %v3892_v30  ;;  %4594 = vmatpush.msra.mxu1 %v4294_v52  ;;  %v4378_v13 = vld [vmem:[#allocation10 + $0x3d8] sm:$0xff]  ;;  %v4345_v54 = vld [vmem:[#allocation10 + $0x2d0] sm:$0xff] }
 0x560   : > { %4176 = vmatmul.f32.gmra.mxu3 %v3891_v25  ;;  %4555 = vmatpush.msrb.mxu0 %v4261_v48  ;;  %v4361_v52 = vld [vmem:[#allocation10 + $0x350] sm:$0xff] }
 0x561   : > { %4614 = vmatpush.msrb.mxu3 %v4310_v7  ;;  %4575 = vmatpush.msrb.mxu2 %v4277_v2  ;;  %v4377_v2 = vld [vmem:[#allocation10 + $0x3d0] sm:$0xff] }
 0x562   : > { %4130 = vmatmul.f32.gmra.mxu0 %v3889_v8  ;;  %4153 = vmatmul.f32.gmra.mxu1 %v3890_v19  ;;  %v4334_v19 = vld [vmem:[#allocation10 + $0x278] sm:$0xff] }
 0x563   : > { %4595 = vmatpush.msra.mxu1 %v4293_v10  ;;  %4615 = vmatpush.msrb.mxu3 %v4309_v37  ;;  %v4328_v10 = vld [vmem:[#allocation10 + $0x248] sm:$0xff] }
 0x564   : > { %4556 = vmatpush.msrb.mxu0 %v4260_v11  ;;  %4576 = vmatpush.msrb.mxu2 %v4276_v27  ;;  %v4344_v37 = vld [vmem:[#allocation10 + $0x2c8] sm:$0xff] }
 0x565   : > { %4596 = vmatpush.msra.mxu1 %v4292_v61  ;;  %4616 = vmatpush.msrb.mxu3 %v4308_v33  ;;  %v4360_v11 = vld [vmem:[#allocation10 + $0x348] sm:$0xff]  ;;  %v4327_v33 = vld [vmem:[#allocation10 + $0x240] sm:$0xff] }
 0x566   : > { %4557 = vmatpush.msrb.mxu0 %v4259_v58  ;;  %4577 = vmatpush.msrb.mxu2 %v4275_v57  ;;  %v4376_v27 = vld [vmem:[#allocation10 + $0x3c8] sm:$0xff]  ;;  %v4343_v58 = vld [vmem:[#allocation10 + $0x2c0] sm:$0xff] }
 0x567   : > { %4597 = vmatpush.msra.mxu1 %v4291_v4  ;;  %4617 = vmatpush.msrb.mxu3 %v4307_v15  ;;  %v4359_v57 = vld [vmem:[#allocation10 + $0x340] sm:$0xff] }
 0x568   : > { %4558 = vmatpush.msrb.mxu0 %v4258_v31  ;;  %4578 = vmatpush.msrb.mxu2 %v4274_v47  ;;  %v4375_v31 = vld [vmem:[#allocation10 + $0x3c0] sm:$0xff] }
 0x569   : > { %4598 = vmatpush.msra.mxu1 %v4290_v16  ;;  %4618 = vmatpush.msrb.mxu3 %v4306_v34  ;;  %v4326_v16 = vld [vmem:[#allocation10 + $0x238] sm:$0xff] }
 0x56a   : > { %4559 = vmatpush.msrb.mxu0 %v4257_v28  ;;  %4579 = vmatpush.msrb.mxu2 %v4273_v60  ;;  %v4342_v34 = vld [vmem:[#allocation10 + $0x2b8] sm:$0xff] }
 0x56b   : > { %4599 = vmatpush.msra.mxu1 %v4289_v38  ;;  %4619 = vmatpush.msrb.mxu3 %v4305_v49  ;;  %v4358_v28 = vld [vmem:[#allocation10 + $0x338] sm:$0xff]  ;;  %v4325_v49 = vld [vmem:[#allocation10 + $0x230] sm:$0xff] }
 0x56c   : > { %4560 = vmatpush.msrb.mxu0 %v4256_v23  ;;  %4580 = vmatpush.msrb.mxu2 %v4272_v9  ;;  %v4374_v60 = vld [vmem:[#allocation10 + $0x3b8] sm:$0xff]  ;;  %v4341_v23 = vld [vmem:[#allocation10 + $0x2b0] sm:$0xff] }
 0x56d   : > { %4600 = vmatpush.msra.mxu1 %v4288_v43  ;;  %4620 = vmatpush.msrb.mxu3 %v4304_v17  ;;  %v4357_v9 = vld [vmem:[#allocation10 + $0x330] sm:$0xff] }
 0x56e   : > { %4561 = vmatpush.msrb.mxu0 %v4255_v35  ;;  %4581 = vmatpush.msrb.mxu2 %v4271_v22  ;;  %v4373_v35 = vld [vmem:[#allocation10 + $0x3b0] sm:$0xff] }
 0x56f   : > { %4601 = vmatpush.msra.mxu1 %v4287_v41  ;;  %4621 = vmatpush.msrb.mxu3 %v4303_v59  ;;  %v4324_v59 = vld [vmem:[#allocation10 + $0x228] sm:$0xff]  ;;  %v4386_v41 = vld [vmem:[#allocation10 + $0x418] sm:$0xff] }
 0x570   : > { %4626 = vmatpush.msra.mxu0 %v4334_v19  ;;  %4646 = vmatpush.msra.mxu2 %v4350_v14  ;;  %v4339_v19 = vld [vmem:[#allocation10 + $0x2a0] sm:$0xff] }
 0x571   : > { %4666 = vmatpush.msrb.mxu1 %v4366_v3  ;;  %4686 = vmatpush.msra.mxu3 %v4382_v6  ;;  %v4355_v14 = vld [vmem:[#allocation10 + $0x320] sm:$0xff] }
 0x572   : > { %4627 = vmatpush.msra.mxu0 %v4333_v39  ;;  %4647 = vmatpush.msra.mxu2 %v4349_v51  ;;  %v4371_v6 = vld [vmem:[#allocation10 + $0x3a0] sm:$0xff] }
 0x573   : > { %4667 = vmatpush.msrb.mxu1 %v4365_v45  ;;  %4687 = vmatpush.msra.mxu3 %v4381_v24  ;;  %v4322_v45 = vld [vmem:[#allocation10 + $0x218] sm:$0xff] }
 0x574   : > { %4628 = vmatpush.msra.mxu0 %v4332_v20  ;;  %4648 = vmatpush.msra.mxu2 %v4348_v56  ;;  %v4370_v20 = vld [vmem:[#allocation10 + $0x398] sm:$0xff] }
 0x575   : > { %4668 = vmatpush.msrb.mxu1 %v4364_v50  ;;  %4688 = vmatpush.msra.mxu3 %v4380_v12  ;;  %v4321_v50 = vld [vmem:[#allocation10 + $0x210] sm:$0xff] }
 0x576   : > { %4629 = vmatpush.msra.mxu0 %v4331_v63  ;;  %4649 = vmatpush.msra.mxu2 %v4347_v0  ;;  %v4337_v12 = vld [vmem:[#allocation10 + $0x290] sm:$0xff] }
 0x577   : > { %4669 = vmatpush.msrb.mxu1 %v4363_v40  ;;  %4689 = vmatpush.msra.mxu3 %v4379_v36  ;;  %v4353_v63 = vld [vmem:[#allocation10 + $0x310] sm:$0xff] }
 0x578   : > { %4630 = vmatpush.msra.mxu0 %v4330_v53  ;;  %4650 = vmatpush.msra.mxu2 %v4346_v44  ;;  %v4369_v40 = vld [vmem:[#allocation10 + $0x390] sm:$0xff]  ;;  %v4320_v53 = vld [vmem:[#allocation10 + $0x208] sm:$0xff] }
 0x579   : > { %4670 = vmatpush.msrb.mxu1 %v4362_v32  ;;  %4690 = vmatpush.msra.mxu3 %v4378_v13  ;;  %v4336_v44 = vld [vmem:[#allocation10 + $0x288] sm:$0xff] }
 0x57a   : > { %4631 = vmatpush.msra.mxu0 %v4329_v5  ;;  %4651 = vmatpush.msra.mxu2 %v4345_v54  ;;  %v4352_v32 = vld [vmem:[#allocation10 + $0x308] sm:$0xff]  ;;  %v4319_v5 = vld [vmem:[#allocation10 + $0x200] sm:$0xff] }
 0x57b   : > { %4671 = vmatpush.msrb.mxu1 %v4361_v52  ;;  %4691 = vmatpush.msra.mxu3 %v4377_v2  ;;  %v4368_v13 = vld [vmem:[#allocation10 + $0x388] sm:$0xff]  ;;  %v4335_v54 = vld [vmem:[#allocation10 + $0x280] sm:$0xff] }
 0x57c   : > { %4632 = vmatpush.msra.mxu0 %v4328_v10  ;;  %4652 = vmatpush.msra.mxu2 %v4344_v37  ;;  %v4351_v52 = vld [vmem:[#allocation10 + $0x300] sm:$0xff] }
 0x57d   : > { %4672 = vmatpush.msrb.mxu1 %v4360_v11  ;;  %4692 = vmatpush.msra.mxu3 %v4376_v27 }
 0x57e   : > { %4633 = vmatpush.msra.mxu0 %v4327_v33  ;;  %4653 = vmatpush.msra.mxu2 %v4343_v58  ;;  %v4398_v58 = vld [vmem:[#allocation10 + $0x478] sm:$0xff] }
 0x57f   : > { %4673 = vmatpush.msrb.mxu1 %v4359_v57  ;;  %4693 = vmatpush.msra.mxu3 %v4375_v31  ;;  %v4414_v57 = vld [vmem:[#allocation10 + $0x4f8] sm:$0xff]  ;;  %v4413_v31 = vld [vmem:[#allocation10 + $0x4f0] sm:$0xff] }
 0x580   : > { %4634 = vmatpush.msra.mxu0 %v4326_v16  ;;  %4654 = vmatpush.msra.mxu2 %v4342_v34  ;;  %v4445_v16 = vld [vmem:[#allocation10 + $0x5f0] sm:$0xff]  ;;  %v4396_v34 = vld [vmem:[#allocation10 + $0x468] sm:$0xff] }
 0x581   : > { %4674 = vmatpush.msrb.mxu1 %v4358_v28  ;;  %4694 = vmatpush.msra.mxu3 %v4374_v60  ;;  %v4412_v28 = vld [vmem:[#allocation10 + $0x4e8] sm:$0xff] }
 0x582   : > { %4635 = vmatpush.msra.mxu0 %v4325_v49  ;;  %4655 = vmatpush.msra.mxu2 %v4341_v23  ;;  %v4428_v60 = vld [vmem:[#allocation10 + $0x568] sm:$0xff]  ;;  %v4395_v49 = vld [vmem:[#allocation10 + $0x460] sm:$0xff] }
 0x583   : > { %4675 = vmatpush.msrb.mxu1 %v4357_v9  ;;  %4695 = vmatpush.msra.mxu3 %v4373_v35  ;;  %v4411_v23 = vld [vmem:[#allocation10 + $0x4e0] sm:$0xff] }
 0x584   : > { %4636 = vmatpush.msra.mxu0 %v4324_v59  ;;  %v4427_v9 = vld [vmem:[#allocation10 + $0x560] sm:$0xff] }
 0x5c7   : > { %v4036_v42 = vpop.f32.mrf.mxu0  ;;  %v4059_v21 = vpop.f32.mrf.mxu1 }
 0x5c8   : > { %v4060_v62 = vadd.f32 %v4059_v21, %v4036_v42  ;;  %v4340_v42 = vld [vmem:[#allocation10 + $0x2a8] sm:$0xff] }
 0x5c9   : > { %v4356_v21 = vld [vmem:[#allocation10 + $0x328] sm:$0xff]  ;;  %4656 = vmatpush.msra.mxu2 %v4340_v42 }
 0x5ca   : > { %v4105_v30 = vpop.f32.mrf.mxu2  ;;  %4676 = vmatpush.msrb.mxu1 %v4356_v21  ;;  %v4394_v21 = vld [vmem:[#allocation10 + $0x458] sm:$0xff] }
 0x5cb   : > { %v4082_v25 = vpop.f32.mrf.mxu3  ;;  %4657 = vmatpush.msra.mxu2 %v4339_v19  ;;  %v4425_v19 = vld [vmem:[#allocation10 + $0x550] sm:$0xff] }
 0x5cc   : > { %v4083_v8 = vadd.f32 %v4082_v25, %v4060_v62  ;;  %v4372_v62 = vld [vmem:[#allocation10 + $0x3a8] sm:$0xff]  ;;  %4677 = vmatpush.msrb.mxu1 %v4355_v14  ;;  %v4441_v14 = vld [vmem:[#allocation10 + $0x5d0] sm:$0xff] }
 0x5cd   : > { %4696 = vmatpush.msra.mxu3 %v4372_v62  ;;  %v4410_v62 = vld [vmem:[#allocation10 + $0x4d8] sm:$0xff] }
 0x5ce   : > { %v8859_v29 = vadd.f32 %v4105_v30, %v4083_v8  ;;  %v4323_v8 = vld [vmem:[#allocation10 + $0x220] sm:$0xff] }
 0x5cf   : > { %v8861_v46 = vpop.f32.mrf.mxu0  ;;  %v8863_v55 = vpop.f32.mrf.mxu1  ;;  %4637 = vmatpush.msra.mxu0 %v4323_v8  ;;  %4697 = vmatpush.msra.mxu3 %v4371_v6  ;;  %v4409_v8 = vld [vmem:[#allocation10 + $0x4d0] sm:$0xff]  ;;  %v4408_v6 = vld [vmem:[#allocation10 + $0x4c8] sm:$0xff] }
 0x5d0   : > { %4211 = vst [vmem:[#allocation1] sm:$0xff] %v8859_v29  ;;  %v4063_v30 = vadd.f32 %v8863_v55, %v8861_v46  ;;  %v4338_v46 = vld [vmem:[#allocation10 + $0x298] sm:$0xff] }
 0x5d1   : > { %v4354_v55 = vld [vmem:[#allocation10 + $0x318] sm:$0xff]  ;;  %4638 = vmatpush.msra.mxu0 %v4322_v45  ;;  %4658 = vmatpush.msra.mxu2 %v4338_v46  ;;  %v4391_v45 = vld [vmem:[#allocation10 + $0x440] sm:$0xff] }
 0x5d2   : > { %v8866_v1 = vpop.f32.mrf.mxu2  ;;  %4678 = vmatpush.msrb.mxu1 %v4354_v55  ;;  %4698 = vmatpush.msra.mxu3 %v4370_v20  ;;  %v4407_v46 = vld [vmem:[#allocation10 + $0x4c0] sm:$0xff]  ;;  %v4390_v20 = vld [vmem:[#allocation10 + $0x438] sm:$0xff] }
 0x5d3   : > { %v8868_v26 = vpop.f32.mrf.mxu3  ;;  %4639 = vmatpush.msra.mxu0 %v4321_v50  ;;  %4659 = vmatpush.msra.mxu2 %v4337_v12  ;;  %v4423_v55 = vld [vmem:[#allocation10 + $0x540] sm:$0xff]  ;;  %v4422_v50 = vld [vmem:[#allocation10 + $0x538] sm:$0xff] }
 0x5d4   : > { %v4086_v39 = vadd.f32 %v8868_v26, %v4063_v30  ;;  %4679 = vmatpush.msrb.mxu1 %v4353_v63  ;;  %4699 = vmatpush.msra.mxu3 %v4369_v40  ;;  %v4426_v30 = vld [vmem:[#allocation10 + $0x558] sm:$0xff]  ;;  %v4389_v63 = vld [vmem:[#allocation10 + $0x430] sm:$0xff] }
 0x5d5   : > { %4640 = vmatpush.msra.mxu0 %v4320_v53  ;;  %4660 = vmatpush.msra.mxu2 %v4336_v44  ;;  %v4438_v12 = vld [vmem:[#allocation10 + $0x5b8] sm:$0xff]  ;;  %v4388_v53 = vld [vmem:[#allocation10 + $0x428] sm:$0xff] }
 0x5d6   : > { %v8889_v26 = vadd.f32 %v8866_v1, %v4086_v39  ;;  %4680 = vmatpush.msrb.mxu1 %v4352_v32  ;;  %4700 = vmatpush.msra.mxu3 %v4368_v13  ;;  %v4424_v39 = vld [vmem:[#allocation10 + $0x548] sm:$0xff] }
 0x5d7   : > { %v4128_v7 = vpop.f32.mrf.mxu0  ;;  %v4151_v48 = vpop.f32.mrf.mxu1  ;;  %4641 = vmatpush.msra.mxu0 %v4319_v5  ;;  %4661 = vmatpush.msra.mxu2 %v4335_v54  ;;  %v4404_v44 = vld [vmem:[#allocation10 + $0x4a8] sm:$0xff]  ;;  %v4403_v5 = vld [vmem:[#allocation10 + $0x4a0] sm:$0xff] }
 0x5d8   : > { %v4152_v61 = vadd.f32 %v4151_v48, %v4128_v7  ;;  %v4367_v7 = vld [vmem:[#allocation10 + $0x380] sm:$0xff]  ;;  %4681 = vmatpush.msrb.mxu1 %v4351_v52  ;;  %v4420_v32 = vld [vmem:[#allocation10 + $0x528] sm:$0xff] }
 0x5d9   : > { %4701 = vmatpush.msra.mxu3 %v4367_v7  ;;  %v4436_v13 = vld [vmem:[#allocation10 + $0x5a8] sm:$0xff]  ;;  %v4419_v54 = vld [vmem:[#allocation10 + $0x520] sm:$0xff]  ;;  %v4402_v7 = vld [vmem:[#allocation10 + $0x498] sm:$0xff] }
 0x5da   : > { %v4197_v4 = vpop.f32.mrf.mxu2  ;;  %v4435_v52 = vld [vmem:[#allocation10 + $0x5a0] sm:$0xff] }
 0x5db   : > { %v4174_v15 = vpop.f32.mrf.mxu3 }
 0x5dc   : > { %v4175_v47 = vadd.f32 %v4174_v15, %v4152_v61  ;;  %v4397_v15 = vld [vmem:[#allocation10 + $0x470] sm:$0xff] }
 0x5de   : > { %v8870_v38 = vadd.f32 %v4197_v4, %v4175_v47  ;;  %v4446_v4 = vld [vmem:[#allocation10 + $0x5f8] sm:$0xff]  ;;  %v4429_v47 = vld [vmem:[#allocation10 + $0x570] sm:$0xff] }
 0x5df   : > { %v4131_v43 = vpop.f32.mrf.mxu0  ;;  %v4154_v17 = vpop.f32.mrf.mxu1 }
 0x5e0   : > { %v4205_v22 = vrot.slane %v8870_v38, 7  ;;  %4212 = vst [vmem:[#allocation1 + $0x9] sm:$0xff] %v8870_v38  ;;  %v4155_v18 = vadd.f32 %v4154_v17, %v4131_v43  ;;  %v4443_v43 = vld [vmem:[#allocation10 + $0x5e0] sm:$0xff] }
 0x5e2   : > { %v4206_v25 = vsel %vm493_vm1, %v8859_v29, %v4205_v22  ;;  %v4200_v24 = vpop.f32.mrf.mxu2 }
 0x5e3   : > { %4210 = vst.msk [vmem:[#allocation4] sm:$0x3] %vm8874_vm14, %v4206_v25  ;;  %v4177_v3 = vpop.f32.mrf.mxu3  ;;  %v4442_v25 = vld [vmem:[#allocation10 + $0x5d8] sm:$0xff] }
 0x5e4   : > { %v4178_v51 = vadd.f32 %v4177_v3, %v4155_v18  ;;  %v4393_v18 = vld [vmem:[#allocation10 + $0x450] sm:$0xff]  ;;  %v4392_v3 = vld [vmem:[#allocation10 + $0x448] sm:$0xff] }
 0x5e6   : > { %v8886_v56 = vadd.f32 %v4200_v24, %v4178_v51  ;;  %v4440_v51 = vld [vmem:[#allocation10 + $0x5c8] sm:$0xff]  ;;  %v4439_v24 = vld [vmem:[#allocation10 + $0x5c0] sm:$0xff] }
 0x5e7   : > { %v4214_v0 = vld [vmem:[#allocation1 + $0x2] ss:$9 sm:$0xff] }
 0x5e8   : > { %4216 = vst.msk [vmem:[#allocation4 + $0x2] sm:$0x3] %vm8874_vm14, %v4214_v0  ;;  %v4231_v36 = vrot.slane %v8886_v56, 7  ;;  %v4405_v0 = vld [vmem:[#allocation10 + $0x4b0] sm:$0xff] }
 0x5e9   : > { %4217 = vst [vmem:[#allocation1] sm:$0xff] %v8859_v29 }
 0x5ea   : > { %4218 = vst [vmem:[#allocation1 + $0x9] sm:$0xff] %v8870_v38  ;;  %v4232_v1 = vsel %vm493_vm1, %v8889_v26, %v4231_v36  ;;  %v4437_v36 = vld [vmem:[#allocation10 + $0x5b0] sm:$0xff] }
 0x5eb   : > { %4234 = vst.msk [vmem:[#allocation4 + $0x8] sm:$0x3] %vm8874_vm14, %v4232_v1  ;;  %v4387_v1 = vld [vmem:[#allocation10 + $0x420] sm:$0xff] }
 0x5f1   : > { %v4220_v48 = vld [vmem:[#allocation1 + $0x4] ss:$9 sm:$0xff] }
 0x5f2   : > { %4222 = vst.msk [vmem:[#allocation4 + $0x4] sm:$0x3] %vm8874_vm14, %v4220_v48  ;;  %v4418_v48 = vld [vmem:[#allocation10 + $0x518] sm:$0xff] }
 0x5f3   : > { %4224 = vst [vmem:[#allocation1 + $0x9] sm:$0xff] %v8870_v38  ;;  %v4444_v38 = vld [vmem:[#allocation10 + $0x5e8] sm:$0xff] }
 0x5f4   : > { %4223 = vst [vmem:[#allocation1] sm:$0xff] %v8859_v29  ;;  %v4430_v29 = vld [vmem:[#allocation10 + $0x578] sm:$0xff] }
 0x5fb   : > { %v4226_v2 = vld [vmem:[#allocation1 + $0x6] ss:$9 sm:$0xff] }
 0x5fc   : > { %4228 = vst.msk [vmem:[#allocation4 + $0x6] sm:$0x3] %vm8874_vm14, %v4226_v2  ;;  %v4434_v2 = vld [vmem:[#allocation10 + $0x598] sm:$0xff] }
 0x5fd   : > { %4235 = vst [vmem:[#allocation1] sm:$0xff] %v8889_v26 }
 0x5fe   : > { %4236 = vst [vmem:[#allocation1 + $0x9] sm:$0xff] %v8886_v56 }
 0x603   : > { %v4253_v10 = vld [vmem:[#allocation4] sm:$0xff] }
 0x604   : > { %v4514_v37 = vperm.slane %v4253_v10, 0  ;;  %v4515_v11 = vperm.slane %v4253_v10, 1  ;;  %v4516_v27 = vperm.slane %v4253_v10, 2  ;;  %v4517_v61 = vperm.slane %v4253_v10, 3 }
 0x605   : > { %v4238_v33 = vld [vmem:[#allocation1 + $0x2] ss:$9 sm:$0xff]  ;;  %v4518_v17 = vperm.slane %v4253_v10, 4  ;;  %v4519_v35 = vperm.slane %v4253_v10, 5  ;;  %v4520_v59 = vperm.slane %v4253_v10, 6  ;;  %v4521_v42 = vperm.slane %v4253_v10, 7 }
 0x606   : > { %4240 = vst.msk [vmem:[#allocation4 + $0xa] sm:$0x3] %vm8874_vm14, %v4238_v33  ;;  %4562 = vmatmul.f32.vlgmr.msrb.gmra.mxu0 %v4514_v37  ;;  %4582 = vmatmul.f32.vlgmr.msrb.gmra.mxu2 %v4515_v11  ;;  %v4385_v10 = vld [vmem:[#allocation10 + $0x410] sm:$0xff]  ;;  %v4400_v33 = vld [vmem:[#allocation10 + $0x488] sm:$0xff] }
 0x607   : > { %4241 = vst [vmem:[#allocation1] sm:$0xff] %v8889_v26  ;;  %4602 = vmatmul.f32.vlgmr.msra.gmra.mxu1 %v4516_v27  ;;  %4622 = vmatmul.f32.vlgmr.msrb.gmra.mxu3 %v4517_v61  ;;  %v4401_v37 = vld [vmem:[#allocation10 + $0x490] sm:$0xff]  ;;  %v4384_v61 = vld [vmem:[#allocation10 + $0x408] sm:$0xff] }
 0x608   : > { %4242 = vst [vmem:[#allocation1 + $0x9] sm:$0xff] %v8886_v56  ;;  %4706 = vmatpush.msrb.mxu0 %v4398_v58  ;;  %4726 = vmatpush.msrb.mxu2 %v4414_v57  ;;  %v4417_v11 = vld [vmem:[#allocation10 + $0x510] sm:$0xff]  ;;  %v4416_v58 = vld [vmem:[#allocation10 + $0x508] sm:$0xff] }
 0x609   : > { %4746 = vmatpush.msra.mxu1 %v4430_v29  ;;  %4766 = vmatpush.msrb.mxu3 %v4446_v4  ;;  %v4433_v27 = vld [vmem:[#allocation10 + $0x590] sm:$0xff]  ;;  %v4432_v57 = vld [vmem:[#allocation10 + $0x588] sm:$0xff]  ;;  %v4383_v29 = vld [vmem:[#allocation10 + $0x400] sm:$0xff] }
 0x60a   : > { %4707 = vmatpush.msrb.mxu0 %v4397_v15  ;;  %4727 = vmatpush.msrb.mxu2 %v4413_v31  ;;  %v4399_v4 = vld [vmem:[#allocation10 + $0x480] sm:$0xff] }
 0x60b   : > { %4747 = vmatpush.msra.mxu1 %v4429_v47  ;;  %4767 = vmatpush.msrb.mxu3 %v4445_v16  ;;  %v4415_v31 = vld [vmem:[#allocation10 + $0x500] sm:$0xff] }
 0x60c   : > { %4708 = vmatpush.msrb.mxu0 %v4396_v34  ;;  %4728 = vmatpush.msrb.mxu2 %v4412_v28  ;;  %v4431_v47 = vld [vmem:[#allocation10 + $0x580] sm:$0xff] }
 0x60d   : > { %4748 = vmatpush.msra.mxu1 %v4428_v60  ;;  %4768 = vmatpush.msrb.mxu3 %v4444_v38  ;;  %v4462_v38 = vld [vmem:[#allocation10 + $0x678] sm:$0xff] }
 0x60e   : > { %4709 = vmatpush.msrb.mxu0 %v4395_v49  ;;  %4729 = vmatpush.msrb.mxu2 %v4411_v23  ;;  %v4478_v49 = vld [vmem:[#allocation10 + $0x6f8] sm:$0xff] }
 0x60f   : > { %v4244_v22 = vld [vmem:[#allocation1 + $0x4] ss:$9 sm:$0xff]  ;;  %4749 = vmatpush.msra.mxu1 %v4427_v9  ;;  %4769 = vmatpush.msrb.mxu3 %v4443_v43 }
 0x610   : > { %4246 = vst.msk [vmem:[#allocation4 + $0xc] sm:$0x3] %vm8874_vm14, %v4244_v22  ;;  %4642 = vmatmul.f32.vlgmr.msra.gmra.mxu0 %v4518_v17  ;;  %4662 = vmatmul.f32.vlgmr.msra.gmra.mxu2 %v4519_v35  ;;  %v4494_v23 = vld [vmem:[#allocation10 + $0x778] sm:$0xff]  ;;  %v4461_v43 = vld [vmem:[#allocation10 + $0x670] sm:$0xff] }
 0x611   : > { %4247 = vst [vmem:[#allocation1] sm:$0xff] %v8889_v26  ;;  %4682 = vmatmul.f32.vlgmr.msrb.gmra.mxu1 %v4520_v59  ;;  %4702 = vmatmul.f32.vlgmr.msra.gmra.mxu3 %v4521_v42  ;;  %v4421_v26 = vld [vmem:[#allocation10 + $0x530] sm:$0xff]  ;;  %v4510_v9 = vld [vmem:[#allocation10 + $0x7f8] sm:$0xff]  ;;  %v4460_v59 = vld [vmem:[#allocation10 + $0x668] sm:$0xff] }
 0x612   : > { %4248 = vst [vmem:[#allocation1 + $0x9] sm:$0xff] %v8886_v56  ;;  %4710 = vmatpush.msrb.mxu0 %v4394_v21  ;;  %4730 = vmatpush.msrb.mxu2 %v4410_v62  ;;  %v4406_v56 = vld [vmem:[#allocation10 + $0x4b8] sm:$0xff]  ;;  %v4477_v17 = vld [vmem:[#allocation10 + $0x6f0] sm:$0xff]  ;;  %v4476_v42 = vld [vmem:[#allocation10 + $0x6e8] sm:$0xff] }
 0x613   : > { %4750 = vmatpush.msra.mxu1 %v4426_v30  ;;  %4770 = vmatpush.msrb.mxu3 %v4442_v25  ;;  %v4493_v35 = vld [vmem:[#allocation10 + $0x770] sm:$0xff]  ;;  %v4492_v21 = vld [vmem:[#allocation10 + $0x768] sm:$0xff]  ;;  %v4459_v30 = vld [vmem:[#allocation10 + $0x660] sm:$0xff] }
 0x614   : > { %4711 = vmatpush.msrb.mxu0 %v4393_v18  ;;  %4731 = vmatpush.msrb.mxu2 %v4409_v8  ;;  %v4509_v22 = vld [vmem:[#allocation10 + $0x7f0] sm:$0xff]  ;;  %v4508_v62 = vld [vmem:[#allocation10 + $0x7e8] sm:$0xff]  ;;  %v4475_v25 = vld [vmem:[#allocation10 + $0x6e0] sm:$0xff] }
 0x615   : > { %4751 = vmatpush.msra.mxu1 %v4425_v19  ;;  %4771 = vmatpush.msrb.mxu3 %v4441_v14  ;;  %v4491_v18 = vld [vmem:[#allocation10 + $0x760] sm:$0xff]  ;;  %v4458_v19 = vld [vmem:[#allocation10 + $0x658] sm:$0xff] }
 0x616   : > { %4712 = vmatpush.msrb.mxu0 %v4392_v3  ;;  %4732 = vmatpush.msrb.mxu2 %v4408_v6  ;;  %v4507_v8 = vld [vmem:[#allocation10 + $0x7e0] sm:$0xff]  ;;  %v4474_v14 = vld [vmem:[#allocation10 + $0x6d8] sm:$0xff] }
 0x617   : > { %4752 = vmatpush.msra.mxu1 %v4424_v39  ;;  %4772 = vmatpush.msrb.mxu3 %v4440_v51  ;;  %v4490_v3 = vld [vmem:[#allocation10 + $0x758] sm:$0xff]  ;;  %v4457_v39 = vld [vmem:[#allocation10 + $0x650] sm:$0xff] }
 0x618   : > { %4713 = vmatpush.msrb.mxu0 %v4391_v45  ;;  %4733 = vmatpush.msrb.mxu2 %v4407_v46  ;;  %v4506_v6 = vld [vmem:[#allocation10 + $0x7d8] sm:$0xff]  ;;  %v4473_v51 = vld [vmem:[#allocation10 + $0x6d0] sm:$0xff] }
 0x619   : > { %4753 = vmatpush.msra.mxu1 %v4423_v55  ;;  %4773 = vmatpush.msrb.mxu3 %v4439_v24  ;;  %v4250_v40 = vld [vmem:[#allocation1 + $0x6] ss:$9 sm:$0xff] }
 0x61a   : > { %4714 = vmatpush.msrb.mxu0 %v4390_v20  ;;  %4734 = vmatpush.msrb.mxu2 %v4406_v56  ;;  %4252 = vst.msk [vmem:[#allocation4 + $0xe] sm:$0x3] %vm8874_vm14, %v4250_v40  ;;  %v4489_v45 = vld [vmem:[#allocation10 + $0x750] sm:$0xff]  ;;  %v4456_v55 = vld [vmem:[#allocation10 + $0x648] sm:$0xff]  ;;  %v4454_v40 = vld [vmem:[#allocation10 + $0x638] sm:$0xff] }
 0x61b   : > { %4754 = vmatpush.msra.mxu1 %v4422_v50  ;;  %4774 = vmatpush.msrb.mxu3 %v4438_v12  ;;  %v4505_v46 = vld [vmem:[#allocation10 + $0x7d0] sm:$0xff]  ;;  %v4472_v24 = vld [vmem:[#allocation10 + $0x6c8] sm:$0xff]  ;;  %v4455_v50 = vld [vmem:[#allocation10 + $0x640] sm:$0xff] }
 0x61c   : > { %4715 = vmatpush.msrb.mxu0 %v4389_v63  ;;  %4735 = vmatpush.msrb.mxu2 %v4405_v0  ;;  %v4488_v20 = vld [vmem:[#allocation10 + $0x748] sm:$0xff]  ;;  %v4471_v12 = vld [vmem:[#allocation10 + $0x6c0] sm:$0xff] }
 0x61d   : > { %4755 = vmatpush.msra.mxu1 %v4421_v26  ;;  %4775 = vmatpush.msrb.mxu3 %v4437_v36  ;;  %v4504_v56 = vld [vmem:[#allocation10 + $0x7c8] sm:$0xff]  ;;  %v4487_v63 = vld [vmem:[#allocation10 + $0x740] sm:$0xff]  ;;  %v4470_v26 = vld [vmem:[#allocation10 + $0x6b8] sm:$0xff] }
 0x61e   : > { %4716 = vmatpush.msrb.mxu0 %v4388_v53  ;;  %4736 = vmatpush.msrb.mxu2 %v4404_v44  ;;  %v4503_v0 = vld [vmem:[#allocation10 + $0x7c0] sm:$0xff]  ;;  %v4486_v36 = vld [vmem:[#allocation10 + $0x738] sm:$0xff]  ;;  %v4453_v44 = vld [vmem:[#allocation10 + $0x630] sm:$0xff] }
 0x61f   : > { %4756 = vmatpush.msra.mxu1 %v4420_v32  ;;  %4776 = vmatpush.msrb.mxu3 %v4436_v13  ;;  %v4502_v53 = vld [vmem:[#allocation10 + $0x7b8] sm:$0xff]  ;;  %v4469_v32 = vld [vmem:[#allocation10 + $0x6b0] sm:$0xff] }
 0x620   : > { %4717 = vmatpush.msrb.mxu0 %v4387_v1  ;;  %4737 = vmatpush.msrb.mxu2 %v4403_v5  ;;  %v4485_v13 = vld [vmem:[#allocation10 + $0x730] sm:$0xff]  ;;  %v4452_v5 = vld [vmem:[#allocation10 + $0x628] sm:$0xff] }
 0x621   : > { %4757 = vmatpush.msra.mxu1 %v4419_v54  ;;  %4777 = vmatpush.msrb.mxu3 %v4435_v52  ;;  %v8918_v15 = vld [vmem:[#allocation4 + $0x8] sm:$0xff]  ;;  %v4501_v1 = vld [vmem:[#allocation10 + $0x7b0] sm:$0xff]  ;;  %v4468_v54 = vld [vmem:[#allocation10 + $0x6a8] sm:$0xff] }
 0x622   : > { %4718 = vmatpush.msrb.mxu0 %v4386_v41  ;;  %4738 = vmatpush.msrb.mxu2 %v4402_v7  ;;  %v4522_v16 = vperm.slane %v8918_v15, 0  ;;  %v4523_v34 = vperm.slane %v8918_v15, 1  ;;  %v4524_v28 = vperm.slane %v8918_v15, 2  ;;  %v4525_v60 = vperm.slane %v8918_v15, 3  ;;  %v4484_v52 = vld [vmem:[#allocation10 + $0x728] sm:$0xff]  ;;  %v4451_v7 = vld [vmem:[#allocation10 + $0x620] sm:$0xff] }
 0x623   : > { %4758 = vmatpush.msra.mxu1 %v4418_v48  ;;  %4778 = vmatpush.msrb.mxu3 %v4434_v2  ;;  %v4500_v41 = vld [vmem:[#allocation10 + $0x7a8] sm:$0xff]  ;;  %v4467_v48 = vld [vmem:[#allocation10 + $0x6a0] sm:$0xff] }
 0x624   : > { %4719 = vmatpush.msrb.mxu0 %v4385_v10  ;;  %4739 = vmatpush.msrb.mxu2 %v4401_v37  ;;  %v4483_v2 = vld [vmem:[#allocation10 + $0x720] sm:$0xff]  ;;  %v4450_v37 = vld [vmem:[#allocation10 + $0x618] sm:$0xff] }
 0x625   : > { %4759 = vmatpush.msra.mxu1 %v4417_v11  ;;  %4779 = vmatpush.msrb.mxu3 %v4433_v27  ;;  %v4499_v10 = vld [vmem:[#allocation10 + $0x7a0] sm:$0xff]  ;;  %v4466_v11 = vld [vmem:[#allocation10 + $0x698] sm:$0xff] }
 0x626   : > { %4720 = vmatpush.msrb.mxu0 %v4384_v61  ;;  %4740 = vmatpush.msrb.mxu2 %v4400_v33  ;;  %v4482_v27 = vld [vmem:[#allocation10 + $0x718] sm:$0xff]  ;;  %v4449_v33 = vld [vmem:[#allocation10 + $0x610] sm:$0xff] }
 0x627   : > { %4760 = vmatpush.msra.mxu1 %v4416_v58  ;;  %4780 = vmatpush.msrb.mxu3 %v4432_v57  ;;  %v4498_v61 = vld [vmem:[#allocation10 + $0x798] sm:$0xff]  ;;  %v4465_v58 = vld [vmem:[#allocation10 + $0x690] sm:$0xff] }
 0x628   : > { %4721 = vmatpush.msrb.mxu0 %v4383_v29  ;;  %4741 = vmatpush.msrb.mxu2 %v4399_v4  ;;  %v4481_v57 = vld [vmem:[#allocation10 + $0x710] sm:$0xff]  ;;  %v4448_v4 = vld [vmem:[#allocation10 + $0x608] sm:$0xff] }
 0x629   : > { %4761 = vmatpush.msra.mxu1 %v4415_v31  ;;  %4781 = vmatpush.msrb.mxu3 %v4431_v47  ;;  %v4497_v29 = vld [vmem:[#allocation10 + $0x790] sm:$0xff]  ;;  %v4464_v31 = vld [vmem:[#allocation10 + $0x688] sm:$0xff] }
 0x62a   : > { %4722 = vmatmul.f32.vlgmr.msrb.gmra.mxu0 %v4522_v16  ;;  %4742 = vmatmul.f32.vlgmr.msrb.gmra.mxu2 %v4523_v34  ;;  %v4480_v47 = vld [vmem:[#allocation10 + $0x708] sm:$0xff]  ;;  %v4447_v34 = vld [vmem:[#allocation10 + $0x600] sm:$0xff] }
 0x62b   : > { %4762 = vmatmul.f32.vlgmr.msra.gmra.mxu1 %v4524_v28  ;;  %4782 = vmatmul.f32.vlgmr.msrb.gmra.mxu3 %v4525_v60  ;;  %v4496_v16 = vld [vmem:[#allocation10 + $0x788] sm:$0xff]  ;;  %v4463_v28 = vld [vmem:[#allocation10 + $0x680] sm:$0xff] }
 0x62c   : > { %4786 = vmatpush.msra.mxu0 %v4462_v38  ;;  %4806 = vmatpush.msra.mxu2 %v4478_v49  ;;  %v4479_v60 = vld [vmem:[#allocation10 + $0x700] sm:$0xff]  ;;  %v4526_v49 = vperm.slane %v8918_v15, 4 }
 0x62d   : > { %4826 = vmatpush.msrb.mxu1 %v4494_v23  ;;  %4846 = vmatpush.msra.mxu3 %v4510_v9  ;;  %v4495_v38 = vld [vmem:[#allocation10 + $0x780] sm:$0xff]  ;;  %v4527_v23 = vperm.slane %v8918_v15, 5  ;;  %v4528_v9 = vperm.slane %v8918_v15, 6 }
 0x62e   : > { %4787 = vmatpush.msra.mxu0 %v4461_v43  ;;  %4807 = vmatpush.msra.mxu2 %v4477_v17  ;;  %v4529_v43 = vperm.slane %v8918_v15, 7  ;;  %v4882_v17 = vld [vmem:[%s9024_s10 + $0x78] sm:$0xff]  ;;  %v4879_v15 = vld [vmem:[%s9024_s10 + $0x60] sm:$0xff] }
 0x62f   : > { %4827 = vmatpush.msrb.mxu1 %v4493_v35  ;;  %4847 = vmatpush.msra.mxu3 %v4509_v22  ;;  %v4881_v35 = vld [vmem:[%s9024_s10 + $0x70] sm:$0xff]  ;;  %v4880_v22 = vld [vmem:[%s9024_s10 + $0x68] sm:$0xff] }
 0x630   : > { %4788 = vmatpush.msra.mxu0 %v4460_v59  ;;  %4808 = vmatpush.msra.mxu2 %v4476_v42  ;;  %v4878_v59 = vld [vmem:[%s9024_s10 + $0x58] sm:$0xff]  ;;  %v4877_v42 = vld [vmem:[%s9024_s10 + $0x50] sm:$0xff] }
 0x631   : > { %4828 = vmatpush.msrb.mxu1 %v4492_v21  ;;  %4848 = vmatpush.msra.mxu3 %v4508_v62  ;;  %v4876_v21 = vld [vmem:[%s9024_s10 + $0x48] sm:$0xff]  ;;  %v4875_v62 = vld [vmem:[%s9024_s10 + $0x40] sm:$0xff] }
 0x632   : > { %4789 = vmatpush.msra.mxu0 %v4459_v30  ;;  %4809 = vmatpush.msra.mxu2 %v4475_v25  ;;  %v4511_v30 = vld [vmem:[%s9023_s9] sm:$0x1] }
 0x633   : > { %4829 = vmatpush.msrb.mxu1 %v4491_v18  ;;  %4849 = vmatpush.msra.mxu3 %v4507_v8 }
 0x634   : > { %4790 = vmatpush.msra.mxu0 %v4458_v19  ;;  %4810 = vmatpush.msra.mxu2 %v4474_v14  ;;  %v4874_v14 = vld [vmem:[%s9024_s10 + $0x38] sm:$0xff] }
 0x635   : > { %4830 = vmatpush.msrb.mxu1 %v4490_v3  ;;  %4850 = vmatpush.msra.mxu3 %v4506_v6  ;;  %v4873_v3 = vld [vmem:[%s9024_s10 + $0x30] sm:$0xff] }
 0x636   : > { %4791 = vmatpush.msra.mxu0 %v4457_v39  ;;  %4811 = vmatpush.msra.mxu2 %v4473_v51  ;;  %v4872_v39 = vld [vmem:[%s9024_s10 + $0x28] sm:$0xff] }
 0x637   : > { %4831 = vmatpush.msrb.mxu1 %v4489_v45  ;;  %4851 = vmatpush.msra.mxu3 %v4505_v46  ;;  %v4871_v46 = vld [vmem:[%s9024_s10 + $0x20] sm:$0xff] }
 0x638   : > { %4792 = vmatpush.msra.mxu0 %v4456_v55  ;;  %4812 = vmatpush.msra.mxu2 %v4472_v24  ;;  %v4870_v24 = vld [vmem:[%s9024_s10 + $0x18] sm:$0xff] }
 0x639   : > { %4832 = vmatpush.msrb.mxu1 %v4488_v20  ;;  %4852 = vmatpush.msra.mxu3 %v4504_v56  ;;  %v4869_v56 = vld [vmem:[%s9024_s10 + $0x10] sm:$0xff] }
 0x63a   : > { %4793 = vmatpush.msra.mxu0 %v4455_v50  ;;  %4813 = vmatpush.msra.mxu2 %v4471_v12 }
 0x63b   : > { %4833 = vmatpush.msrb.mxu1 %v4487_v63  ;;  %4853 = vmatpush.msra.mxu3 %v4503_v0  ;;  %v4868_v63 = vld [vmem:[%s9024_s10 + $0x8] sm:$0xff]  ;;  %v4867_v0 = vld [vmem:[%s9024_s10] sm:$0xff] }
 0x63c   : > { %4794 = vmatpush.msra.mxu0 %v4454_v40  ;;  %4814 = vmatpush.msra.mxu2 %v4470_v26 }
 0x63d   : > { %4834 = vmatpush.msrb.mxu1 %v4486_v36  ;;  %4854 = vmatpush.msra.mxu3 %v4502_v53 }
 0x63e   : > { %4795 = vmatpush.msra.mxu0 %v4453_v44  ;;  %4815 = vmatpush.msra.mxu2 %v4469_v32 }
 0x63f   : > { %4835 = vmatpush.msrb.mxu1 %v4485_v13  ;;  %4855 = vmatpush.msra.mxu3 %v4501_v1 }
 0x640   : > { %4796 = vmatpush.msra.mxu0 %v4452_v5  ;;  %4816 = vmatpush.msra.mxu2 %v4468_v54 }
 0x641   : > { %4836 = vmatpush.msrb.mxu1 %v4484_v52  ;;  %4856 = vmatpush.msra.mxu3 %v4500_v41 }
 0x642   : > { %4797 = vmatpush.msra.mxu0 %v4451_v7  ;;  %4817 = vmatpush.msra.mxu2 %v4467_v48 }
 0x643   : > { %4837 = vmatpush.msrb.mxu1 %v4483_v2  ;;  %4857 = vmatpush.msra.mxu3 %v4499_v10 }
 0x644   : > { %4798 = vmatpush.msra.mxu0 %v4450_v37  ;;  %4818 = vmatpush.msra.mxu2 %v4466_v11 }
 0x645   : > { %4838 = vmatpush.msrb.mxu1 %v4482_v27  ;;  %4858 = vmatpush.msra.mxu3 %v4498_v61 }
 0x646   : > { %4799 = vmatpush.msra.mxu0 %v4449_v33  ;;  %4819 = vmatpush.msra.mxu2 %v4465_v58 }
 0x647   : > { %4839 = vmatpush.msrb.mxu1 %v4481_v57  ;;  %4859 = vmatpush.msra.mxu3 %v4497_v29  ;;  %v4883_v57 = vld [vmem:[%s9098_s16] sm:$0x1] }
 0x648   : > { %4800 = vmatpush.msra.mxu0 %v4448_v4  ;;  %4820 = vmatpush.msra.mxu2 %v4464_v31 }
 0x649   : > { %4840 = vmatpush.msrb.mxu1 %v4480_v47  ;;  %4860 = vmatpush.msra.mxu3 %v4496_v16 }
 0x64a   : > { %4801 = vmatpush.msra.mxu0 %v4447_v34  ;;  %4821 = vmatpush.msra.mxu2 %v4463_v28 }
 0x64b   : > { %4841 = vmatpush.msrb.mxu1 %v4479_v60  ;;  %4861 = vmatpush.msra.mxu3 %v4495_v38 }
 0x64c   : > { %4802 = vmatmul.f32.vlgmr.msra.gmra.mxu0 %v4526_v49  ;;  %4822 = vmatmul.f32.vlgmr.msra.gmra.mxu2 %v4527_v23 }
 0x64d   : > { %4842 = vmatmul.f32.vlgmr.msrb.gmra.mxu1 %v4528_v9  ;;  %4862 = vmatmul.f32.vlgmr.msra.gmra.mxu3 %v4529_v43 }
 0x64e   : > { %4884 = vmatpush.msrb.mxu0 %v4882_v17 }
 0x650   : > { %4885 = vmatpush.msrb.mxu0 %v4881_v35 }
 0x652   : > { %4886 = vmatpush.msrb.mxu0 %v4880_v22 }
 0x654   : > { %4887 = vmatpush.msrb.mxu0 %v4879_v15 }
 0x656   : > { %4888 = vmatpush.msrb.mxu0 %v4878_v59 }
 0x658   : > { %4889 = vmatpush.msrb.mxu0 %v4877_v42 }
 0x65a   : > { %4890 = vmatpush.msrb.mxu0 %v4876_v21 }
 0x65c   : > { %4891 = vmatpush.msrb.mxu0 %v4875_v62 }
 0x65e   : > { %4892 = vmatpush.msrb.mxu0 %v4874_v14 }
 0x660   : > { %4893 = vmatpush.msrb.mxu0 %v4873_v3 }
 0x662   : > { %4894 = vmatpush.msrb.mxu0 %v4872_v39 }
 0x664   : > { %4895 = vmatpush.msrb.mxu0 %v4871_v46 }
 0x666   : > { %4896 = vmatpush.msrb.mxu0 %v4870_v24 }
 0x668   : > { %4897 = vmatpush.msrb.mxu0 %v4869_v56 }
 0x66a   : > { %4898 = vmatpush.msrb.mxu0 %v4868_v63 }
 0x66c   : > { %4899 = vmatpush.msrb.mxu0 %v4867_v0 }
 0x683   : > { %v4563_v25 = vpop.f32.mrf.mxu0 }
 0x684   : > { %v4564_v8 = vadd.f32 %v4563_v25, %v4511_v30  ;;  %v4603_v6 = vpop.f32.mrf.mxu1 }
 0x689   : > { %v4583_v18 = vpop.f32.mrf.mxu2 }
 0x68a   : > { %v4584_v19 = vadd.f32 %v4583_v18, %v4564_v8  ;;  %v4623_v45 = vpop.f32.mrf.mxu3 }
 0x68c   : > { %v4604_v51 = vadd.f32 %v4603_v6, %v4584_v19 }
 0x68d   : > { %v4643_v20 = vpop.f32.mrf.mxu0 }
 0x68e   : > { %v4624_v55 = vadd.f32 %v4623_v45, %v4604_v51  ;;  %v4683_v26 = vpop.f32.mrf.mxu1 }
 0x690   : > { %v4644_v50 = vadd.f32 %v4643_v20, %v4624_v55 }
 0x693   : > { %v4663_v12 = vpop.f32.mrf.mxu2 }
 0x694   : > { %v4664_v40 = vadd.f32 %v4663_v12, %v4644_v50  ;;  %v4703_v53 = vpop.f32.mrf.mxu3 }
 0x696   : > { %v4684_v36 = vadd.f32 %v4683_v26, %v4664_v40 }
 0x698   : > { %v4704_v32 = vadd.f32 %v4703_v53, %v4684_v36 }
 0x6a7   : > { %v4723_v44 = vpop.f32.mrf.mxu0 }
 0x6a8   : > { %v4724_v1 = vadd.f32 %v4723_v44, %v4704_v32  ;;  %v4763_v54 = vpop.f32.mrf.mxu1 }
 0x6ad   : > { %v4743_v13 = vpop.f32.mrf.mxu2 }
 0x6ae   : > { %v4744_v5 = vadd.f32 %v4743_v13, %v4724_v1  ;;  %v4783_v41 = vpop.f32.mrf.mxu3 }
 0x6b0   : > { %v4764_v52 = vadd.f32 %v4763_v54, %v4744_v5 }
 0x6b2   : > { %v4784_v48 = vadd.f32 %v4783_v41, %v4764_v52 }
 0x6c9   : > { %v4803_v7 = vpop.f32.mrf.mxu0 }
 0x6ca   : > { %v4804_v2 = vadd.f32 %v4803_v7, %v4784_v48  ;;  %v4843_v11 = vpop.f32.mrf.mxu1 }
 0x6cf   : > { %v4823_v10 = vpop.f32.mrf.mxu2 }
 0x6d0   : > { %v4824_v37 = vadd.f32 %v4823_v10, %v4804_v2  ;;  %v4863_v61 = vpop.f32.mrf.mxu3 }
 0x6d2   : > { %v4844_v27 = vadd.f32 %v4843_v11, %v4824_v37 }
 0x6d4   : > { %v4864_v33 = vadd.f32 %v4863_v61, %v4844_v27 }
 0x6d6   : > { %v4866_v58 = vmax.f32 %v4864_v33, 0.0 }
 0x6d8   : > { %4900 = vmatmul.f32.vlgmr.msrb.gmra.mxu0 %v4866_v58 }
 0x755   : > { %v4901_v29 = vpop.f32.mrf.mxu0 }
 0x756   : > { %v4902_v4 = vadd.f32 %v4901_v29, %v4883_v57 }
 0x758   : > { %4904 = vst [vmem:[%s455_s17] sm:$0x1] %v4902_v4 }
 0x759   : > { %5643 = shalt.err (!%p5640_p8)
}
 0x75a   : > { %5416 = dma.vmem_to_hbm [thread:$0]  (%p5803_p5), %s4917_s19, 16, %s4919_s28, %s4906_s29  }
 0x75b PF: > { %s9099_s27 = sld [smem:[#allocation17_spill]] }
 0x75c   : > { %s9100_s30 = sld [smem:[#allocation15_spill]] }
 0x761   : > { %p5438_p9 = scmp.ge.s32.totalorder %s9099_s27, 2 }
 0x762   : > { %s4930_s15 = sand.u32 1, %s9100_s30  }
 0x763   : > { %p5429_p10 = pnand %p5438_p9, %p5807_p6  ;;  %s4931_s18 = scalar_lea.sflag [#allocation7], %s4930_s15 }
 0x765   : > { %p5430_p11 = pneg %p5429_p10 }
 0x767   : > { %5669 = dma.done.wait (%p5430_p11), %s4931_s18, 16  }
 0x768   : > { %5671 = vsyncadd (%p5430_p11), %s4931_s18, 4294967280  ;;  %s9102_s24 = sld [smem:[#allocation18_spill]]  ;;  %s9105_s21 = smov %s5678_s22 }
 0x769   : > { %s9103_s20 = sld [smem:[#allocation16_spill]] }
 0x76a   : > { %s9104_s23 = sld [smem:[#allocation19_spill]] }
 0x76e   : > { %p24_p12 = scmp.ge.s32.totalorder %s9102_s24, 4  }
 0x76f   : > { %s9106_s22 = smov %s9103_s20 }
 0x770   :  { %26 = sbr.rel (!%p24_p12) target bundleno = 9 (0x9), region = 128 }
 0x775   :  { %4936 = vsyncpa [#allocation6], 1 }
 0x776   :  { %4938 = vsyncpa [#allocation6 + $0x1], 1 }
 0x777   :  { %4939 = vsyncpa [#allocation9], 1 }
 0x778   :  { %4940 = vsyncpa [#allocation7], 1 }
 0x779   :  { %4942 = vsyncpa [#allocation7 + $0x1], 1 }

</bundles_post_ra>
